<compile_context>
chip_gen: v7x
topology: tpu7x:2x2x1
jax: 0.10.0
libtpu: 0.0.40
codegen_flags: <defaults>
</compile_context>

<pallas_src>
import functools

import numpy as np
import jax
import jax.numpy as jnp
from jax.experimental import pallas as pl
from jax.experimental.pallas import tpu as pltpu

CLAMP = 6.0
LATENT = 6
CTX_SIZE = 3
HID = 30
FH = 2 * HID           # 60  : [f-hidden | h-hidden]
GPAD = 128             # g block starts on a lane-tile boundary
GW = LATENT * HID      # 180 : 6 g-nets x 30 hidden, lane-concatenated
PREW = GPAD + GW       # 308 : width of the packed layer-1 output
OUTW = 3 * LATENT      # 18  : [f_out | f_out - h_out | g_linear]


def _softplus(x):
    # numerically stable softplus using only exp/log (TPU friendly)
    return jnp.maximum(x, 0.0) + jnp.log(1.0 + jnp.exp(-jnp.abs(x)))


def _sigmoid(x):
    # exact tanh form: single EUP transcendental, no inf intermediates
    return 0.5 * (jnp.tanh(0.5 * x) + 1.0)


def _mlp3(x, w1, b1, w2, b2, w3, b3):
    h1 = _softplus(jnp.dot(x, w1, preferred_element_type=jnp.float32) + b1)
    h2 = _softplus(jnp.dot(h1, w2, preferred_element_type=jnp.float32) + b2)
    return jnp.dot(h2, w3, preferred_element_type=jnp.float32) + b3


# ---------------------------------------------------------------------------
# The fused kernel
# ---------------------------------------------------------------------------
def _latent_sde_kernel(T, B,
                       # inputs
                       dts_ref, x_ref, tgt_ref, trep_ref, eps_ref, noise_ref,
                       ew1, eb1, ew2, eb2, ew3, eb3,
                       dw1, db1, dw2, db2, dw3, db3,
                       w1z_ref, wt_ref, wc_ref, b1_ref, w2_ref, b2_ref,
                       pzm_ref, pzs_ref,
                       # outputs
                       lp_ref, kl_ref,
                       # scratch
                       zs_sc, pre_sc):
    x = x_ref[...]                                         # [T*B, 150]

    # ----------------------- Encoder (150 -> 30 -> 30 -> 15) ----------------
    # The reference flips time, runs the encoder, takes index [-1] of the
    # flipped result and re-flips ctx; since the encoder is memoryless this is
    # algebraically identical to running on the un-flipped sequence.
    enc = _mlp3(x, ew1[...], eb1[...], ew2[...], eb2[...], ew3[...], eb3[...])
    qz0_mean = enc[0:B, 0:LATENT]                          # [B, 6]
    qz0_logstd = enc[0:B, LATENT:2 * LATENT]               # [B, 6]
    z0 = qz0_mean + jnp.exp(jnp.clip(qz0_logstd, -CLAMP, CLAMP)) * eps_ref[...]

    # ------ hoist all z-independent SDE layer-1 terms (t, ctx, biases) ------
    # pre row block m (rows m*B:(m+1)*B) is consumed at step n = m-1 and holds
    #   ts[n] * w_t  +  ctx[m] @ w_c  +  b1        (ctx index = min(n+1, T-1))
    ctx_all = enc[:, 2 * LATENT:2 * LATENT + CTX_SIZE]     # [T*B, 3]
    pre_sc[...] = (jnp.dot(ctx_all, wc_ref[...], preferred_element_type=jnp.float32)
                   + trep_ref[...] * wt_ref[...]
                   + b1_ref[...])                          # [T*B, 308]

    zs_sc[0:B, :] = z0

    # --------------- Euler-Maruyama over the ts grid (serial) ---------------
    # TODO(synk): torchsde.sdeint substeps with fixed dt=0.02 and linearly
    # interpolates at ts; here we take one Euler-Maruyama step per ts interval
    # (same scheme, coarser grid).  Brownian increments arrive pre-scaled by
    # sqrt(dt) instead of coming from torch's RNG.
    z = z0
    acc = jnp.zeros_like(z0)                               # sum ||(f-h)/g||^2 dt
    for n in range(T - 1):                                 # short, fully static
        dt = dts_ref[n]
        pre_n = pre_sc[(n + 1) * B:(n + 2) * B, :]         # [B, 308]
        act = _softplus(
            jnp.dot(z, w1z_ref[...], preferred_element_type=jnp.float32) + pre_n)
        out = (jnp.dot(act, w2_ref[...], preferred_element_type=jnp.float32)
               + b2_ref[...])                              # [B, 18]
        f_out = out[:, 0:LATENT]
        diff = out[:, LATENT:2 * LATENT]                   # f_out - h_out
        g_out = _sigmoid(out[:, 2 * LATENT:3 * LATENT])
        u = diff / (g_out + 1e-7)
        acc = acc + (u * u) * dt
        z = z + f_out * dt + g_out * noise_ref[n]
        zs_sc[(n + 1) * B:(n + 2) * B, :] = z

    # ----------------------- Decoder (6 -> 30 -> 30 -> 100) -----------------
    zs = zs_sc[...]                                        # [T*B, 6]
    dec = _mlp3(zs, dw1[...], db1[...], dw2[...], db2[...], dw3[...], db3[...])
    xs_mean = dec[:, 0:50]
    xs_logstd = dec[:, 50:100]
    scale = jnp.exp(jnp.clip(xs_logstd, -CLAMP, CLAMP))
    zn = (tgt_ref[...] - xs_mean) / scale
    log_prob = (-0.5 * np.log(2.0 * np.pi)) - jnp.log(scale) - 0.5 * zn * zn
    lp_rows = jnp.sum(log_prob, axis=1, keepdims=True)     # [T*B, 1]
    lp_sum = jnp.sum(lp_rows, axis=0, keepdims=True)       # [1, 1]

    # ------------------------------ KL terms --------------------------------
    q_scale = jnp.exp(jnp.clip(qz0_logstd, -CLAMP, CLAMP))
    p_scale = jnp.exp(jnp.clip(pzs_ref[...], -CLAMP, CLAMP))
    p_mean = pzm_ref[...]
    kl0 = (jnp.log(p_scale) - jnp.log(q_scale)
           + (q_scale * q_scale + (qz0_mean - p_mean) ** 2)
           / (2.0 * p_scale * p_scale)
           - 0.5)                                          # [B, 6]
    kl0_sum = jnp.sum(jnp.sum(kl0, axis=1, keepdims=True), axis=0, keepdims=True)
    path_sum = jnp.sum(jnp.sum(acc, axis=1, keepdims=True), axis=0, keepdims=True)

    inv_b = 1.0 / float(B)
    lp_ref[...] = lp_sum * inv_b
    kl_ref[...] = (kl0_sum + 0.5 * path_sum) * inv_b


# ---------------------------------------------------------------------------
# Host-side weight packing for the merged f/h/g step
# ---------------------------------------------------------------------------
def pack_sde_params(p):
    wf1, bf1, wf2, bf2 = p['wf1'], p['bf1'], p['wf2'], p['bf2']
    wh1, bh1, wh2, bh2 = p['wh1'], p['bh1'], p['wh2'], p['bh2']
    wg1t, wg1y, bg1, wg2, bg2 = p['wg1t'], p['wg1y'], p['bg1'], p['wg2'], p['bg2']

    # layer-1, z-dependent part: [6, 308]
    w1z = jnp.zeros((LATENT, PREW), jnp.float32)
    w1z = w1z.at[:, 0:HID].set(wf1[1:1 + LATENT, :])
    w1z = w1z.at[:, HID:FH].set(wh1[1:1 + LATENT, :])
    for i in range(LATENT):
        w1z = w1z.at[i, GPAD + i * HID:GPAD + (i + 1) * HID].set(wg1y[i])

    # layer-1, t-dependent row: [1, 308]
    wt = jnp.zeros((1, PREW), jnp.float32)
    wt = wt.at[:, 0:HID].set(wf1[0:1, :])
    wt = wt.at[:, HID:FH].set(wh1[0:1, :])
    wt = wt.at[:, GPAD:PREW].set(wg1t.reshape(1, GW))

    # layer-1, ctx-dependent part (f only): [3, 308]
    wc = jnp.zeros((CTX_SIZE, PREW), jnp.float32)
    wc = wc.at[:, 0:HID].set(wf1[1 + LATENT:, :])

    # layer-1 bias: [1, 308]
    b1 = jnp.zeros((1, PREW), jnp.float32)
    b1 = b1.at[:, 0:HID].set(bf1)
    b1 = b1.at[:, HID:FH].set(bh1)
    b1 = b1.at[:, GPAD:PREW].set(bg1.reshape(1, GW))

    # layer-2 block-diagonal: [308, 18] -> [f_out | f_out - h_out | g_linear]
    w2 = jnp.zeros((PREW, OUTW), jnp.float32)
    w2 = w2.at[0:HID, 0:LATENT].set(wf2)
    w2 = w2.at[0:HID, LATENT:2 * LATENT].set(wf2)
    w2 = w2.at[HID:FH, LATENT:2 * LATENT].set(-wh2)
    for i in range(LATENT):
        w2 = w2.at[GPAD + i * HID:GPAD + (i + 1) * HID, 2 * LATENT + i].set(wg2[i])

    b2 = jnp.zeros((1, OUTW), jnp.float32)
    b2 = b2.at[:, 0:LATENT].set(bf2)
    b2 = b2.at[:, LATENT:2 * LATENT].set(bf2 - bh2)
    b2 = b2.at[:, 2 * LATENT:3 * LATENT].set(bg2)
    return w1z, wt, wc, b1, w2, b2


# ---------------------------------------------------------------------------
# Full forward pass (one fused pallas_call)
# ---------------------------------------------------------------------------
def latent_sde_forward(params, xs, ts, eps_z0, noise):
    T, B, W, D = xs.shape                                  # [T, B, 3, 50]
    x_flat = xs.reshape(T * B, W * D).astype(jnp.float32)  # [T*B, 150]
    target = xs[:, :, -1, :].reshape(T * B, D).astype(jnp.float32)

    dts = (ts[1:] - ts[:-1]).astype(jnp.float32)           # [T-1]
    noise_scaled = noise * jnp.sqrt(dts)[:, None, None]    # [T-1, B, 6]
    # t value per pre-row-block m: ts[m-1] (block 0 unused -> ts[0])
    t_shift = jnp.concatenate([ts[:1], ts[:-1]]).astype(jnp.float32)
    trep = jnp.repeat(t_shift, B).reshape(T * B, 1)

    w1z, wt, wc, b1, w2, b2 = pack_sde_params(params)

    args = (dts, x_flat, target, trep, eps_z0, noise_scaled,
            params['ew1'], params['eb1'], params['ew2'], params['eb2'],
            params['ew3'], params['eb3'],
            params['dw1'], params['db1'], params['dw2'], params['db2'],
            params['dw3'], params['db3'],
            w1z, wt, wc, b1, w2, b2,
            params['pz0_mean'], params['pz0_logstd'])

    vmem = pl.BlockSpec(memory_space=pltpu.MemorySpace.VMEM)
    smem = pl.BlockSpec(memory_space=pltpu.MemorySpace.SMEM)
    in_specs = [smem] + [vmem] * (len(args) - 1)

    kernel = functools.partial(_latent_sde_kernel, T, B)
    lp, kl = pl.pallas_call(
        kernel,
        out_shape=[jax.ShapeDtypeStruct((1, 1), jnp.float32),
                   jax.ShapeDtypeStruct((1, 1), jnp.float32)],
        in_specs=in_specs,
        out_specs=[vmem, vmem],
        scratch_shapes=[pltpu.VMEM((T * B, LATENT), jnp.float32),   # zs
                        pltpu.VMEM((T * B, PREW), jnp.float32)],    # hoisted pre
    )(*args)
    return lp[0, 0], kl[0, 0]


# ---------------------------------------------------------------------------
# Deterministic parameter initialization (shapes from LatentSDE.__init__)
# ---------------------------------------------------------------------------
def init_params(key):
    keys = jax.random.split(key, 16)

    def lin(k, fi, fo):
        k1, k2 = jax.random.split(k)
        b = 1.0 / np.sqrt(fi)
        return (jax.random.uniform(k1, (fi, fo), jnp.float32, -b, b),
                jax.random.uniform(k2, (1, fo), jnp.float32, -b, b))

    p = {}
    # Encoder: 150 -> 30 -> 30 -> 15
    p['ew1'], p['eb1'] = lin(keys[0], 150, 30)
    p['ew2'], p['eb2'] = lin(keys[1], 30, 30)
    p['ew3'], p['eb3'] = lin(keys[2], 30, 15)
    # Decoder: 6 -> 30 -> 30 -> 100
    p['dw1'], p['db1'] = lin(keys[3], 6, 30)
    p['dw2'], p['db2'] = lin(keys[4], 30, 30)
    p['dw3'], p['db3'] = lin(keys[5], 30, 100)
    # f_net: (6 + 1 + 3) -> 30 -> 6
    p['wf1'], p['bf1'] = lin(keys[6], 10, 30)
    p['wf2'], p['bf2'] = lin(keys[7], 30, 6)
    # h_net: (6 + 1) -> 30 -> 6
    p['wh1'], p['bh1'] = lin(keys[8], 7, 30)
    p['wh2'], p['bh2'] = lin(keys[9], 30, 6)
    # g_nets: 6 independent nets (2 -> 30 -> 1 -> sigmoid), stacked
    bg = 1.0 / np.sqrt(2.0)
    p['wg1t'] = jax.random.uniform(keys[10], (LATENT, 30), jnp.float32, -bg, bg)
    p['wg1y'] = jax.random.uniform(keys[11], (LATENT, 30), jnp.float32, -bg, bg)
    p['bg1'] = jax.random.uniform(keys[12], (LATENT, 30), jnp.float32, -bg, bg)
    bo = 1.0 / np.sqrt(30.0)
    p['wg2'] = jax.random.uniform(keys[13], (LATENT, 30), jnp.float32, -bo, bo)
    p['bg2'] = jax.random.uniform(keys[14], (1, LATENT), jnp.float32, -bo, bo)
    # prior
    p['pz0_mean'] = jnp.zeros((1, LATENT), jnp.float32)
    p['pz0_logstd'] = jnp.zeros((1, LATENT), jnp.float32)
    return p


if __name__ == "__main__":
    key = jax.random.PRNGKey(0)
    pkey, xkey, ekey, nkey = jax.random.split(key, 4)

    T, B = 8, 2
    params = init_params(pkey)
    xs = jax.random.normal(xkey, (T, B, 3, 50), jnp.float32)
    ts = jnp.linspace(0.0, 0.7, T).astype(jnp.float32)
    eps_z0 = jax.random.normal(ekey, (B, LATENT), jnp.float32)
    noise = jax.random.normal(nkey, (T - 1, B, LATENT), jnp.float32)

    fwd = jax.jit(latent_sde_forward)
    log_pxs, kl_term = fwd(params, xs, ts, eps_z0, noise)
    jax.block_until_ready((log_pxs, kl_term))

    assert np.isfinite(float(log_pxs)) and np.isfinite(float(kl_term))
    print("KERNEL_OK")
</pallas_src>

<mosaic_0001>
module attributes {stable_mosaic.version = 11 : i64} {
  func.func @_latent_sde_kernel(%arg0: memref<7xf32, #tpu.memory_space<smem>>, %arg1: memref<16x150xf32, #tpu.memory_space<vmem>>, %arg2: memref<16x50xf32, #tpu.memory_space<vmem>>, %arg3: memref<16x1xf32, #tpu.memory_space<vmem>>, %arg4: memref<2x6xf32, #tpu.memory_space<vmem>>, %arg5: memref<7x2x6xf32, #tpu.memory_space<vmem>>, %arg6: memref<150x30xf32, #tpu.memory_space<vmem>>, %arg7: memref<1x30xf32, #tpu.memory_space<vmem>>, %arg8: memref<30x30xf32, #tpu.memory_space<vmem>>, %arg9: memref<1x30xf32, #tpu.memory_space<vmem>>, %arg10: memref<30x15xf32, #tpu.memory_space<vmem>>, %arg11: memref<1x15xf32, #tpu.memory_space<vmem>>, %arg12: memref<6x30xf32, #tpu.memory_space<vmem>>, %arg13: memref<1x30xf32, #tpu.memory_space<vmem>>, %arg14: memref<30x30xf32, #tpu.memory_space<vmem>>, %arg15: memref<1x30xf32, #tpu.memory_space<vmem>>, %arg16: memref<30x100xf32, #tpu.memory_space<vmem>>, %arg17: memref<1x100xf32, #tpu.memory_space<vmem>>, %arg18: memref<6x308xf32, #tpu.memory_space<vmem>>, %arg19: memref<1x308xf32, #tpu.memory_space<vmem>>, %arg20: memref<3x308xf32, #tpu.memory_space<vmem>>, %arg21: memref<1x308xf32, #tpu.memory_space<vmem>>, %arg22: memref<308x18xf32, #tpu.memory_space<vmem>>, %arg23: memref<1x18xf32, #tpu.memory_space<vmem>>, %arg24: memref<1x6xf32, #tpu.memory_space<vmem>>, %arg25: memref<1x6xf32, #tpu.memory_space<vmem>>, %arg26: memref<1x1xf32, #tpu.memory_space<vmem>>, %arg27: memref<1x1xf32, #tpu.memory_space<vmem>>, %arg28: memref<16x6xf32, #tpu.memory_space<vmem>>, %arg29: memref<16x308xf32, #tpu.memory_space<vmem>>) attributes {dimension_semantics = [], scalar_prefetch = 0 : i64, scratch_operands = 2 : i64, tpu.core_type = #tpu.core_type<tc>} {
    %c0 = arith.constant 0 : index
    %c0_0 = arith.constant 0 : index
    %0 = vector.load %arg1[%c0, %c0_0] : memref<16x150xf32, #tpu.memory_space<vmem>>, vector<16x150xf32>
    %c0_1 = arith.constant 0 : index
    %c0_2 = arith.constant 0 : index
    %1 = vector.load %arg6[%c0_1, %c0_2] : memref<150x30xf32, #tpu.memory_space<vmem>>, vector<150x30xf32>
    %c0_3 = arith.constant 0 : index
    %c0_4 = arith.constant 0 : index
    %2 = vector.load %arg7[%c0_3, %c0_4] : memref<1x30xf32, #tpu.memory_space<vmem>>, vector<1x30xf32>
    %c0_5 = arith.constant 0 : index
    %c0_6 = arith.constant 0 : index
    %3 = vector.load %arg8[%c0_5, %c0_6] : memref<30x30xf32, #tpu.memory_space<vmem>>, vector<30x30xf32>
    %c0_7 = arith.constant 0 : index
    %c0_8 = arith.constant 0 : index
    %4 = vector.load %arg9[%c0_7, %c0_8] : memref<1x30xf32, #tpu.memory_space<vmem>>, vector<1x30xf32>
    %c0_9 = arith.constant 0 : index
    %c0_10 = arith.constant 0 : index
    %5 = vector.load %arg10[%c0_9, %c0_10] : memref<30x15xf32, #tpu.memory_space<vmem>>, vector<30x15xf32>
    %c0_11 = arith.constant 0 : index
    %c0_12 = arith.constant 0 : index
    %6 = vector.load %arg11[%c0_11, %c0_12] : memref<1x15xf32, #tpu.memory_space<vmem>>, vector<1x15xf32>
    %cst = arith.constant dense<0.000000e+00> : vector<16x30xf32>
    %7 = tpu.matmul %0, %1, %cst {dimension_numbers = #tpu.dot_dimension_numbers<[1], [0], [0], [1], [0, 0, 1, 1], [], []>} : vector<16x150xf32>, vector<150x30xf32>, vector<16x30xf32> -> vector<16x30xf32>
    %8 = vector.broadcast %2 : vector<1x30xf32> to vector<16x30xf32>
    %9 = arith.addf %7, %8 : vector<16x30xf32>
    %cst_13 = arith.constant 0.000000e+00 : f32
    %10 = vector.broadcast %cst_13 : f32 to vector<16x30xf32>
    %11 = arith.maximumf %9, %10 : vector<16x30xf32>
    %12 = math.absf %9 : vector<16x30xf32>
    %cst_14 = arith.constant 0.000000e+00 : f32
    %13 = vector.broadcast %cst_14 : f32 to vector<16x30xf32>
    %14 = arith.subf %13, %12 : vector<16x30xf32>
    %15 = math.exp %14 : vector<16x30xf32>
    %cst_15 = arith.constant 1.000000e+00 : f32
    %16 = vector.broadcast %cst_15 : f32 to vector<16x30xf32>
    %17 = arith.addf %16, %15 : vector<16x30xf32>
    %18 = math.log %17 : vector<16x30xf32>
    %19 = arith.addf %11, %18 : vector<16x30xf32>
    %cst_16 = arith.constant dense<0.000000e+00> : vector<16x30xf32>
    %20 = tpu.matmul %19, %3, %cst_16 {dimension_numbers = #tpu.dot_dimension_numbers<[1], [0], [0], [1], [0, 0, 1, 1], [], []>} : vector<16x30xf32>, vector<30x30xf32>, vector<16x30xf32> -> vector<16x30xf32>
    %21 = vector.broadcast %4 : vector<1x30xf32> to vector<16x30xf32>
    %22 = arith.addf %20, %21 : vector<16x30xf32>
    %cst_17 = arith.constant 0.000000e+00 : f32
    %23 = vector.broadcast %cst_17 : f32 to vector<16x30xf32>
    %24 = arith.maximumf %22, %23 : vector<16x30xf32>
    %25 = math.absf %22 : vector<16x30xf32>
    %cst_18 = arith.constant 0.000000e+00 : f32
    %26 = vector.broadcast %cst_18 : f32 to vector<16x30xf32>
    %27 = arith.subf %26, %25 : vector<16x30xf32>
    %28 = math.exp %27 : vector<16x30xf32>
    %cst_19 = arith.constant 1.000000e+00 : f32
    %29 = vector.broadcast %cst_19 : f32 to vector<16x30xf32>
    %30 = arith.addf %29, %28 : vector<16x30xf32>
    %31 = math.log %30 : vector<16x30xf32>
    %32 = arith.addf %24, %31 : vector<16x30xf32>
    %cst_20 = arith.constant dense<0.000000e+00> : vector<16x15xf32>
    %33 = tpu.matmul %32, %5, %cst_20 {dimension_numbers = #tpu.dot_dimension_numbers<[1], [0], [0], [1], [0, 0, 1, 1], [], []>} : vector<16x30xf32>, vector<30x15xf32>, vector<16x15xf32> -> vector<16x15xf32>
    %34 = vector.broadcast %6 : vector<1x15xf32> to vector<16x15xf32>
    %35 = arith.addf %33, %34 : vector<16x15xf32>
    %36 = vector.extract_strided_slice %35 {offsets = [0, 0], sizes = [2, 6], strides = [1, 1]} : vector<16x15xf32> to vector<2x6xf32>
    %37 = vector.extract_strided_slice %35 {offsets = [0, 6], sizes = [2, 6], strides = [1, 1]} : vector<16x15xf32> to vector<2x6xf32>
    %cst_21 = arith.constant -6.000000e+00 : f32
    %cst_22 = arith.constant 6.000000e+00 : f32
    %38 = vector.broadcast %cst_21 : f32 to vector<2x6xf32>
    %39 = arith.maximumf %38, %37 : vector<2x6xf32>
    %40 = vector.broadcast %cst_22 : f32 to vector<2x6xf32>
    %41 = arith.minimumf %40, %39 : vector<2x6xf32>
    %42 = math.exp %41 : vector<2x6xf32>
    %c0_23 = arith.constant 0 : index
    %c0_24 = arith.constant 0 : index
    %43 = vector.load %arg4[%c0_23, %c0_24] : memref<2x6xf32, #tpu.memory_space<vmem>>, vector<2x6xf32>
    %44 = arith.mulf %42, %43 : vector<2x6xf32>
    %45 = arith.addf %36, %44 : vector<2x6xf32>
    %46 = vector.extract_strided_slice %35 {offsets = [0, 12], sizes = [16, 3], strides = [1, 1]} : vector<16x15xf32> to vector<16x3xf32>
    %c0_25 = arith.constant 0 : index
    %c0_26 = arith.constant 0 : index
    %47 = vector.load %arg20[%c0_25, %c0_26] : memref<3x308xf32, #tpu.memory_space<vmem>>, vector<3x308xf32>
    %cst_27 = arith.constant dense<0.000000e+00> : vector<16x308xf32>
    %48 = tpu.matmul %46, %47, %cst_27 {dimension_numbers = #tpu.dot_dimension_numbers<[1], [0], [0], [1], [0, 0, 1, 1], [], []>} : vector<16x3xf32>, vector<3x308xf32>, vector<16x308xf32> -> vector<16x308xf32>
    %c0_28 = arith.constant 0 : index
    %c0_29 = arith.constant 0 : index
    %49 = vector.load %arg3[%c0_28, %c0_29] : memref<16x1xf32, #tpu.memory_space<vmem>>, vector<16x1xf32>
    %c0_30 = arith.constant 0 : index
    %c0_31 = arith.constant 0 : index
    %50 = vector.load %arg19[%c0_30, %c0_31] : memref<1x308xf32, #tpu.memory_space<vmem>>, vector<1x308xf32>
    %51 = vector.broadcast %49 : vector<16x1xf32> to vector<16x308xf32>
    %52 = vector.broadcast %50 : vector<1x308xf32> to vector<16x308xf32>
    %53 = arith.mulf %51, %52 : vector<16x308xf32>
    %54 = arith.addf %48, %53 : vector<16x308xf32>
    %c0_32 = arith.constant 0 : index
    %c0_33 = arith.constant 0 : index
    %55 = vector.load %arg21[%c0_32, %c0_33] : memref<1x308xf32, #tpu.memory_space<vmem>>, vector<1x308xf32>
    %56 = vector.broadcast %55 : vector<1x308xf32> to vector<16x308xf32>
    %57 = arith.addf %54, %56 : vector<16x308xf32>
    %c0_34 = arith.constant 0 : index
    %c0_35 = arith.constant 0 : index
    %58 = vector.load %arg29[%c0_34, %c0_35] : memref<16x308xf32, #tpu.memory_space<vmem>>, vector<16x308xf32>
    tpu.vector_store %arg29[%c0_34, %c0_35], %57 {strides = array<i32>} : memref<16x308xf32, #tpu.memory_space<vmem>>, vector<16x308xf32>,
    %c0_36 = arith.constant 0 : index
    %c0_37 = arith.constant 0 : index
    %59 = vector.load %arg28[%c0_36, %c0_37] : memref<16x6xf32, #tpu.memory_space<vmem>>, vector<2x6xf32>
    tpu.vector_store %arg28[%c0_36, %c0_37], %45 {strides = array<i32>} : memref<16x6xf32, #tpu.memory_space<vmem>>, vector<2x6xf32>,
    %cst_38 = arith.constant 0.000000e+00 : f32
    %60 = vector.broadcast %cst_38 : f32 to vector<2x6xf32>
    %c0_39 = arith.constant 0 : index
    %61 = memref.load %arg0[%c0_39] : memref<7xf32, #tpu.memory_space<smem>>
    %c2 = arith.constant 2 : index
    %c0_40 = arith.constant 0 : index
    %62 = vector.load %arg29[%c2, %c0_40] : memref<16x308xf32, #tpu.memory_space<vmem>>, vector<2x308xf32>
    %c0_41 = arith.constant 0 : index
    %c0_42 = arith.constant 0 : index
    %63 = vector.load %arg18[%c0_41, %c0_42] : memref<6x308xf32, #tpu.memory_space<vmem>>, vector<6x308xf32>
    %cst_43 = arith.constant dense<0.000000e+00> : vector<2x308xf32>
    %64 = tpu.matmul %45, %63, %cst_43 {dimension_numbers = #tpu.dot_dimension_numbers<[1], [0], [0], [1], [0, 0, 1, 1], [], []>} : vector<2x6xf32>, vector<6x308xf32>, vector<2x308xf32> -> vector<2x308xf32>
    %65 = arith.addf %64, %62 : vector<2x308xf32>
    %cst_44 = arith.constant 0.000000e+00 : f32
    %66 = vector.broadcast %cst_44 : f32 to vector<2x308xf32>
    %67 = arith.maximumf %65, %66 : vector<2x308xf32>
    %68 = math.absf %65 : vector<2x308xf32>
    %cst_45 = arith.constant 0.000000e+00 : f32
    %69 = vector.broadcast %cst_45 : f32 to vector<2x308xf32>
    %70 = arith.subf %69, %68 : vector<2x308xf32>
    %71 = math.exp %70 : vector<2x308xf32>
    %cst_46 = arith.constant 1.000000e+00 : f32
    %72 = vector.broadcast %cst_46 : f32 to vector<2x308xf32>
    %73 = arith.addf %72, %71 : vector<2x308xf32>
    %74 = math.log %73 : vector<2x308xf32>
    %75 = arith.addf %67, %74 : vector<2x308xf32>
    %c0_47 = arith.constant 0 : index
    %c0_48 = arith.constant 0 : index
    %76 = vector.load %arg22[%c0_47, %c0_48] : memref<308x18xf32, #tpu.memory_space<vmem>>, vector<308x18xf32>
    %cst_49 = arith.constant dense<0.000000e+00> : vector<2x18xf32>
    %77 = tpu.matmul %75, %76, %cst_49 {dimension_numbers = #tpu.dot_dimension_numbers<[1], [0], [0], [1], [0, 0, 1, 1], [], []>} : vector<2x308xf32>, vector<308x18xf32>, vector<2x18xf32> -> vector<2x18xf32>
    %c0_50 = arith.constant 0 : index
    %c0_51 = arith.constant 0 : index
    %78 = vector.load %arg23[%c0_50, %c0_51] : memref<1x18xf32, #tpu.memory_space<vmem>>, vector<1x18xf32>
    %79 = vector.broadcast %78 : vector<1x18xf32> to vector<2x18xf32>
    %80 = arith.addf %77, %79 : vector<2x18xf32>
    %81 = vector.extract_strided_slice %80 {offsets = [0, 0], sizes = [2, 6], strides = [1, 1]} : vector<2x18xf32> to vector<2x6xf32>
    %82 = vector.extract_strided_slice %80 {offsets = [0, 6], sizes = [2, 6], strides = [1, 1]} : vector<2x18xf32> to vector<2x6xf32>
    %83 = vector.extract_strided_slice %80 {offsets = [0, 12], sizes = [2, 6], strides = [1, 1]} : vector<2x18xf32> to vector<2x6xf32>
    %cst_52 = arith.constant 5.000000e-01 : f32
    %84 = vector.broadcast %cst_52 : f32 to vector<2x6xf32>
    %85 = arith.mulf %84, %83 : vector<2x6xf32>
    %86 = math.tanh %85 : vector<2x6xf32>
    %cst_53 = arith.constant 1.000000e+00 : f32
    %87 = vector.broadcast %cst_53 : f32 to vector<2x6xf32>
    %88 = arith.addf %86, %87 : vector<2x6xf32>
    %cst_54 = arith.constant 5.000000e-01 : f32
    %89 = vector.broadcast %cst_54 : f32 to vector<2x6xf32>
    %90 = arith.mulf %89, %88 : vector<2x6xf32>
    %cst_55 = arith.constant 1.000000e-07 : f32
    %91 = vector.broadcast %cst_55 : f32 to vector<2x6xf32>
    %92 = arith.addf %90, %91 : vector<2x6xf32>
    %93 = arith.divf %82, %92 : vector<2x6xf32>
    %94 = arith.mulf %93, %93 : vector<2x6xf32>
    %95 = vector.broadcast %61 : f32 to vector<2x6xf32>
    %96 = arith.mulf %94, %95 : vector<2x6xf32>
    %97 = arith.addf %60, %96 : vector<2x6xf32>
    %98 = vector.broadcast %61 : f32 to vector<2x6xf32>
    %99 = arith.mulf %81, %98 : vector<2x6xf32>
    %100 = arith.addf %45, %99 : vector<2x6xf32>
    %c0_56 = arith.constant 0 : index
    %c0_57 = arith.constant 0 : index
    %c0_58 = arith.constant 0 : index
    %101 = vector.load %arg5[%c0_56, %c0_57, %c0_58] : memref<7x2x6xf32, #tpu.memory_space<vmem>>, vector<1x2x6xf32>
    %102 = vector.shape_cast %101 : vector<1x2x6xf32> to vector<2x6xf32>
    %103 = arith.mulf %90, %102 : vector<2x6xf32>
    %104 = arith.addf %100, %103 : vector<2x6xf32>
    %c2_59 = arith.constant 2 : index
    %c0_60 = arith.constant 0 : index
    %105 = vector.load %arg28[%c2_59, %c0_60] : memref<16x6xf32, #tpu.memory_space<vmem>>, vector<2x6xf32>
    tpu.vector_store %arg28[%c2_59, %c0_60], %104 {strides = array<i32>} : memref<16x6xf32, #tpu.memory_space<vmem>>, vector<2x6xf32>,
    %c1 = arith.constant 1 : index
    %106 = memref.load %arg0[%c1] : memref<7xf32, #tpu.memory_space<smem>>
    %c4 = arith.constant 4 : index
    %c0_61 = arith.constant 0 : index
    %107 = vector.load %arg29[%c4, %c0_61] : memref<16x308xf32, #tpu.memory_space<vmem>>, vector<2x308xf32>
    %c0_62 = arith.constant 0 : index
    %c0_63 = arith.constant 0 : index
    %108 = vector.load %arg18[%c0_62, %c0_63] : memref<6x308xf32, #tpu.memory_space<vmem>>, vector<6x308xf32>
    %cst_64 = arith.constant dense<0.000000e+00> : vector<2x308xf32>
    %109 = tpu.matmul %104, %108, %cst_64 {dimension_numbers = #tpu.dot_dimension_numbers<[1], [0], [0], [1], [0, 0, 1, 1], [], []>} : vector<2x6xf32>, vector<6x308xf32>, vector<2x308xf32> -> vector<2x308xf32>
    %110 = arith.addf %109, %107 : vector<2x308xf32>
    %cst_65 = arith.constant 0.000000e+00 : f32
    %111 = vector.broadcast %cst_65 : f32 to vector<2x308xf32>
    %112 = arith.maximumf %110, %111 : vector<2x308xf32>
    %113 = math.absf %110 : vector<2x308xf32>
    %cst_66 = arith.constant 0.000000e+00 : f32
    %114 = vector.broadcast %cst_66 : f32 to vector<2x308xf32>
    %115 = arith.subf %114, %113 : vector<2x308xf32>
    %116 = math.exp %115 : vector<2x308xf32>
    %cst_67 = arith.constant 1.000000e+00 : f32
    %117 = vector.broadcast %cst_67 : f32 to vector<2x308xf32>
    %118 = arith.addf %117, %116 : vector<2x308xf32>
    %119 = math.log %118 : vector<2x308xf32>
    %120 = arith.addf %112, %119 : vector<2x308xf32>
    %c0_68 = arith.constant 0 : index
    %c0_69 = arith.constant 0 : index
    %121 = vector.load %arg22[%c0_68, %c0_69] : memref<308x18xf32, #tpu.memory_space<vmem>>, vector<308x18xf32>
    %cst_70 = arith.constant dense<0.000000e+00> : vector<2x18xf32>
    %122 = tpu.matmul %120, %121, %cst_70 {dimension_numbers = #tpu.dot_dimension_numbers<[1], [0], [0], [1], [0, 0, 1, 1], [], []>} : vector<2x308xf32>, vector<308x18xf32>, vector<2x18xf32> -> vector<2x18xf32>
    %c0_71 = arith.constant 0 : index
    %c0_72 = arith.constant 0 : index
    %123 = vector.load %arg23[%c0_71, %c0_72] : memref<1x18xf32, #tpu.memory_space<vmem>>, vector<1x18xf32>
    %124 = vector.broadcast %123 : vector<1x18xf32> to vector<2x18xf32>
    %125 = arith.addf %122, %124 : vector<2x18xf32>
    %126 = vector.extract_strided_slice %125 {offsets = [0, 0], sizes = [2, 6], strides = [1, 1]} : vector<2x18xf32> to vector<2x6xf32>
    %127 = vector.extract_strided_slice %125 {offsets = [0, 6], sizes = [2, 6], strides = [1, 1]} : vector<2x18xf32> to vector<2x6xf32>
    %128 = vector.extract_strided_slice %125 {offsets = [0, 12], sizes = [2, 6], strides = [1, 1]} : vector<2x18xf32> to vector<2x6xf32>
    %cst_73 = arith.constant 5.000000e-01 : f32
    %129 = vector.broadcast %cst_73 : f32 to vector<2x6xf32>
    %130 = arith.mulf %129, %128 : vector<2x6xf32>
    %131 = math.tanh %130 : vector<2x6xf32>
    %cst_74 = arith.constant 1.000000e+00 : f32
    %132 = vector.broadcast %cst_74 : f32 to vector<2x6xf32>
    %133 = arith.addf %131, %132 : vector<2x6xf32>
    %cst_75 = arith.constant 5.000000e-01 : f32
    %134 = vector.broadcast %cst_75 : f32 to vector<2x6xf32>
    %135 = arith.mulf %134, %133 : vector<2x6xf32>
    %cst_76 = arith.constant 1.000000e-07 : f32
    %136 = vector.broadcast %cst_76 : f32 to vector<2x6xf32>
    %137 = arith.addf %135, %136 : vector<2x6xf32>
    %138 = arith.divf %127, %137 : vector<2x6xf32>
    %139 = arith.mulf %138, %138 : vector<2x6xf32>
    %140 = vector.broadcast %106 : f32 to vector<2x6xf32>
    %141 = arith.mulf %139, %140 : vector<2x6xf32>
    %142 = arith.addf %97, %141 : vector<2x6xf32>
    %143 = vector.broadcast %106 : f32 to vector<2x6xf32>
    %144 = arith.mulf %126, %143 : vector<2x6xf32>
    %145 = arith.addf %104, %144 : vector<2x6xf32>
    %c1_77 = arith.constant 1 : index
    %c0_78 = arith.constant 0 : index
    %c0_79 = arith.constant 0 : index
    %146 = vector.load %arg5[%c1_77, %c0_78, %c0_79] : memref<7x2x6xf32, #tpu.memory_space<vmem>>, vector<1x2x6xf32>
    %147 = vector.shape_cast %146 : vector<1x2x6xf32> to vector<2x6xf32>
    %148 = arith.mulf %135, %147 : vector<2x6xf32>
    %149 = arith.addf %145, %148 : vector<2x6xf32>
    %c4_80 = arith.constant 4 : index
    %c0_81 = arith.constant 0 : index
    %150 = vector.load %arg28[%c4_80, %c0_81] : memref<16x6xf32, #tpu.memory_space<vmem>>, vector<2x6xf32>
    tpu.vector_store %arg28[%c4_80, %c0_81], %149 {strides = array<i32>} : memref<16x6xf32, #tpu.memory_space<vmem>>, vector<2x6xf32>,
    %c2_82 = arith.constant 2 : index
    %151 = memref.load %arg0[%c2_82] : memref<7xf32, #tpu.memory_space<smem>>
    %c6 = arith.constant 6 : index
    %c0_83 = arith.constant 0 : index
    %152 = vector.load %arg29[%c6, %c0_83] : memref<16x308xf32, #tpu.memory_space<vmem>>, vector<2x308xf32>
    %c0_84 = arith.constant 0 : index
    %c0_85 = arith.constant 0 : index
    %153 = vector.load %arg18[%c0_84, %c0_85] : memref<6x308xf32, #tpu.memory_space<vmem>>, vector<6x308xf32>
    %cst_86 = arith.constant dense<0.000000e+00> : vector<2x308xf32>
    %154 = tpu.matmul %149, %153, %cst_86 {dimension_numbers = #tpu.dot_dimension_numbers<[1], [0], [0], [1], [0, 0, 1, 1], [], []>} : vector<2x6xf32>, vector<6x308xf32>, vector<2x308xf32> -> vector<2x308xf32>
    %155 = arith.addf %154, %152 : vector<2x308xf32>
    %cst_87 = arith.constant 0.000000e+00 : f32
    %156 = vector.broadcast %cst_87 : f32 to vector<2x308xf32>
    %157 = arith.maximumf %155, %156 : vector<2x308xf32>
    %158 = math.absf %155 : vector<2x308xf32>
    %cst_88 = arith.constant 0.000000e+00 : f32
    %159 = vector.broadcast %cst_88 : f32 to vector<2x308xf32>
    %160 = arith.subf %159, %158 : vector<2x308xf32>
    %161 = math.exp %160 : vector<2x308xf32>
    %cst_89 = arith.constant 1.000000e+00 : f32
    %162 = vector.broadcast %cst_89 : f32 to vector<2x308xf32>
    %163 = arith.addf %162, %161 : vector<2x308xf32>
    %164 = math.log %163 : vector<2x308xf32>
    %165 = arith.addf %157, %164 : vector<2x308xf32>
    %c0_90 = arith.constant 0 : index
    %c0_91 = arith.constant 0 : index
    %166 = vector.load %arg22[%c0_90, %c0_91] : memref<308x18xf32, #tpu.memory_space<vmem>>, vector<308x18xf32>
    %cst_92 = arith.constant dense<0.000000e+00> : vector<2x18xf32>
    %167 = tpu.matmul %165, %166, %cst_92 {dimension_numbers = #tpu.dot_dimension_numbers<[1], [0], [0], [1], [0, 0, 1, 1], [], []>} : vector<2x308xf32>, vector<308x18xf32>, vector<2x18xf32> -> vector<2x18xf32>
    %c0_93 = arith.constant 0 : index
    %c0_94 = arith.constant 0 : index
    %168 = vector.load %arg23[%c0_93, %c0_94] : memref<1x18xf32, #tpu.memory_space<vmem>>, vector<1x18xf32>
    %169 = vector.broadcast %168 : vector<1x18xf32> to vector<2x18xf32>
    %170 = arith.addf %167, %169 : vector<2x18xf32>
    %171 = vector.extract_strided_slice %170 {offsets = [0, 0], sizes = [2, 6], strides = [1, 1]} : vector<2x18xf32> to vector<2x6xf32>
    %172 = vector.extract_strided_slice %170 {offsets = [0, 6], sizes = [2, 6], strides = [1, 1]} : vector<2x18xf32> to vector<2x6xf32>
    %173 = vector.extract_strided_slice %170 {offsets = [0, 12], sizes = [2, 6], strides = [1, 1]} : vector<2x18xf32> to vector<2x6xf32>
    %cst_95 = arith.constant 5.000000e-01 : f32
    %174 = vector.broadcast %cst_95 : f32 to vector<2x6xf32>
    %175 = arith.mulf %174, %173 : vector<2x6xf32>
    %176 = math.tanh %175 : vector<2x6xf32>
    %cst_96 = arith.constant 1.000000e+00 : f32
    %177 = vector.broadcast %cst_96 : f32 to vector<2x6xf32>
    %178 = arith.addf %176, %177 : vector<2x6xf32>
    %cst_97 = arith.constant 5.000000e-01 : f32
    %179 = vector.broadcast %cst_97 : f32 to vector<2x6xf32>
    %180 = arith.mulf %179, %178 : vector<2x6xf32>
    %cst_98 = arith.constant 1.000000e-07 : f32
    %181 = vector.broadcast %cst_98 : f32 to vector<2x6xf32>
    %182 = arith.addf %180, %181 : vector<2x6xf32>
    %183 = arith.divf %172, %182 : vector<2x6xf32>
    %184 = arith.mulf %183, %183 : vector<2x6xf32>
    %185 = vector.broadcast %151 : f32 to vector<2x6xf32>
    %186 = arith.mulf %184, %185 : vector<2x6xf32>
    %187 = arith.addf %142, %186 : vector<2x6xf32>
    %188 = vector.broadcast %151 : f32 to vector<2x6xf32>
    %189 = arith.mulf %171, %188 : vector<2x6xf32>
    %190 = arith.addf %149, %189 : vector<2x6xf32>
    %c2_99 = arith.constant 2 : index
    %c0_100 = arith.constant 0 : index
    %c0_101 = arith.constant 0 : index
    %191 = vector.load %arg5[%c2_99, %c0_100, %c0_101] : memref<7x2x6xf32, #tpu.memory_space<vmem>>, vector<1x2x6xf32>
    %192 = vector.shape_cast %191 : vector<1x2x6xf32> to vector<2x6xf32>
    %193 = arith.mulf %180, %192 : vector<2x6xf32>
    %194 = arith.addf %190, %193 : vector<2x6xf32>
    %c6_102 = arith.constant 6 : index
    %c0_103 = arith.constant 0 : index
    %195 = vector.load %arg28[%c6_102, %c0_103] : memref<16x6xf32, #tpu.memory_space<vmem>>, vector<2x6xf32>
    tpu.vector_store %arg28[%c6_102, %c0_103], %194 {strides = array<i32>} : memref<16x6xf32, #tpu.memory_space<vmem>>, vector<2x6xf32>,
    %c3 = arith.constant 3 : index
    %196 = memref.load %arg0[%c3] : memref<7xf32, #tpu.memory_space<smem>>
    %c8 = arith.constant 8 : index
    %c0_104 = arith.constant 0 : index
    %197 = vector.load %arg29[%c8, %c0_104] : memref<16x308xf32, #tpu.memory_space<vmem>>, vector<2x308xf32>
    %c0_105 = arith.constant 0 : index
    %c0_106 = arith.constant 0 : index
    %198 = vector.load %arg18[%c0_105, %c0_106] : memref<6x308xf32, #tpu.memory_space<vmem>>, vector<6x308xf32>
    %cst_107 = arith.constant dense<0.000000e+00> : vector<2x308xf32>
    %199 = tpu.matmul %194, %198, %cst_107 {dimension_numbers = #tpu.dot_dimension_numbers<[1], [0], [0], [1], [0, 0, 1, 1], [], []>} : vector<2x6xf32>, vector<6x308xf32>, vector<2x308xf32> -> vector<2x308xf32>
    %200 = arith.addf %199, %197 : vector<2x308xf32>
    %cst_108 = arith.constant 0.000000e+00 : f32
    %201 = vector.broadcast %cst_108 : f32 to vector<2x308xf32>
    %202 = arith.maximumf %200, %201 : vector<2x308xf32>
    %203 = math.absf %200 : vector<2x308xf32>
    %cst_109 = arith.constant 0.000000e+00 : f32
    %204 = vector.broadcast %cst_109 : f32 to vector<2x308xf32>
    %205 = arith.subf %204, %203 : vector<2x308xf32>
    %206 = math.exp %205 : vector<2x308xf32>
    %cst_110 = arith.constant 1.000000e+00 : f32
    %207 = vector.broadcast %cst_110 : f32 to vector<2x308xf32>
    %208 = arith.addf %207, %206 : vector<2x308xf32>
    %209 = math.log %208 : vector<2x308xf32>
    %210 = arith.addf %202, %209 : vector<2x308xf32>
    %c0_111 = arith.constant 0 : index
    %c0_112 = arith.constant 0 : index
    %211 = vector.load %arg22[%c0_111, %c0_112] : memref<308x18xf32, #tpu.memory_space<vmem>>, vector<308x18xf32>
    %cst_113 = arith.constant dense<0.000000e+00> : vector<2x18xf32>
    %212 = tpu.matmul %210, %211, %cst_113 {dimension_numbers = #tpu.dot_dimension_numbers<[1], [0], [0], [1], [0, 0, 1, 1], [], []>} : vector<2x308xf32>, vector<308x18xf32>, vector<2x18xf32> -> vector<2x18xf32>
    %c0_114 = arith.constant 0 : index
    %c0_115 = arith.constant 0 : index
    %213 = vector.load %arg23[%c0_114, %c0_115] : memref<1x18xf32, #tpu.memory_space<vmem>>, vector<1x18xf32>
    %214 = vector.broadcast %213 : vector<1x18xf32> to vector<2x18xf32>
    %215 = arith.addf %212, %214 : vector<2x18xf32>
    %216 = vector.extract_strided_slice %215 {offsets = [0, 0], sizes = [2, 6], strides = [1, 1]} : vector<2x18xf32> to vector<2x6xf32>
    %217 = vector.extract_strided_slice %215 {offsets = [0, 6], sizes = [2, 6], strides = [1, 1]} : vector<2x18xf32> to vector<2x6xf32>
    %218 = vector.extract_strided_slice %215 {offsets = [0, 12], sizes = [2, 6], strides = [1, 1]} : vector<2x18xf32> to vector<2x6xf32>
    %cst_116 = arith.constant 5.000000e-01 : f32
    %219 = vector.broadcast %cst_116 : f32 to vector<2x6xf32>
    %220 = arith.mulf %219, %218 : vector<2x6xf32>
    %221 = math.tanh %220 : vector<2x6xf32>
    %cst_117 = arith.constant 1.000000e+00 : f32
    %222 = vector.broadcast %cst_117 : f32 to vector<2x6xf32>
    %223 = arith.addf %221, %222 : vector<2x6xf32>
    %cst_118 = arith.constant 5.000000e-01 : f32
    %224 = vector.broadcast %cst_118 : f32 to vector<2x6xf32>
    %225 = arith.mulf %224, %223 : vector<2x6xf32>
    %cst_119 = arith.constant 1.000000e-07 : f32
    %226 = vector.broadcast %cst_119 : f32 to vector<2x6xf32>
    %227 = arith.addf %225, %226 : vector<2x6xf32>
    %228 = arith.divf %217, %227 : vector<2x6xf32>
    %229 = arith.mulf %228, %228 : vector<2x6xf32>
    %230 = vector.broadcast %196 : f32 to vector<2x6xf32>
    %231 = arith.mulf %229, %230 : vector<2x6xf32>
    %232 = arith.addf %187, %231 : vector<2x6xf32>
    %233 = vector.broadcast %196 : f32 to vector<2x6xf32>
    %234 = arith.mulf %216, %233 : vector<2x6xf32>
    %235 = arith.addf %194, %234 : vector<2x6xf32>
    %c3_120 = arith.constant 3 : index
    %c0_121 = arith.constant 0 : index
    %c0_122 = arith.constant 0 : index
    %236 = vector.load %arg5[%c3_120, %c0_121, %c0_122] : memref<7x2x6xf32, #tpu.memory_space<vmem>>, vector<1x2x6xf32>
    %237 = vector.shape_cast %236 : vector<1x2x6xf32> to vector<2x6xf32>
    %238 = arith.mulf %225, %237 : vector<2x6xf32>
    %239 = arith.addf %235, %238 : vector<2x6xf32>
    %c8_123 = arith.constant 8 : index
    %c0_124 = arith.constant 0 : index
    %240 = vector.load %arg28[%c8_123, %c0_124] : memref<16x6xf32, #tpu.memory_space<vmem>>, vector<2x6xf32>
    tpu.vector_store %arg28[%c8_123, %c0_124], %239 {strides = array<i32>} : memref<16x6xf32, #tpu.memory_space<vmem>>, vector<2x6xf32>,
    %c4_125 = arith.constant 4 : index
    %241 = memref.load %arg0[%c4_125] : memref<7xf32, #tpu.memory_space<smem>>
    %c10 = arith.constant 10 : index
    %c0_126 = arith.constant 0 : index
    %242 = vector.load %arg29[%c10, %c0_126] : memref<16x308xf32, #tpu.memory_space<vmem>>, vector<2x308xf32>
    %c0_127 = arith.constant 0 : index
    %c0_128 = arith.constant 0 : index
    %243 = vector.load %arg18[%c0_127, %c0_128] : memref<6x308xf32, #tpu.memory_space<vmem>>, vector<6x308xf32>
    %cst_129 = arith.constant dense<0.000000e+00> : vector<2x308xf32>
    %244 = tpu.matmul %239, %243, %cst_129 {dimension_numbers = #tpu.dot_dimension_numbers<[1], [0], [0], [1], [0, 0, 1, 1], [], []>} : vector<2x6xf32>, vector<6x308xf32>, vector<2x308xf32> -> vector<2x308xf32>
    %245 = arith.addf %244, %242 : vector<2x308xf32>
    %cst_130 = arith.constant 0.000000e+00 : f32
    %246 = vector.broadcast %cst_130 : f32 to vector<2x308xf32>
    %247 = arith.maximumf %245, %246 : vector<2x308xf32>
    %248 = math.absf %245 : vector<2x308xf32>
    %cst_131 = arith.constant 0.000000e+00 : f32
    %249 = vector.broadcast %cst_131 : f32 to vector<2x308xf32>
    %250 = arith.subf %249, %248 : vector<2x308xf32>
    %251 = math.exp %250 : vector<2x308xf32>
    %cst_132 = arith.constant 1.000000e+00 : f32
    %252 = vector.broadcast %cst_132 : f32 to vector<2x308xf32>
    %253 = arith.addf %252, %251 : vector<2x308xf32>
    %254 = math.log %253 : vector<2x308xf32>
    %255 = arith.addf %247, %254 : vector<2x308xf32>
    %c0_133 = arith.constant 0 : index
    %c0_134 = arith.constant 0 : index
    %256 = vector.load %arg22[%c0_133, %c0_134] : memref<308x18xf32, #tpu.memory_space<vmem>>, vector<308x18xf32>
    %cst_135 = arith.constant dense<0.000000e+00> : vector<2x18xf32>
    %257 = tpu.matmul %255, %256, %cst_135 {dimension_numbers = #tpu.dot_dimension_numbers<[1], [0], [0], [1], [0, 0, 1, 1], [], []>} : vector<2x308xf32>, vector<308x18xf32>, vector<2x18xf32> -> vector<2x18xf32>
    %c0_136 = arith.constant 0 : index
    %c0_137 = arith.constant 0 : index
    %258 = vector.load %arg23[%c0_136, %c0_137] : memref<1x18xf32, #tpu.memory_space<vmem>>, vector<1x18xf32>
    %259 = vector.broadcast %258 : vector<1x18xf32> to vector<2x18xf32>
    %260 = arith.addf %257, %259 : vector<2x18xf32>
    %261 = vector.extract_strided_slice %260 {offsets = [0, 0], sizes = [2, 6], strides = [1, 1]} : vector<2x18xf32> to vector<2x6xf32>
    %262 = vector.extract_strided_slice %260 {offsets = [0, 6], sizes = [2, 6], strides = [1, 1]} : vector<2x18xf32> to vector<2x6xf32>
    %263 = vector.extract_strided_slice %260 {offsets = [0, 12], sizes = [2, 6], strides = [1, 1]} : vector<2x18xf32> to vector<2x6xf32>
    %cst_138 = arith.constant 5.000000e-01 : f32
    %264 = vector.broadcast %cst_138 : f32 to vector<2x6xf32>
    %265 = arith.mulf %264, %263 : vector<2x6xf32>
    %266 = math.tanh %265 : vector<2x6xf32>
    %cst_139 = arith.constant 1.000000e+00 : f32
    %267 = vector.broadcast %cst_139 : f32 to vector<2x6xf32>
    %268 = arith.addf %266, %267 : vector<2x6xf32>
    %cst_140 = arith.constant 5.000000e-01 : f32
    %269 = vector.broadcast %cst_140 : f32 to vector<2x6xf32>
    %270 = arith.mulf %269, %268 : vector<2x6xf32>
    %cst_141 = arith.constant 1.000000e-07 : f32
    %271 = vector.broadcast %cst_141 : f32 to vector<2x6xf32>
    %272 = arith.addf %270, %271 : vector<2x6xf32>
    %273 = arith.divf %262, %272 : vector<2x6xf32>
    %274 = arith.mulf %273, %273 : vector<2x6xf32>
    %275 = vector.broadcast %241 : f32 to vector<2x6xf32>
    %276 = arith.mulf %274, %275 : vector<2x6xf32>
    %277 = arith.addf %232, %276 : vector<2x6xf32>
    %278 = vector.broadcast %241 : f32 to vector<2x6xf32>
    %279 = arith.mulf %261, %278 : vector<2x6xf32>
    %280 = arith.addf %239, %279 : vector<2x6xf32>
    %c4_142 = arith.constant 4 : index
    %c0_143 = arith.constant 0 : index
    %c0_144 = arith.constant 0 : index
    %281 = vector.load %arg5[%c4_142, %c0_143, %c0_144] : memref<7x2x6xf32, #tpu.memory_space<vmem>>, vector<1x2x6xf32>
    %282 = vector.shape_cast %281 : vector<1x2x6xf32> to vector<2x6xf32>
    %283 = arith.mulf %270, %282 : vector<2x6xf32>
    %284 = arith.addf %280, %283 : vector<2x6xf32>
    %c10_145 = arith.constant 10 : index
    %c0_146 = arith.constant 0 : index
    %285 = vector.load %arg28[%c10_145, %c0_146] : memref<16x6xf32, #tpu.memory_space<vmem>>, vector<2x6xf32>
    tpu.vector_store %arg28[%c10_145, %c0_146], %284 {strides = array<i32>} : memref<16x6xf32, #tpu.memory_space<vmem>>, vector<2x6xf32>,
    %c5 = arith.constant 5 : index
    %286 = memref.load %arg0[%c5] : memref<7xf32, #tpu.memory_space<smem>>
    %c12 = arith.constant 12 : index
    %c0_147 = arith.constant 0 : index
    %287 = vector.load %arg29[%c12, %c0_147] : memref<16x308xf32, #tpu.memory_space<vmem>>, vector<2x308xf32>
    %c0_148 = arith.constant 0 : index
    %c0_149 = arith.constant 0 : index
    %288 = vector.load %arg18[%c0_148, %c0_149] : memref<6x308xf32, #tpu.memory_space<vmem>>, vector<6x308xf32>
    %cst_150 = arith.constant dense<0.000000e+00> : vector<2x308xf32>
    %289 = tpu.matmul %284, %288, %cst_150 {dimension_numbers = #tpu.dot_dimension_numbers<[1], [0], [0], [1], [0, 0, 1, 1], [], []>} : vector<2x6xf32>, vector<6x308xf32>, vector<2x308xf32> -> vector<2x308xf32>
    %290 = arith.addf %289, %287 : vector<2x308xf32>
    %cst_151 = arith.constant 0.000000e+00 : f32
    %291 = vector.broadcast %cst_151 : f32 to vector<2x308xf32>
    %292 = arith.maximumf %290, %291 : vector<2x308xf32>
    %293 = math.absf %290 : vector<2x308xf32>
    %cst_152 = arith.constant 0.000000e+00 : f32
    %294 = vector.broadcast %cst_152 : f32 to vector<2x308xf32>
    %295 = arith.subf %294, %293 : vector<2x308xf32>
    %296 = math.exp %295 : vector<2x308xf32>
    %cst_153 = arith.constant 1.000000e+00 : f32
    %297 = vector.broadcast %cst_153 : f32 to vector<2x308xf32>
    %298 = arith.addf %297, %296 : vector<2x308xf32>
    %299 = math.log %298 : vector<2x308xf32>
    %300 = arith.addf %292, %299 : vector<2x308xf32>
    %c0_154 = arith.constant 0 : index
    %c0_155 = arith.constant 0 : index
    %301 = vector.load %arg22[%c0_154, %c0_155] : memref<308x18xf32, #tpu.memory_space<vmem>>, vector<308x18xf32>
    %cst_156 = arith.constant dense<0.000000e+00> : vector<2x18xf32>
    %302 = tpu.matmul %300, %301, %cst_156 {dimension_numbers = #tpu.dot_dimension_numbers<[1], [0], [0], [1], [0, 0, 1, 1], [], []>} : vector<2x308xf32>, vector<308x18xf32>, vector<2x18xf32> -> vector<2x18xf32>
    %c0_157 = arith.constant 0 : index
    %c0_158 = arith.constant 0 : index
    %303 = vector.load %arg23[%c0_157, %c0_158] : memref<1x18xf32, #tpu.memory_space<vmem>>, vector<1x18xf32>
    %304 = vector.broadcast %303 : vector<1x18xf32> to vector<2x18xf32>
    %305 = arith.addf %302, %304 : vector<2x18xf32>
    %306 = vector.extract_strided_slice %305 {offsets = [0, 0], sizes = [2, 6], strides = [1, 1]} : vector<2x18xf32> to vector<2x6xf32>
    %307 = vector.extract_strided_slice %305 {offsets = [0, 6], sizes = [2, 6], strides = [1, 1]} : vector<2x18xf32> to vector<2x6xf32>
    %308 = vector.extract_strided_slice %305 {offsets = [0, 12], sizes = [2, 6], strides = [1, 1]} : vector<2x18xf32> to vector<2x6xf32>
    %cst_159 = arith.constant 5.000000e-01 : f32
    %309 = vector.broadcast %cst_159 : f32 to vector<2x6xf32>
    %310 = arith.mulf %309, %308 : vector<2x6xf32>
    %311 = math.tanh %310 : vector<2x6xf32>
    %cst_160 = arith.constant 1.000000e+00 : f32
    %312 = vector.broadcast %cst_160 : f32 to vector<2x6xf32>
    %313 = arith.addf %311, %312 : vector<2x6xf32>
    %cst_161 = arith.constant 5.000000e-01 : f32
    %314 = vector.broadcast %cst_161 : f32 to vector<2x6xf32>
    %315 = arith.mulf %314, %313 : vector<2x6xf32>
    %cst_162 = arith.constant 1.000000e-07 : f32
    %316 = vector.broadcast %cst_162 : f32 to vector<2x6xf32>
    %317 = arith.addf %315, %316 : vector<2x6xf32>
    %318 = arith.divf %307, %317 : vector<2x6xf32>
    %319 = arith.mulf %318, %318 : vector<2x6xf32>
    %320 = vector.broadcast %286 : f32 to vector<2x6xf32>
    %321 = arith.mulf %319, %320 : vector<2x6xf32>
    %322 = arith.addf %277, %321 : vector<2x6xf32>
    %323 = vector.broadcast %286 : f32 to vector<2x6xf32>
    %324 = arith.mulf %306, %323 : vector<2x6xf32>
    %325 = arith.addf %284, %324 : vector<2x6xf32>
    %c5_163 = arith.constant 5 : index
    %c0_164 = arith.constant 0 : index
    %c0_165 = arith.constant 0 : index
    %326 = vector.load %arg5[%c5_163, %c0_164, %c0_165] : memref<7x2x6xf32, #tpu.memory_space<vmem>>, vector<1x2x6xf32>
    %327 = vector.shape_cast %326 : vector<1x2x6xf32> to vector<2x6xf32>
    %328 = arith.mulf %315, %327 : vector<2x6xf32>
    %329 = arith.addf %325, %328 : vector<2x6xf32>
    %c12_166 = arith.constant 12 : index
    %c0_167 = arith.constant 0 : index
    %330 = vector.load %arg28[%c12_166, %c0_167] : memref<16x6xf32, #tpu.memory_space<vmem>>, vector<2x6xf32>
    tpu.vector_store %arg28[%c12_166, %c0_167], %329 {strides = array<i32>} : memref<16x6xf32, #tpu.memory_space<vmem>>, vector<2x6xf32>,
    %c6_168 = arith.constant 6 : index
    %331 = memref.load %arg0[%c6_168] : memref<7xf32, #tpu.memory_space<smem>>
    %c14 = arith.constant 14 : index
    %c0_169 = arith.constant 0 : index
    %332 = vector.load %arg29[%c14, %c0_169] : memref<16x308xf32, #tpu.memory_space<vmem>>, vector<2x308xf32>
    %c0_170 = arith.constant 0 : index
    %c0_171 = arith.constant 0 : index
    %333 = vector.load %arg18[%c0_170, %c0_171] : memref<6x308xf32, #tpu.memory_space<vmem>>, vector<6x308xf32>
    %cst_172 = arith.constant dense<0.000000e+00> : vector<2x308xf32>
    %334 = tpu.matmul %329, %333, %cst_172 {dimension_numbers = #tpu.dot_dimension_numbers<[1], [0], [0], [1], [0, 0, 1, 1], [], []>} : vector<2x6xf32>, vector<6x308xf32>, vector<2x308xf32> -> vector<2x308xf32>
    %335 = arith.addf %334, %332 : vector<2x308xf32>
    %cst_173 = arith.constant 0.000000e+00 : f32
    %336 = vector.broadcast %cst_173 : f32 to vector<2x308xf32>
    %337 = arith.maximumf %335, %336 : vector<2x308xf32>
    %338 = math.absf %335 : vector<2x308xf32>
    %cst_174 = arith.constant 0.000000e+00 : f32
    %339 = vector.broadcast %cst_174 : f32 to vector<2x308xf32>
    %340 = arith.subf %339, %338 : vector<2x308xf32>
    %341 = math.exp %340 : vector<2x308xf32>
    %cst_175 = arith.constant 1.000000e+00 : f32
    %342 = vector.broadcast %cst_175 : f32 to vector<2x308xf32>
    %343 = arith.addf %342, %341 : vector<2x308xf32>
    %344 = math.log %343 : vector<2x308xf32>
    %345 = arith.addf %337, %344 : vector<2x308xf32>
    %c0_176 = arith.constant 0 : index
    %c0_177 = arith.constant 0 : index
    %346 = vector.load %arg22[%c0_176, %c0_177] : memref<308x18xf32, #tpu.memory_space<vmem>>, vector<308x18xf32>
    %cst_178 = arith.constant dense<0.000000e+00> : vector<2x18xf32>
    %347 = tpu.matmul %345, %346, %cst_178 {dimension_numbers = #tpu.dot_dimension_numbers<[1], [0], [0], [1], [0, 0, 1, 1], [], []>} : vector<2x308xf32>, vector<308x18xf32>, vector<2x18xf32> -> vector<2x18xf32>
    %c0_179 = arith.constant 0 : index
    %c0_180 = arith.constant 0 : index
    %348 = vector.load %arg23[%c0_179, %c0_180] : memref<1x18xf32, #tpu.memory_space<vmem>>, vector<1x18xf32>
    %349 = vector.broadcast %348 : vector<1x18xf32> to vector<2x18xf32>
    %350 = arith.addf %347, %349 : vector<2x18xf32>
    %351 = vector.extract_strided_slice %350 {offsets = [0, 0], sizes = [2, 6], strides = [1, 1]} : vector<2x18xf32> to vector<2x6xf32>
    %352 = vector.extract_strided_slice %350 {offsets = [0, 6], sizes = [2, 6], strides = [1, 1]} : vector<2x18xf32> to vector<2x6xf32>
    %353 = vector.extract_strided_slice %350 {offsets = [0, 12], sizes = [2, 6], strides = [1, 1]} : vector<2x18xf32> to vector<2x6xf32>
    %cst_181 = arith.constant 5.000000e-01 : f32
    %354 = vector.broadcast %cst_181 : f32 to vector<2x6xf32>
    %355 = arith.mulf %354, %353 : vector<2x6xf32>
    %356 = math.tanh %355 : vector<2x6xf32>
    %cst_182 = arith.constant 1.000000e+00 : f32
    %357 = vector.broadcast %cst_182 : f32 to vector<2x6xf32>
    %358 = arith.addf %356, %357 : vector<2x6xf32>
    %cst_183 = arith.constant 5.000000e-01 : f32
    %359 = vector.broadcast %cst_183 : f32 to vector<2x6xf32>
    %360 = arith.mulf %359, %358 : vector<2x6xf32>
    %cst_184 = arith.constant 1.000000e-07 : f32
    %361 = vector.broadcast %cst_184 : f32 to vector<2x6xf32>
    %362 = arith.addf %360, %361 : vector<2x6xf32>
    %363 = arith.divf %352, %362 : vector<2x6xf32>
    %364 = arith.mulf %363, %363 : vector<2x6xf32>
    %365 = vector.broadcast %331 : f32 to vector<2x6xf32>
    %366 = arith.mulf %364, %365 : vector<2x6xf32>
    %367 = arith.addf %322, %366 : vector<2x6xf32>
    %368 = vector.broadcast %331 : f32 to vector<2x6xf32>
    %369 = arith.mulf %351, %368 : vector<2x6xf32>
    %370 = arith.addf %329, %369 : vector<2x6xf32>
    %c6_185 = arith.constant 6 : index
    %c0_186 = arith.constant 0 : index
    %c0_187 = arith.constant 0 : index
    %371 = vector.load %arg5[%c6_185, %c0_186, %c0_187] : memref<7x2x6xf32, #tpu.memory_space<vmem>>, vector<1x2x6xf32>
    %372 = vector.shape_cast %371 : vector<1x2x6xf32> to vector<2x6xf32>
    %373 = arith.mulf %360, %372 : vector<2x6xf32>
    %374 = arith.addf %370, %373 : vector<2x6xf32>
    %c14_188 = arith.constant 14 : index
    %c0_189 = arith.constant 0 : index
    %375 = vector.load %arg28[%c14_188, %c0_189] : memref<16x6xf32, #tpu.memory_space<vmem>>, vector<2x6xf32>
    tpu.vector_store %arg28[%c14_188, %c0_189], %374 {strides = array<i32>} : memref<16x6xf32, #tpu.memory_space<vmem>>, vector<2x6xf32>,
    %c0_190 = arith.constant 0 : index
    %c0_191 = arith.constant 0 : index
    %376 = vector.load %arg28[%c0_190, %c0_191] : memref<16x6xf32, #tpu.memory_space<vmem>>, vector<16x6xf32>
    %c0_192 = arith.constant 0 : index
    %c0_193 = arith.constant 0 : index
    %377 = vector.load %arg12[%c0_192, %c0_193] : memref<6x30xf32, #tpu.memory_space<vmem>>, vector<6x30xf32>
    %c0_194 = arith.constant 0 : index
    %c0_195 = arith.constant 0 : index
    %378 = vector.load %arg13[%c0_194, %c0_195] : memref<1x30xf32, #tpu.memory_space<vmem>>, vector<1x30xf32>
    %c0_196 = arith.constant 0 : index
    %c0_197 = arith.constant 0 : index
    %379 = vector.load %arg14[%c0_196, %c0_197] : memref<30x30xf32, #tpu.memory_space<vmem>>, vector<30x30xf32>
    %c0_198 = arith.constant 0 : index
    %c0_199 = arith.constant 0 : index
    %380 = vector.load %arg15[%c0_198, %c0_199] : memref<1x30xf32, #tpu.memory_space<vmem>>, vector<1x30xf32>
    %c0_200 = arith.constant 0 : index
    %c0_201 = arith.constant 0 : index
    %381 = vector.load %arg16[%c0_200, %c0_201] : memref<30x100xf32, #tpu.memory_space<vmem>>, vector<30x100xf32>
    %c0_202 = arith.constant 0 : index
    %c0_203 = arith.constant 0 : index
    %382 = vector.load %arg17[%c0_202, %c0_203] : memref<1x100xf32, #tpu.memory_space<vmem>>, vector<1x100xf32>
    %cst_204 = arith.constant dense<0.000000e+00> : vector<16x30xf32>
    %383 = tpu.matmul %376, %377, %cst_204 {dimension_numbers = #tpu.dot_dimension_numbers<[1], [0], [0], [1], [0, 0, 1, 1], [], []>} : vector<16x6xf32>, vector<6x30xf32>, vector<16x30xf32> -> vector<16x30xf32>
    %384 = vector.broadcast %378 : vector<1x30xf32> to vector<16x30xf32>
    %385 = arith.addf %383, %384 : vector<16x30xf32>
    %cst_205 = arith.constant 0.000000e+00 : f32
    %386 = vector.broadcast %cst_205 : f32 to vector<16x30xf32>
    %387 = arith.maximumf %385, %386 : vector<16x30xf32>
    %388 = math.absf %385 : vector<16x30xf32>
    %cst_206 = arith.constant 0.000000e+00 : f32
    %389 = vector.broadcast %cst_206 : f32 to vector<16x30xf32>
    %390 = arith.subf %389, %388 : vector<16x30xf32>
    %391 = math.exp %390 : vector<16x30xf32>
    %cst_207 = arith.constant 1.000000e+00 : f32
    %392 = vector.broadcast %cst_207 : f32 to vector<16x30xf32>
    %393 = arith.addf %392, %391 : vector<16x30xf32>
    %394 = math.log %393 : vector<16x30xf32>
    %395 = arith.addf %387, %394 : vector<16x30xf32>
    %cst_208 = arith.constant dense<0.000000e+00> : vector<16x30xf32>
    %396 = tpu.matmul %395, %379, %cst_208 {dimension_numbers = #tpu.dot_dimension_numbers<[1], [0], [0], [1], [0, 0, 1, 1], [], []>} : vector<16x30xf32>, vector<30x30xf32>, vector<16x30xf32> -> vector<16x30xf32>
    %397 = vector.broadcast %380 : vector<1x30xf32> to vector<16x30xf32>
    %398 = arith.addf %396, %397 : vector<16x30xf32>
    %cst_209 = arith.constant 0.000000e+00 : f32
    %399 = vector.broadcast %cst_209 : f32 to vector<16x30xf32>
    %400 = arith.maximumf %398, %399 : vector<16x30xf32>
    %401 = math.absf %398 : vector<16x30xf32>
    %cst_210 = arith.constant 0.000000e+00 : f32
    %402 = vector.broadcast %cst_210 : f32 to vector<16x30xf32>
    %403 = arith.subf %402, %401 : vector<16x30xf32>
    %404 = math.exp %403 : vector<16x30xf32>
    %cst_211 = arith.constant 1.000000e+00 : f32
    %405 = vector.broadcast %cst_211 : f32 to vector<16x30xf32>
    %406 = arith.addf %405, %404 : vector<16x30xf32>
    %407 = math.log %406 : vector<16x30xf32>
    %408 = arith.addf %400, %407 : vector<16x30xf32>
    %cst_212 = arith.constant dense<0.000000e+00> : vector<16x100xf32>
    %409 = tpu.matmul %408, %381, %cst_212 {dimension_numbers = #tpu.dot_dimension_numbers<[1], [0], [0], [1], [0, 0, 1, 1], [], []>} : vector<16x30xf32>, vector<30x100xf32>, vector<16x100xf32> -> vector<16x100xf32>
    %410 = vector.broadcast %382 : vector<1x100xf32> to vector<16x100xf32>
    %411 = arith.addf %409, %410 : vector<16x100xf32>
    %412 = vector.extract_strided_slice %411 {offsets = [0, 0], sizes = [16, 50], strides = [1, 1]} : vector<16x100xf32> to vector<16x50xf32>
    %413 = vector.extract_strided_slice %411 {offsets = [0, 50], sizes = [16, 50], strides = [1, 1]} : vector<16x100xf32> to vector<16x50xf32>
    %cst_213 = arith.constant -6.000000e+00 : f32
    %cst_214 = arith.constant 6.000000e+00 : f32
    %414 = vector.broadcast %cst_213 : f32 to vector<16x50xf32>
    %415 = arith.maximumf %414, %413 : vector<16x50xf32>
    %416 = vector.broadcast %cst_214 : f32 to vector<16x50xf32>
    %417 = arith.minimumf %416, %415 : vector<16x50xf32>
    %418 = math.exp %417 : vector<16x50xf32>
    %c0_215 = arith.constant 0 : index
    %c0_216 = arith.constant 0 : index
    %419 = vector.load %arg2[%c0_215, %c0_216] : memref<16x50xf32, #tpu.memory_space<vmem>>, vector<16x50xf32>
    %420 = arith.subf %419, %412 : vector<16x50xf32>
    %421 = arith.divf %420, %418 : vector<16x50xf32>
    %422 = math.log %418 : vector<16x50xf32>
    %cst_217 = arith.constant -0.918938517 : f32
    %423 = vector.broadcast %cst_217 : f32 to vector<16x50xf32>
    %424 = arith.subf %423, %422 : vector<16x50xf32>
    %cst_218 = arith.constant 5.000000e-01 : f32
    %425 = vector.broadcast %cst_218 : f32 to vector<16x50xf32>
    %426 = arith.mulf %425, %421 : vector<16x50xf32>
    %427 = arith.mulf %426, %421 : vector<16x50xf32>
    %428 = arith.subf %424, %427 : vector<16x50xf32>
    %cst_219 = arith.constant dense<0.000000e+00> : vector<16xf32>
    %429 = vector.multi_reduction <add>, %428, %cst_219 [1] : vector<16x50xf32> to vector<16xf32>
    %430 = vector.shape_cast %429 : vector<16xf32> to vector<16x1xf32>
    %cst_220 = arith.constant dense<0.000000e+00> : vector<1xf32>
    %431 = vector.multi_reduction <add>, %430, %cst_220 [0] : vector<16x1xf32> to vector<1xf32>
    %432 = vector.shape_cast %431 : vector<1xf32> to vector<1x1xf32>
    %cst_221 = arith.constant -6.000000e+00 : f32
    %cst_222 = arith.constant 6.000000e+00 : f32
    %433 = vector.broadcast %cst_221 : f32 to vector<2x6xf32>
    %434 = arith.maximumf %433, %37 : vector<2x6xf32>
    %435 = vector.broadcast %cst_222 : f32 to vector<2x6xf32>
    %436 = arith.minimumf %435, %434 : vector<2x6xf32>
    %437 = math.exp %436 : vector<2x6xf32>
    %c0_223 = arith.constant 0 : index
    %c0_224 = arith.constant 0 : index
    %438 = vector.load %arg25[%c0_223, %c0_224] : memref<1x6xf32, #tpu.memory_space<vmem>>, vector<1x6xf32>
    %cst_225 = arith.constant -6.000000e+00 : f32
    %cst_226 = arith.constant 6.000000e+00 : f32
    %439 = vector.broadcast %cst_225 : f32 to vector<1x6xf32>
    %440 = arith.maximumf %439, %438 : vector<1x6xf32>
    %441 = vector.broadcast %cst_226 : f32 to vector<1x6xf32>
    %442 = arith.minimumf %441, %440 : vector<1x6xf32>
    %443 = math.exp %442 : vector<1x6xf32>
    %c0_227 = arith.constant 0 : index
    %c0_228 = arith.constant 0 : index
    %444 = vector.load %arg24[%c0_227, %c0_228] : memref<1x6xf32, #tpu.memory_space<vmem>>, vector<1x6xf32>
    %445 = math.log %443 : vector<1x6xf32>
    %446 = math.log %437 : vector<2x6xf32>
    %447 = vector.broadcast %445 : vector<1x6xf32> to vector<2x6xf32>
    %448 = arith.subf %447, %446 : vector<2x6xf32>
    %449 = arith.mulf %437, %437 : vector<2x6xf32>
    %450 = vector.broadcast %444 : vector<1x6xf32> to vector<2x6xf32>
    %451 = arith.subf %36, %450 : vector<2x6xf32>
    %452 = arith.mulf %451, %451 : vector<2x6xf32>
    %453 = arith.addf %449, %452 : vector<2x6xf32>
    %cst_229 = arith.constant 2.000000e+00 : f32
    %454 = vector.broadcast %cst_229 : f32 to vector<1x6xf32>
    %455 = arith.mulf %454, %443 : vector<1x6xf32>
    %456 = arith.mulf %455, %443 : vector<1x6xf32>
    %457 = vector.broadcast %456 : vector<1x6xf32> to vector<2x6xf32>
    %458 = arith.divf %453, %457 : vector<2x6xf32>
    %459 = arith.addf %448, %458 : vector<2x6xf32>
    %cst_230 = arith.constant 5.000000e-01 : f32
    %460 = vector.broadcast %cst_230 : f32 to vector<2x6xf32>
    %461 = arith.subf %459, %460 : vector<2x6xf32>
    %cst_231 = arith.constant dense<0.000000e+00> : vector<2xf32>
    %462 = vector.multi_reduction <add>, %461, %cst_231 [1] : vector<2x6xf32> to vector<2xf32>
    %463 = vector.shape_cast %462 : vector<2xf32> to vector<2x1xf32>
    %cst_232 = arith.constant dense<0.000000e+00> : vector<1xf32>
    %464 = vector.multi_reduction <add>, %463, %cst_232 [0] : vector<2x1xf32> to vector<1xf32>
    %465 = vector.shape_cast %464 : vector<1xf32> to vector<1x1xf32>
    %cst_233 = arith.constant dense<0.000000e+00> : vector<2xf32>
    %466 = vector.multi_reduction <add>, %367, %cst_233 [1] : vector<2x6xf32> to vector<2xf32>
    %467 = vector.shape_cast %466 : vector<2xf32> to vector<2x1xf32>
    %cst_234 = arith.constant dense<0.000000e+00> : vector<1xf32>
    %468 = vector.multi_reduction <add>, %467, %cst_234 [0] : vector<2x1xf32> to vector<1xf32>
    %469 = vector.shape_cast %468 : vector<1xf32> to vector<1x1xf32>
    %cst_235 = arith.constant 5.000000e-01 : f32
    %470 = vector.broadcast %cst_235 : f32 to vector<1x1xf32>
    %471 = arith.mulf %432, %470 : vector<1x1xf32>
    %c0_236 = arith.constant 0 : index
    %c0_237 = arith.constant 0 : index
    %472 = vector.load %arg26[%c0_236, %c0_237] : memref<1x1xf32, #tpu.memory_space<vmem>>, vector<1x1xf32>
    tpu.vector_store %arg26[%c0_236, %c0_237], %471 {strides = array<i32>} : memref<1x1xf32, #tpu.memory_space<vmem>>, vector<1x1xf32>,
    %cst_238 = arith.constant 5.000000e-01 : f32
    %473 = vector.broadcast %cst_238 : f32 to vector<1x1xf32>
    %474 = arith.mulf %473, %469 : vector<1x1xf32>
    %475 = arith.addf %465, %474 : vector<1x1xf32>
    %cst_239 = arith.constant 5.000000e-01 : f32
    %476 = vector.broadcast %cst_239 : f32 to vector<1x1xf32>
    %477 = arith.mulf %475, %476 : vector<1x1xf32>
    %c0_240 = arith.constant 0 : index
    %c0_241 = arith.constant 0 : index
    %478 = vector.load %arg27[%c0_240, %c0_241] : memref<1x1xf32, #tpu.memory_space<vmem>>, vector<1x1xf32>
    tpu.vector_store %arg27[%c0_240, %c0_241], %477 {strides = array<i32>} : memref<1x1xf32, #tpu.memory_space<vmem>>, vector<1x1xf32>,
    return
  }
}

</mosaic_0001>

<bundles_post_ra>
// kernel: neg.1
= control target key start
LH: loop header
LB: loop body
LE: loop exit
PB: predicated region body
PF: predicated region fallthrough
CT: control target
= control target key end

     0   :  { %s24_s0 = inlined_call_operand.vmem [shape: f32[30,6], index: 0, kind: input, shape index: {}]   ;;  %s25_s1 = inlined_call_operand.vmem [shape: f32[30,6], index: 1, kind: output, shape index: {}]  }
   0x1   :  { %v2_v0 = vld [vmem:[%s24_s0] sm:$0x3f] }
   0x2   :  { %v5_v1 = vxor.u32 2147483648, %v2_v0 }
   0x4   :  { %7 = vst [vmem:[%s25_s1] sm:$0xff] %v5_v1 }

// kernel: latent_sde_forward.1
= control target key start
LH: loop header
LB: loop body
LE: loop exit
PB: predicated region body
PF: predicated region fallthrough
CT: control target
= control target key end

     0   :  { %s6695_s0 = inlined_call_operand.vmem [shape: f32[7], index: 0, kind: input, shape index: {}]   ;;  %s6696_s1 = inlined_call_operand.vmem [shape: f32[16,150], index: 1, kind: input, shape index: {}]   ;;  %s6697_s2 = inlined_call_operand.vmem [shape: f32[16,50], index: 2, kind: input, shape index: {}]   ;;  %s6698_s3 = inlined_call_operand.vmem [shape: f32[16,1], index: 3, kind: input, shape index: {}]   ;;  %s6699_s4 = inlined_call_operand.vmem [shape: f32[2,6], index: 4, kind: input, shape index: {}]   ;;  %s6700_s5 = inlined_call_operand.vmem [shape: f32[7,2,6], index: 5, kind: input, shape index: {}]   ;;  %s6701_s6 = inlined_call_operand.vmem [shape: f32[150,30], index: 6, kind: input, shape index: {}]   ;;  %s6702_s7 = inlined_call_operand.vmem [shape: f32[1,30], index: 7, kind: input, shape index: {}]   ;;  %s6703_s8 = inlined_call_operand.vmem [shape: f32[30,30], index: 8, kind: input, shape index: {}]   ;;  %s6704_s9 = inlined_call_operand.vmem [shape: f32[1,30], index: 9, kind: input, shape index: {}]   ;;  %s6705_s10 = inlined_call_operand.vmem [shape: f32[30,15], index: 10, kind: input, shape index: {}]   ;;  %s6706_s11 = inlined_call_operand.vmem [shape: f32[1,15], index: 11, kind: input, shape index: {}]   ;;  %s6707_s12 = inlined_call_operand.vmem [shape: f32[6,30], index: 12, kind: input, shape index: {}]   ;;  %s6708_s13 = inlined_call_operand.vmem [shape: f32[1,30], index: 13, kind: input, shape index: {}]   ;;  %s6709_s14 = inlined_call_operand.vmem [shape: f32[30,30], index: 14, kind: input, shape index: {}]   ;;  %s6710_s15 = inlined_call_operand.vmem [shape: f32[1,30], index: 15, kind: input, shape index: {}]   ;;  %s6711_s16 = inlined_call_operand.vmem [shape: f32[30,100], index: 16, kind: input, shape index: {}]   ;;  %s6712_s17 = inlined_call_operand.vmem [shape: f32[1,100], index: 17, kind: input, shape index: {}]   ;;  %s6713_s18 = inlined_call_operand.vmem [shape: f32[6,308], index: 18, kind: input, shape index: {}]   ;;  %s6714_s19 = inlined_call_operand.vmem [shape: f32[1,308], index: 19, kind: input, shape index: {}]   ;;  %s6715_s20 = inlined_call_operand.vmem [shape: f32[3,308], index: 20, kind: input, shape index: {}]   ;;  %s6716_s21 = inlined_call_operand.vmem [shape: f32[1,308], index: 21, kind: input, shape index: {}]   ;;  %s6717_s22 = inlined_call_operand.vmem [shape: f32[308,18], index: 22, kind: input, shape index: {}]   ;;  %s6718_s23 = inlined_call_operand.vmem [shape: f32[1,18], index: 23, kind: input, shape index: {}]   ;;  %s6719_s24 = inlined_call_operand.vmem [shape: f32[1,6], index: 24, kind: input, shape index: {}]   ;;  %s6720_s25 = inlined_call_operand.vmem [shape: f32[1,6], index: 25, kind: input, shape index: {}]   ;;  %s6721_s26 = inlined_call_operand.hbm [shape: f32[1,1], index: 26, kind: output, shape index: {0}]   ;;  %s6722_s27 = inlined_call_operand.hbm [shape: f32[1,1], index: 27, kind: output, shape index: {1}]  }
   0x1   :  { %6732 = sst [smem:[#allocation13_spill]] %s6695_s0 }
   0x2   :  { %6733 = sst [smem:[#allocation14_spill]] %s6696_s1 }
   0x3   :  { %6734 = sst [smem:[#allocation15_spill]] %s6697_s2 }
   0x4   :  { %6735 = sst [smem:[#allocation16_spill]] %s6698_s3 }
   0x5   :  { %6736 = sst [smem:[#allocation17_spill]] %s6699_s4 }
   0x6   :  { %6737 = sst [smem:[#allocation18_spill]] %s6700_s5 }
   0x7   :  { %6738 = sst [smem:[#allocation19_spill]] %s6701_s6 }
   0x8   :  { %6739 = sst [smem:[#allocation20_spill]] %s6702_s7 }
   0x9   :  { %6740 = sst [smem:[#allocation21_spill]] %s6703_s8 }
   0xa   :  { %6741 = sst [smem:[#allocation22_spill]] %s6704_s9 }
   0xb   :  { %6742 = sst [smem:[#allocation23_spill]] %s6705_s10 }
   0xc   :  { %6743 = sst [smem:[#allocation24_spill]] %s6706_s11 }
   0xd   :  { %33 = vsyncpa [#allocation6], 0 }
   0xe   :  { %34 = vsyncpa [#allocation5], 0 }
   0xf   :  { %35 = vsyncpa [#allocation9], 0  ;;  %s6744_s8 = sld [smem:[#allocation13_spill]] }
  0x15   :  { %s42_s30 = sshll.u32 %s6744_s8, 4  ;;  %s43_s30 = int_to_ptr.vmem [resolvable:$true] %s42_s30 }
  0x16   :  { %s5312_s9 = scalar_lea.vmem %s43_s30, 16  ;;  %p5317_p1 = scmp.lt.s32.totalorder %s43_s30, %s43_s30 }
  0x17   :  { %p5313_p0 = scmp.ne.s32.totalorder %s43_s30, %s5312_s9  ;;  %p5318_p2 = scmp.lt.s32.totalorder %s5312_s9, %s5312_s9 }
  0x19   :  { %p5319_p3 = por %p5318_p2, %p5317_p1 }
  0x1b   :  { %p5320_p4 = pnand %p5319_p3, %p5313_p0 }
  0x1d   :  { %5323 = shalt.err (!%p5320_p4)
}
  0x1e   :  { %s5374_s5 = smov [#allocation4]  }
  0x1f   :  { %45 = dma.vmem_to_smem %s43_s30, 16, %s5374_s5, [#allocation6]  }
  0x20   :  { %5368 = dma.done.wait [#allocation6], 16  }
  0x21   :  { %5369 = vsyncadd [#allocation6], 4294967280 }
  0x22   :  { %99 = sfence }
  0x23   :  { %s6745_s10 = sld [smem:[#allocation19_spill]]  ;;  %v5375_v3 = vmov 0.0|0.0   ;;  %vm140_vm0 = vcmask 179200   ;;  %s6746_s28 = sld [smem:[#allocation14_spill]]  ;;  %v5376_v29 = vmov 0.0   ;;  %vm147_vm1 = vcmask 1045504  }
  0x24   :  { %4776 = vmatprep.subr.bf16.mxu0 %v5375_v3  ;;  %s6747_s7 = sld [smem:[#allocation21_spill]]  ;;  %vm5377_vm2 = vmmov 1   ;;  %s6750_s1 = sld [smem:[#allocation20_spill]]  ;;  %vm250_vm4 = vcmask 244736   ;;  %vm509_vm5 = vcmask 1042432   ;;  %vm5380_vm6 = vmmov 0  }
  0x25   :  { %vm5627_vm3 = vmpackc.low %vm147_vm1, %vm5377_vm2  ;;  %s6751_s2 = sld [smem:[#allocation23_spill]]  ;;  %s6752_s0 = sld [smem:[#allocation17_spill]]  ;;  %vm504_vm7 = vcmask 23552   ;;  %vm698_vm8 = vcmask 41984   ;;  %vm716_vm9 = vcmask 48128   ;;  %vm946_vm10 = vcmask 1043456  }
  0x26   :  { %s6753_s6 = sld [smem:[#allocation22_spill]]  ;;  %s6754_s8 = sld [smem:[#allocation24_spill]]  ;;  %vm693_vm11 = vcmask 424960   ;;  %vm3990_vm12 = vcmask 408576   ;;  %vm4060_vm13 = vcmask 1041408   ;;  %vm4083_vm14 = vcmask 0  }
  0x27   :  { %s5379_s30 = smov 116   ;;  %s6755_s5 = sld [smem:[#allocation16_spill]] }
  0x28   :  { %s5383_s11 = smov 122   ;;  %s5962_s29 = sld [smem:[#allocation4]] }
  0x29   :  { %v104_v0 = vld [vmem:[%s6745_s10] sm:$0xff]  ;;  %v105_v1 = vld [vmem:[%s6745_s10 + $0x8] sm:$0xff]  ;;  %v106_v2 = vld [vmem:[%s6745_s10 + $0x10] sm:$0xff]  ;;  %s5385_s3 = smov 50  }
  0x2a   :  { %v4777_v4 = vpack.c.bf16 %v105_v1, %v104_v0  ;;  %v107_v5 = vld [vmem:[%s6745_s10 + $0x18] sm:$0xff]  ;;  %v108_v7 = vld [vmem:[%s6745_s10 + $0x20] sm:$0xff]  ;;  %v109_v8 = vld [vmem:[%s6745_s10 + $0x28] sm:$0xff] }
  0x2b   :  { %v4780_v6 = vpack.c.bf16 %v107_v5, %v106_v2  ;;  %v101_v9 = vld [vmem:[%s6746_s28 + $0x8] sm:$0xff]  ;;  %v4783_v10 = vpack.c.bf16 %v109_v8, %v108_v7  ;;  %v110_v11 = vld [vmem:[%s6745_s10 + $0x30] sm:$0xff]  ;;  %v111_v12 = vld [vmem:[%s6745_s10 + $0x38] sm:$0xff] }
  0x2c   :  { %4778 = vmatpush1.bf16.msra.mxu0 %v4777_v4  ;;  %4120 = vmatprep.mubr.msk.f32.mxu0 %vm140_vm0, %v101_v9  ;;  %v4786_v13 = vpack.c.bf16 %v111_v12, %v110_v11  ;;  %v112_v14 = vld [vmem:[%s6745_s10 + $0x40] sm:$0xff]  ;;  %v113_v15 = vld [vmem:[%s6745_s10 + $0x48] sm:$0xff]  ;;  %v114_v17 = vld [vmem:[%s6745_s10 + $0x50] sm:$0xff] }
  0x2d   :  { %4779 = vmatprep.subr.bf16.mxu0 %v5375_v3  ;;  %v4789_v16 = vpack.c.bf16 %v113_v15, %v112_v14  ;;  %v115_v18 = vld [vmem:[%s6745_s10 + $0x58] sm:$0xff]  ;;  %v116_v20 = vld [vmem:[%s6745_s10 + $0x60] sm:$0xff]  ;;  %v117_v21 = vld [vmem:[%s6745_s10 + $0x68] sm:$0xff] }
  0x2e   :  { %v4792_v19 = vpack.c.bf16 %v115_v18, %v114_v17  ;;  %v4795_v22 = vpack.c.bf16 %v117_v21, %v116_v20  ;;  %v118_v23 = vld [vmem:[%s6745_s10 + $0x70] sm:$0xff]  ;;  %v119_v24 = vld [vmem:[%s6745_s10 + $0x78] sm:$0xff]  ;;  %v120_v26 = vld [vmem:[%s6745_s10 + $0x80] sm:$0xff] }
  0x2f   :  { %v4798_v25 = vpack.c.bf16 %v119_v24, %v118_v23  ;;  %v121_v27 = vld [vmem:[%s6745_s10 + $0x88] sm:$0xff]  ;;  %v122_v30 = vld [vmem:[%s6745_s10 + $0x90] sm:$0x3f]  ;;  %v100_v31 = vld [vmem:[%s6746_s28] sm:$0xff]  ;;  %s6758_s10 = sld [smem:[#allocation15_spill]] }
  0x30   :  { %4781 = vmatpush1.bf16.msra.mxu0 %v4780_v6  ;;  %v4801_v28 = vpack.c.bf16 %v121_v27, %v120_v26  ;;  %v103_v32 = vld [vmem:[%s6746_s28 + $0x18] sm:$0xff]  ;;  %v102_v33 = vld [vmem:[%s6746_s28 + $0x10] sm:$0xff]  ;;  %v124_v34 = vld [vmem:[%s6747_s7] sm:$0xff]  ;;  %s6730_s28 = smov 6  }
  0x31   :  { %4782 = vmatprep.subr.bf16.mxu0 %v5375_v3  ;;  %v125_v35 = vld [vmem:[%s6747_s7 + $0x8] sm:$0xff]  ;;  %v126_v37 = vld [vmem:[%s6747_s7 + $0x10] sm:$0xff]  ;;  %v127_v38 = vld [vmem:[%s6747_s7 + $0x18] sm:$0x3f] }
  0x32   :  { %v4803_v36 = vpack.c.bf16 %v125_v35, %v124_v34  ;;  %v4807_v39 = vpack.c.bf16 %v127_v38, %v126_v37  ;;  %v4118_v41 = vld [vmem:[%s6750_s1] ss:$0 sm:$0xff]  ;;  %v130_v4 = vld [vmem:[%s6751_s2 + $0x8] sm:$0xff]  ;;  %v131_v6 = vld [vmem:[%s6751_s2 + $0x10] sm:$0xff]  ;;  %s6756_s1 = sld [smem:[#allocation18_spill]] }
  0x33   :  { %v129_v2 = vld [vmem:[%s6751_s2] sm:$0xff]  ;;  %v132_v7 = vld [vmem:[%s6751_s2 + $0x18] sm:$0x3f]  ;;  %s6757_s2 = smov 6  }
  0x34   :  { %4784 = vmatpush1.bf16.msra.mxu0 %v4783_v10  ;;  %4804 = vmatprep.subr.bf16.mxu1 %v4803_v36  ;;  %v4813_v5 = vpack.c.bf16 %v130_v4, %v129_v2  ;;  %v4817_v8 = vpack.c.bf16 %v132_v7, %v131_v6  ;;  %v447_v9 = vld [vmem:[%s6752_s0] sm:$0x3]  ;;  %v915_v2 = vld [vmem:[%s6717_s22 + $0x90] sm:$0xff]  ;;  %v916_v4 = vld [vmem:[%s6717_s22 + $0x98] sm:$0xff] }
  0x35   :  { %4785 = vmatprep.subr.bf16.mxu0 %v5375_v3  ;;  %4806 = vmatpush3.bf16.msra.mxu1 %v4803_v36  ;;  %v4122_v10 = vld [vmem:[%s6753_s6] ss:$0 sm:$0xff]  ;;  %v459_v36 = vld [vmem:[%s6715_s20 + $0x8] sm:$0x7]  ;;  %s5382_s6 = smov 12   ;;  %v899_v6 = vld [vmem:[%s6717_s22 + $0x10] sm:$0xff] }
  0x36   :  { %4809 = vmatprep.subr.msk.bf16.mxu1 %vm5627_vm3, %v4807_v39  ;;  %449 = vrot.lane.b32.xlu0 %v447_v9, %s6730_s28  ;;  %v458_v34 = vld [vmem:[%s6715_s20] sm:$0x77]  ;;  %v900_v7 = vld [vmem:[%s6717_s22 + $0x18] sm:$0xff]  ;;  %s6032_s20 = sld [smem:[#allocation4 + $0x1]]  ;;  %s6478_s28 = sld [smem:[#allocation4 + $0x5]] }
  0x37   :  { %v503_v35 = vcombine.high %v458_v34, %v458_v34  ;;  %v4126_v37 = vld [vmem:[%s6754_s8] ss:$0 sm:$0xff]  ;;  %s6102_s8 = sld [smem:[#allocation4 + $0x2]] }
  0x38   :  { %4787 = vmatpush1.bf16.msra.mxu0 %v4786_v13  ;;  %v917_v9 = vld [vmem:[%s6717_s22 + $0xa0] sm:$0xff] }
  0x39   :  { %4788 = vmatprep.subr.bf16.mxu0 %v5375_v3  ;;  %4812 = vmatpush3.bf16.msk.msra.mxu1 %vm5627_vm3, %v4807_v39 }
  0x3a   :  { %4814 = vmatprep.subr.bf16.mxu1 %v4813_v5 }
  0x3c   :  { %4790 = vmatpush1.bf16.msra.mxu0 %v4789_v16 }
  0x3d   :  { %4791 = vmatprep.subr.bf16.mxu0 %v5375_v3 }
  0x40   :  { %4793 = vmatpush1.bf16.msra.mxu0 %v4792_v19 }
  0x41   :  { %4794 = vmatprep.subr.bf16.mxu0 %v5375_v3 }
  0x44   :  { %4796 = vmatpush1.bf16.msra.mxu0 %v4795_v22 }
  0x45   :  { %4797 = vmatprep.subr.bf16.mxu0 %v5375_v3 }
  0x48   :  { %4799 = vmatpush1.bf16.msra.mxu0 %v4798_v25 }
  0x49   :  { %4800 = vmatprep.subr.bf16.mxu0 %v5375_v3 }
  0x4c   :  { %4802 = vmatpush1.bf16.msra.mxu0 %v4801_v28 }
  0x4d   :  { %187 = vmatprep.subr.mxu0 %v5376_v29 }
  0x50   :  { %4119 = vmatpush1.msk.msra.mxu0 %vm147_vm1, %v122_v30 }
  0x51   :  { %216 = vmatmul.mubr.f32.vlgmr.msra.gmra.mrb[0].mxu0 %v100_v31  ;;  %4855 = vmatprep.subr.bf16.mxu0 %v5375_v3 }
  0x52   :  { %4121 = vmatprep.mubr.msk.f32.mxu0 %vm140_vm0, %v103_v32 }
  0x55   :  { %221 = vmatmul.mubr.f32.gmra.mrb[2].mxu0 %v102_v33 }
  0x56   :  { %4614 = vmatprep.mubr.msk.f32.mxu0 %vm5380_vm6, %v5376_v29 }
 0x124   :  { %v217_v42 = vpop.f32.mrb[0].mxu0 }
 0x125   :  { %v218_v43 = vadd.f32 %v4118_v41, %v217_v42  ;;  %v219_v44 = vpop.f32.mrb[1].mxu0 }
 0x127   :  { %v228_v45 = vand.u32 2147483647, %v218_v43  ;;  %v226_v59 = vmax.f32 %v218_v43, 0.0 }
 0x128   :  { %v222_v46 = vpop.f32.mrb[2].mxu0 }
 0x129   :  { %v230_v47 = vsub.f32 0.0, %v228_v45  ;;  %v223_v48 = vadd.f32 %v4118_v41, %v222_v46  ;;  %v224_v49 = vpop.f32.mrb[3].mxu0  ;;  %v460_v45 = vld [vmem:[%s6755_s5] sm:$0xff]  ;;  %v5381_v46 = vmov 0  }
 0x12a   :  { %5144 = vset.pattern.permute.xlu0 %v5381_v46  ;;  %v932_v46 = vld [vmem:[%s6717_s22 + $0x118] sm:$0xff] }
 0x12b   :  { %v232_v50 = vmul.f32 1.442695, %v230_v47  ;;  %v229_v51 = vand.u32 2147483647, %v223_v48  ;;  %v227_v63 = vmax.f32 %v223_v48, 0.0  ;;  %v450_v47 = vpop.permute.xlu0 %449 }
 0x12c   :  { %v4155_v48 = vld [vmem:[%s6756_s1 + $0x2] sm:$0x3] }
 0x12d   :  { %5146 = vpow2.f32 %v232_v50  ;;  %v231_v52 = vsub.f32 0.0, %v229_v51  ;;  %v4165_v51 = vld [vmem:[%s6756_s1 + $0x4] sm:$0x3] }
 0x12f   :  { %v234_v53 = vmul.f32 1.442695, %v231_v52  ;;  %v461_v52 = vld [vmem:[%s6755_s5 + $0x8] sm:$0xff] }
 0x131   :  { %5148 = vpow2.f32 %v234_v53 }
 0x137   :  { %v5147_v54 = vpop.eup %5146 }
 0x138   :  { %v236_v55 = vadd.f32 1.0, %v5147_v54  ;;  %v705_v54 = vld [vmem:[%s6713_s18 + $0x8] sm:$0x3f] }
 0x13a   :  { %5150 = vlog2.f32 %v236_v55 }
 0x13b   :  { %v5149_v56 = vpop.eup %5148 }
 0x13c   :  { %v237_v57 = vadd.f32 1.0, %v5149_v56  ;;  %v704_v56 = vld [vmem:[%s6713_s18] sm:$0x3f] }
 0x13e   :  { %5152 = vlog2.f32 %v237_v57 }
 0x144   :  { %v5151_v58 = vpop.eup %5150 }
 0x145   :  { %v239_v60 = vmul.f32 0.6931472, %v5151_v58 }
 0x147   :  { %v242_v61 = vadd.f32 %v239_v60, %v226_v59  ;;  %v706_v59 = vld [vmem:[%s6713_s18 + $0x10] sm:$0x3f]  ;;  %v913_v60 = vld [vmem:[%s6717_s22 + $0x80] sm:$0xff] }
 0x148   :  { %v5153_v62 = vpop.eup %5152 }
 0x149   :  { %v241_v0 = vmul.f32 0.6931472, %v5153_v62  ;;  %4576 = vmatprep.mubr.msk.f32.mxu1 %vm250_vm4, %v242_v61  ;;  %v914_v61 = vld [vmem:[%s6717_s22 + $0x88] sm:$0xff] }
 0x14a   :  { %v5737_v62 = vpack.c.bf16 %v914_v61, %v913_v60  ;;  %v1107_v60 = vld [vmem:[%s6756_s1] sm:$0x3] }
 0x14b   :  { %v243_v1 = vadd.f32 %v241_v0, %v227_v63  ;;  %v897_v63 = vld [vmem:[%s6717_s22] sm:$0xff]  ;;  %v898_v0 = vld [vmem:[%s6717_s22 + $0x8] sm:$0xff] }
 0x14d   :  { %4577 = vmatmul.mubr.msk.f32.vlgmr.msra.gmra.mrb[0].mxu1 %vm250_vm4, %v243_v1  ;;  %v5745_v1 = vpack.c.bf16 %v898_v0, %v897_v63  ;;  %v474_v63 = vlaneseq }
 0x14e   :  { %4816 = vmatpush3.bf16.msra.mxu1 %v4813_v5  ;;  %v5755_v5 = vpack.c.bf16 %v916_v4, %v915_v2 }
 0x14f   :  { %4819 = vmatprep.subr.msk.bf16.mxu1 %vm5627_vm3, %v4817_v8  ;;  %v475_v0 = vshrl.u32 %v474_v63, 7 }
 0x151   :  { %v5916_v4 = vsub.s32 0, %v475_v0 }
 0x152   :  { %4822 = vmatpush3.bf16.msk.msra.mxu1 %vm5627_vm3, %v4817_v8  ;;  %v5763_v8 = vpack.c.bf16 %v900_v7, %v899_v6  ;;  %v462_v6 = vld [vmem:[%s6714_s19] sm:$0x7]  ;;  %v480_v7 = vsub.s32 1, %v475_v0  ;;  %s6169_s19 = sld [smem:[#allocation4 + $0x3]] }
 0x153   :  { %4131 = vmatprep.subr.msk.mxu1 %vm509_vm5, %v503_v35  ;;  %v930_v35 = vld [vmem:[%s6717_s22 + $0x108] sm:$0xff] }
 0x220   :  { %v4578_v11 = vpop.f32.mrb[0].mxu1 }
 0x221   :  { %v332_v12 = vadd.f32 %v4578_v11, %v4122_v10  ;;  %v326_v13 = vpop.f32.mrb[1].mxu1 }
 0x222   :  { %v327_v14 = vadd.f32 %v4122_v10, %v326_v13  ;;  %v918_v10 = vld [vmem:[%s6717_s22 + $0xa8] sm:$0xff] }
 0x223   :  { %v338_v15 = vand.u32 2147483647, %v332_v12  ;;  %v336_v31 = vmax.f32 %v332_v12, 0.0  ;;  %v5773_v11 = vpack.c.bf16 %v918_v10, %v917_v9  ;;  %v901_v12 = vld [vmem:[%s6717_s22 + $0x20] sm:$0xff]  ;;  %v902_v13 = vld [vmem:[%s6717_s22 + $0x28] sm:$0xff]  ;;  %v477_v10 = vrot.slane %v462_v6, %v5916_v4 }
 0x224   :  { %v337_v16 = vand.u32 2147483647, %v327_v14  ;;  %v335_v28 = vmax.f32 %v327_v14, 0.0  ;;  %v5781_v14 = vpack.c.bf16 %v902_v13, %v901_v12  ;;  %v481_v12 = vrot.slane %v462_v6, %v480_v7  ;;  %v668_v13 = vld [vmem:[%s6716_s21] sm:$0x7] }
 0x225   :  { %v340_v17 = vsub.f32 0.0, %v338_v15  ;;  %v919_v15 = vld [vmem:[%s6717_s22 + $0xb0] sm:$0xff] }
 0x226   :  { %v339_v18 = vsub.f32 0.0, %v337_v16  ;;  %v920_v16 = vld [vmem:[%s6717_s22 + $0xb8] sm:$0xff] }
 0x227   :  { %v343_v19 = vmul.f32 1.442695, %v340_v17  ;;  %v5791_v17 = vpack.c.bf16 %v920_v16, %v919_v15 }
 0x228   :  { %v341_v20 = vmul.f32 1.442695, %v339_v18  ;;  %v903_v18 = vld [vmem:[%s6717_s22 + $0x30] sm:$0xff] }
 0x229   :  { %5154 = vpow2.f32 %v343_v19  ;;  %v904_v19 = vld [vmem:[%s6717_s22 + $0x38] sm:$0xff] }
 0x22a   :  { %5156 = vpow2.f32 %v341_v20  ;;  %v5799_v20 = vpack.c.bf16 %v904_v19, %v903_v18  ;;  %v673_v19 = vrot.slane %v668_v13, %v5916_v4 }
 0x233   :  { %v5155_v21 = vpop.eup %5154 }
 0x234   :  { %v5157_v22 = vpop.eup %5156  ;;  %v346_v23 = vadd.f32 1.0, %v5155_v21  ;;  %v921_v21 = vld [vmem:[%s6717_s22 + $0xc0] sm:$0xff] }
 0x235   :  { %v345_v24 = vadd.f32 1.0, %v5157_v22  ;;  %v922_v22 = vld [vmem:[%s6717_s22 + $0xc8] sm:$0xff] }
 0x236   :  { %5158 = vlog2.f32 %v346_v23  ;;  %v5809_v23 = vpack.c.bf16 %v922_v22, %v921_v21  ;;  %v484_v21 = vsub.s32 2, %v475_v0 }
 0x237   :  { %5160 = vlog2.f32 %v345_v24  ;;  %v905_v24 = vld [vmem:[%s6717_s22 + $0x40] sm:$0xff] }
 0x240   :  { %v5159_v25 = vpop.eup %5158 }
 0x241   :  { %v5161_v26 = vpop.eup %5160  ;;  %v350_v27 = vmul.f32 0.6931472, %v5159_v25  ;;  %v906_v25 = vld [vmem:[%s6717_s22 + $0x48] sm:$0xff] }
 0x242   :  { %v348_v30 = vmul.f32 0.6931472, %v5161_v26  ;;  %v5817_v26 = vpack.c.bf16 %v906_v25, %v905_v24  ;;  %v677_v24 = vrot.slane %v668_v13, %v480_v7 }
 0x243   :  { %v352_v33 = vadd.f32 %v350_v27, %v336_v31  ;;  %v923_v27 = vld [vmem:[%s6717_s22 + $0xd0] sm:$0xff] }
 0x244   :  { %v351_v32 = vadd.f32 %v348_v30, %v335_v28  ;;  %v924_v28 = vld [vmem:[%s6717_s22 + $0xd8] sm:$0xff]  ;;  %v907_v31 = vld [vmem:[%s6717_s22 + $0x50] sm:$0xff] }
 0x245   :  { %v5827_v30 = vpack.c.bf16 %v924_v28, %v923_v27 }
 0x246   :  { %4587 = vmatprep.mubr.msk.f32.mxu1 %vm250_vm4, %v351_v32  ;;  %v908_v32 = vld [vmem:[%s6717_s22 + $0x58] sm:$0xff] }
 0x247   :  { %4588 = vmatmul.mubr.msk.f32.vlgmr.msra.gmra.mrb[2].mxu1 %vm250_vm4, %v352_v33  ;;  %v929_v33 = vld [vmem:[%s6717_s22 + $0x100] sm:$0xff] }
 0x248   :  { %580 = vmatprep.mubr.f32.mxu1 %v5376_v29  ;;  %4132 = vmatpush1.msk.msra.mxu1 %vm509_vm5, %v458_v34  ;;  %v5838_v34 = vpack.c.bf16 %v908_v32, %v907_v31 }
 0x249   :  { %4590 = vmatprep.subr.msk.mxu1 %vm509_vm5, %v459_v36 }
 0x31a   :  { %v4589_v38 = vpop.f32.mrb[2].mxu1 }
 0x31b   :  { %v440_v39 = vadd.f32 %v4589_v38, %v4126_v37  ;;  %v434_v41 = vpop.f32.mrb[3].mxu1  ;;  %v926_v38 = vld [vmem:[%s6717_s22 + $0xe8] sm:$0xff] }
 0x31c   :  { %v5678_v42 = vadd.f32 %v4126_v37, %v434_v41  ;;  %v925_v37 = vld [vmem:[%s6717_s22 + $0xe0] sm:$0xff] }
 0x31d   :  { %499 = vrot.lane.b32.xlu1 %v440_v39, %s5379_s30  ;;  %v5854_v39 = vpack.c.bf16 %v926_v38, %v925_v37  ;;  %v909_v41 = vld [vmem:[%s6717_s22 + $0x60] sm:$0xff] }
 0x31e   :  { %v4130_v43 = vclamps-f32 %v5678_v42, 6.0  ;;  %497 = vrot.lane.b32.xlu0 %v5678_v42, %s5379_s30 }
 0x320   :  { %v445_v44 = vmul.f32 1.442695, %v4130_v43  ;;  %v910_v43 = vld [vmem:[%s6717_s22 + $0x68] sm:$0xff] }
 0x322   :  { %5162 = vpow2.f32 %v445_v44  ;;  %465 = vperm.xlu0 %5144, %v460_v45   ;;  %v931_v44 = vld [vmem:[%s6717_s22 + $0x110] sm:$0xff]  ;;  %v5866_v45 = vpack.c.bf16 %v910_v43, %v909_v41 }
 0x326   :  { %1527 = vrot.lane.b32.xlu0 %v4155_v48, %s5382_s6  ;;  %v927_v48 = vld [vmem:[%s6717_s22 + $0xf0] sm:$0xff] }
 0x32a   :  { %1945 = vrot.lane.b32.xlu0 %v4165_v51, %s5382_s6 }
 0x32c   :  { %v5692_v49 = vpop.eup %5162 }
 0x32d   :  { %v452_v50 = vmul.f32 %v5692_v49, %v450_v47  ;;  %v5872_v47 = vpack.c.bf16 %v932_v46, %v931_v44 }
 0x32e   :  { %470 = vperm.xlu0 %5144, %v461_v52   ;;  %v911_v52 = vld [vmem:[%s6717_s22 + $0x70] sm:$0xff] }
 0x32f   :  { %454 = vrot.lane.b32.xlu1 %v452_v50, %s5383_s11  ;;  %v928_v50 = vld [vmem:[%s6717_s22 + $0xf8] sm:$0xff] }
 0x330   :  { %v5882_v51 = vpack.c.bf16 %v928_v50, %v927_v48  ;;  %v681_v50 = vrot.slane %v668_v13, %v484_v21 }
 0x333   :  { %1109 = vrot.lane.b32.xlu1 %v1107_v60, %s5382_s6 }
 0x38f   :  { %v500_v55 = vpop.permute.xlu1 %499 }
 0x390   :  { %v498_v53 = vpop.permute.xlu0 %497 }
 0x391   :  { %4133 = vmatmul.mubr.msk.f32.vlgmr.msra.gmra.mrb[4].mxu1 %vm504_vm7, %v498_v53 }
 0x392   :  { %586 = vmatprep.mubr.f32.mxu1 %v5376_v29  ;;  %4591 = vmatpush3.msk.msra.mxu1 %vm509_vm5, %v459_v36  ;;  %v5844_v36 = vpack.c.bf16 %v930_v35, %v929_v33  ;;  %v485_v35 = vrot.slane %v462_v6, %v484_v21 }
 0x393   :  { %4138 = vmatprep.subr.msk.mxu1 %vm147_vm1, %v705_v54  ;;  %v933_v54 = vld [vmem:[%s6717_s22 + $0x120] sm:$0xff] }
 0x394   :  { %4857 = vmatpush3.bf16.msra.mxu0 %v5844_v36 }
 0x395   :  { %4134 = vmatmul.mubr.msk.f32.gmra.mrb[6].mxu1 %vm504_vm7, %v500_v55  ;;  %4858 = vmatprep.subr.bf16.mxu0 %v5375_v3 }
 0x396   :  { %4592 = vmatprep.mubr.msk.f32.mxu1 %vm504_vm7, %v498_v53  ;;  %v912_v53 = vld [vmem:[%s6717_s22 + $0x78] sm:$0xff] }
 0x398   :  { %4860 = vmatpush3.bf16.msra.mxu0 %v5872_v47 }
 0x399   :  { %4593 = vmatmul.mubr.msk.f32.vlgmr.msra.gmra.mrb[8].mxu1 %vm504_vm7, %v500_v55  ;;  %4861 = vmatprep.subr.bf16.mxu0 %v5375_v3  ;;  %v5894_v55 = vpack.c.bf16 %v912_v53, %v911_v52 }
 0x39a   :  { %4139 = vmatpush1.msk.msra.mxu1 %vm147_vm1, %v704_v56  ;;  %793 = vmatprep.mubr.f32.mxu1 %v5376_v29  ;;  %v934_v56 = vld [vmem:[%s6717_s22 + $0x128] sm:$0xff] }
 0x39b   :  { %4595 = vmatprep.subr.mxu1 %v5376_v29 }
 0x3a1   :  { %v455_v57 = vpop.permute.xlu1 %454  ;;  %v466_v61 = vpop.permute.xlu0 %465 }
 0x3a2   :  { %v5717_v58 = vadd.f32 %v455_v57, %v5678_v42  ;;  %v5900_v57 = vpack.c.bf16 %v934_v56, %v933_v54  ;;  %v489_v15 = vmul.f32 %v477_v10, %v466_v61  ;;  %v490_v16 = vmul.f32 %v481_v12, %v466_v61 }
 0x3a3   :  { %v491_v54 = vmul.f32 %v485_v35, %v466_v61 }
 0x3a4   :  { %699 = vst.msk [vmem:[#allocation2] sm:$0x3] %vm698_vm8, %v5717_v58  ;;  %4140 = vmatmul.mubr.msk.f32.vlgmr.msra.gmra.mrb[10].mxu1 %vm716_vm9, %v5717_v58  ;;  %4863 = vmatpush3.bf16.msra.mxu0 %v5900_v57 }
 0x3a5   :  { %4596 = vmatpush3.msk.msra.mxu1 %vm147_vm1, %v706_v59  ;;  %4597 = vmatprep.mubr.msk.f32.mxu1 %vm5380_vm6, %v5376_v29  ;;  %v935_v59 = vld [vmem:[%s6717_s22 + $0x130] sm:$0xf]  ;;  %v5914_v2 = vpop.permute.xlu0 %1527 }
 0x3a6   :  { %4824 = vmatprep.subr.bf16.mxu1 %v5737_v62  ;;  %4612 = vmatprep.subr.mxu0 %v5376_v29 }
 0x3a8   :  { %4598 = vmatmul.mubr.msk.f32.vlgmr.msra.gmra.mrb[12].mxu1 %vm716_vm9, %v5717_v58  ;;  %4613 = vmatpush3.msk.msra.mxu0 %vm946_vm10, %v935_v59 }
 0x3a9   :  { %4826 = vmatpush3.bf16.msra.mxu1 %v5745_v1  ;;  %v5921_v9 = vpop.permute.xlu0 %1945 }
 0x3aa   :  { %4828 = vmatprep.subr.bf16.mxu1 %v5755_v5 }
 0x3ad   :  { %4830 = vmatpush3.bf16.msra.mxu1 %v5763_v8  ;;  %v471_v18 = vpop.permute.xlu0 %470 }
 0x3ae   :  { %4832 = vmatprep.subr.bf16.mxu1 %v5773_v11  ;;  %v492_v28 = vmul.f32 %v477_v10, %v471_v18  ;;  %v493_v32 = vmul.f32 %v481_v12, %v471_v18  ;;  %v494_v48 = vmul.f32 %v485_v35, %v471_v18 }
 0x3b1   :  { %4834 = vmatpush3.bf16.msra.mxu1 %v5781_v14 }
 0x3b2   :  { %4836 = vmatprep.subr.bf16.mxu1 %v5791_v17 }
 0x3b5   :  { %4838 = vmatpush3.bf16.msra.mxu1 %v5799_v20 }
 0x3b6   :  { %4840 = vmatprep.subr.bf16.mxu1 %v5809_v23 }
 0x3b9   :  { %4842 = vmatpush3.bf16.msra.mxu1 %v5817_v26 }
 0x3ba   :  { %4844 = vmatprep.subr.bf16.mxu1 %v5827_v30 }
 0x3bd   :  { %4846 = vmatpush3.bf16.msra.mxu1 %v5838_v34 }
 0x3be   :  { %4848 = vmatprep.subr.bf16.mxu1 %v5854_v39 }
 0x3c1   :  { %4850 = vmatpush3.bf16.msra.mxu1 %v5866_v45 }
 0x3c2   :  { %4852 = vmatprep.subr.bf16.mxu1 %v5882_v51 }
 0x3c5   :  { %4854 = vmatpush3.bf16.msra.mxu1 %v5894_v55 }
 0x3c6   :  { %4896 = vmatprep.subr.bf16.mxu1 %v5375_v3 }
 0x464   :  { %v582_v22 = vpop.f32.mrb[4].mxu1 }
 0x465   :  { %v583_v25 = vadd.f32 %v582_v22, %v489_v15  ;;  %v584_v27 = vpop.f32.mrb[5].mxu1 }
 0x466   :  { %v585_v31 = vadd.f32 %v584_v27, %v490_v16 }
 0x467   :  { %v685_v33 = vadd.f32 %v673_v19, %v583_v25 }
 0x468   :  { %v686_v37 = vadd.f32 %v677_v24, %v585_v31  ;;  %v588_v38 = vpop.f32.mrb[6].mxu1 }
 0x469   :  { %691 = vst [vmem:[#allocation3] sm:$0xff] %v685_v33  ;;  %v589_v41 = vadd.f32 %v588_v38, %v492_v28  ;;  %v590_v43 = vpop.f32.mrb[7].mxu1 }
 0x46a   :  { %692 = vst [vmem:[#allocation3 + $0x8] sm:$0xff] %v686_v37  ;;  %v591_v44 = vadd.f32 %v590_v43, %v493_v32 }
 0x46b   :  { %v688_v46 = vadd.f32 %v673_v19, %v589_v41 }
 0x46c   :  { %v689_v52 = vadd.f32 %v677_v24, %v591_v44  ;;  %v4594_v53 = vpop.f32.mrb[8].mxu1 }
 0x46d   :  { %695 = vst [vmem:[#allocation3 + $0x18] sm:$0xff] %v688_v46  ;;  %v665_v56 = vadd.f32 %v4594_v53, %v494_v48  ;;  %v659_v59 = vpop.f32.mrb[9].mxu1 }
 0x46e   :  { %696 = vst [vmem:[#allocation3 + $0x20] sm:$0xff] %v689_v52  ;;  %v660_v60 = vadd.f32 %v659_v59, %v491_v54 }
 0x46f   :  { %v690_v63 = vadd.f32 %v681_v50, %v665_v56 }
 0x470   :  { %v687_v0 = vadd.f32 %v681_v50, %v660_v60  ;;  %v701_v6 = vld [vmem:[#allocation3] sm:$0xc] }
 0x471   :  { %697 = vst.msk [vmem:[#allocation3 + $0x28] sm:$0xff] %vm693_vm11, %v690_v63  ;;  %v702_v7 = vld [vmem:[#allocation3 + $0x8] sm:$0xc]  ;;  %v710_v10 = vrot.slane %v701_v6, 2 }
 0x472   :  { %694 = vst.msk [vmem:[#allocation3 + $0x10] sm:$0xff] %vm693_vm11, %v687_v0  ;;  %v711_v13 = vrot.slane %v702_v7, 2 }
 0x477   :  { %v795_v12 = vpop.f32.mrb[10].mxu1 }
 0x478   :  { %v796_v15 = vadd.f32 %v795_v12, %v710_v10  ;;  %v797_v16 = vpop.f32.mrb[11].mxu1 }
 0x479   :  { %v798_v61 = vadd.f32 %v797_v16, %v711_v13  ;;  %v703_v18 = vld [vmem:[#allocation3 + $0x10] sm:$0xc]  ;;  %v1124_v13 = vld [vmem:[%s6713_s18 + $0x8] sm:$0x3f] }
 0x47a   :  { %v873_v19 = vand.u32 2147483647, %v796_v15  ;;  %v712_v21 = vrot.slane %v703_v18, 2  ;;  %v870_v60 = vmax.f32 %v796_v15, 0.0  ;;  %v1123_v15 = vld [vmem:[%s6713_s18] sm:$0x3f]  ;;  %4147 = vmatprep.subr.msk.mxu0 %vm147_vm1, %v1124_v13 }
 0x47b   :  { %v874_v22 = vand.u32 2147483647, %v798_v61  ;;  %v866_v24 = vpop.f32.mrb[12].mxu1  ;;  %v871_v56 = vmax.f32 %v798_v61, 0.0  ;;  %v5952_v18 = vld [vmem:[%s6718_s23] ss:$0 sm:$0xff] }
 0x47c   :  { %v876_v25 = vsub.f32 0.0, %v873_v19  ;;  %v867_v27 = vadd.f32 %v866_v24, %v712_v21  ;;  %v4599_v28 = vpop.f32.mrb[13].mxu1 }
 0x47d   :  { %v877_v31 = vsub.f32 0.0, %v874_v22 }
 0x47e   :  { %v879_v32 = vmul.f32 1.442695, %v876_v25  ;;  %v875_v33 = vand.u32 2147483647, %v867_v27  ;;  %v872_v7 = vmax.f32 %v867_v27, 0.0 }
 0x47f   :  { %v881_v35 = vmul.f32 1.442695, %v877_v31 }
 0x480   :  { %5164 = vpow2.f32 %v879_v32  ;;  %v878_v37 = vsub.f32 0.0, %v875_v33  ;;  %v1110_v32 = vpop.permute.xlu1 %1109 }
 0x481   :  { %5166 = vpow2.f32 %v881_v35 }
 0x482   :  { %v883_v38 = vmul.f32 1.442695, %v878_v37  ;;  %v1102_v37 = vstv %s5962_s29 }
 0x484   :  { %5168 = vpow2.f32 %v883_v38 }
 0x48a   :  { %v5165_v41 = vpop.eup %5164 }
 0x48b   :  { %v5167_v43 = vpop.eup %5166  ;;  %v885_v44 = vadd.f32 1.0, %v5165_v41 }
 0x48c   :  { %v886_v46 = vadd.f32 1.0, %v5167_v43 }
 0x48d   :  { %5170 = vlog2.f32 %v885_v44 }
 0x48e   :  { %v5169_v48 = vpop.eup %5168  ;;  %5172 = vlog2.f32 %v886_v46  ;;  %v1125_v46 = vld [vmem:[%s6713_s18 + $0x10] sm:$0x3f] }
 0x48f   :  { %v887_v50 = vadd.f32 1.0, %v5169_v48  ;;  %v1120_v48 = vld [vmem:[#allocation3] sm:$0x30] }
 0x491   :  { %5174 = vlog2.f32 %v887_v50  ;;  %v1121_v50 = vld [vmem:[#allocation3 + $0x8] sm:$0x30] }
 0x497   :  { %v5171_v52 = vpop.eup %5170 }
 0x498   :  { %v5173_v53 = vpop.eup %5172  ;;  %v889_v54 = vmul.f32 0.6931472, %v5171_v52  ;;  %v1129_v52 = vrot.slane %v1120_v48, 4 }
 0x499   :  { %v891_v59 = vmul.f32 0.6931472, %v5173_v53 }
 0x49a   :  { %v894_v6 = vadd.f32 %v889_v54, %v870_v60  ;;  %v1130_v54 = vrot.slane %v1121_v50, 4 }
 0x49b   :  { %v5175_v63 = vpop.eup %5174  ;;  %v895_v0 = vadd.f32 %v891_v59, %v871_v56  ;;  %v1122_v56 = vld [vmem:[#allocation3 + $0x10] sm:$0x30] }
 0x49c   :  { %v893_v10 = vmul.f32 0.6931472, %v5175_v63 }
 0x49d   :  { %1014 = vmatprep.mubr.f32.mxu1 %v895_v0 }
 0x49e   :  { %v896_v12 = vadd.f32 %v893_v10, %v872_v7  ;;  %1015 = vmatmul.mubr.f32.vlgmr.msra.gmra.mrb[14].mxu1 %v894_v6  ;;  %v1131_v6 = vrot.slane %v1122_v56, 4 }
 0x49f   :  { %4898 = vmatpush3.bf16.msra.mxu1 %v5844_v36  ;;  %4636 = vmatprep.mubr.msk.f32.mxu1 %vm5380_vm6, %v5376_v29 }
 0x4a0   :  { %4615 = vmatmul.mubr.msk.f32.vlgmr.msra.gmra.mrb[4].mxu0 %vm693_vm11, %v896_v12  ;;  %4899 = vmatprep.subr.bf16.mxu1 %v5375_v3 }
 0x4a1   :  { %1211 = vmatprep.mubr.f32.mxu0 %v5376_v29  ;;  %4148 = vmatpush1.msk.msra.mxu0 %vm147_vm1, %v1123_v15 }
 0x4a2   :  { %4617 = vmatprep.subr.mxu0 %v5376_v29 }
 0x4a3   :  { %4901 = vmatpush3.bf16.msra.mxu1 %v5872_v47 }
 0x4a4   :  { %4902 = vmatprep.subr.bf16.mxu1 %v5375_v3 }
 0x4a7   :  { %4904 = vmatpush3.bf16.msra.mxu1 %v5900_v57 }
 0x4a8   :  { %4634 = vmatprep.subr.mxu1 %v5376_v29 }
 0x571   :  { %v4272_v16 = vpop.f32.mrb[14].mxu1 }
 0x572   :  { %v4273_v61 = vpop.f32.mrb[15].mxu1 }
 0x573   :  { %v4274_v19 = vadd.f32 %v4273_v61, %v4272_v16  ;;  %v1086_v21 = vpop.f32.mrb[4].mxu0 }
 0x574   :  { %v4616_v22 = vpop.f32.mrb[5].mxu0 }
 0x575   :  { %v1017_v24 = vadd.f32 %v4274_v19, %v5952_v18 }
 0x577   :  { %v5955_v25 = vadd.f32 %v1086_v21, %v1017_v24 }
 0x579   :  { %v1090_v27 = vmul.f32 0.5, %v5955_v25  ;;  %v1105_v38 = vmul.f32 %v1102_v37, %v5955_v25 }
 0x57b   :  { %5176 = vtanh.f32 %v1090_v27  ;;  %v1106_v41 = vadd.f32 %v1105_v38, %v5717_v58  ;;  %v1353_v58 = vld [vmem:[%s6717_s22 + $0x130] sm:$0xf] }
 0x57c   :  { %4635 = vmatpush3.msk.msra.mxu1 %vm946_vm10, %v1353_v58 }
 0x585   :  { %v5177_v28 = vpop.eup %5176 }
 0x586   :  { %v1092_v31 = vadd.f32 1.0, %v5177_v28 }
 0x588   :  { %v5958_v33 = vmul.f32 0.5, %v1092_v31 }
 0x58a   :  { %v1112_v35 = vmul.f32 %v1110_v32, %v5958_v33 }
 0x58c   :  { %1114 = vrot.lane.b32.xlu1 %v1112_v35, %s5379_s30 }
 0x5fe   :  { %v1115_v43 = vpop.permute.xlu1 %1114 }
 0x5ff   :  { %v5969_v44 = vadd.f32 %v1115_v43, %v1106_v41 }
 0x601   :  { %1118 = vst.msk [vmem:[#allocation2 + $0x2] sm:$0x3] %vm698_vm8, %v5969_v44  ;;  %4149 = vmatmul.mubr.msk.f32.vlgmr.msra.gmra.mrb[6].mxu0 %vm716_vm9, %v5969_v44 }
 0x602   :  { %4618 = vmatpush3.msk.msra.mxu0 %vm147_vm1, %v1125_v46  ;;  %4619 = vmatprep.mubr.msk.f32.mxu0 %vm5380_vm6, %v5376_v29 }
 0x603   :  { %4865 = vmatprep.subr.bf16.mxu0 %v5737_v62 }
 0x605   :  { %4620 = vmatmul.mubr.msk.f32.vlgmr.msra.gmra.mrb[8].mxu0 %vm716_vm9, %v5969_v44 }
 0x606   :  { %4867 = vmatpush3.bf16.msra.mxu0 %v5745_v1 }
 0x607   :  { %4869 = vmatprep.subr.bf16.mxu0 %v5755_v5 }
 0x60a   :  { %4871 = vmatpush3.bf16.msra.mxu0 %v5763_v8 }
 0x60b   :  { %4873 = vmatprep.subr.bf16.mxu0 %v5773_v11 }
 0x60e   :  { %4875 = vmatpush3.bf16.msra.mxu0 %v5781_v14 }
 0x60f   :  { %4877 = vmatprep.subr.bf16.mxu0 %v5791_v17 }
 0x612   :  { %4879 = vmatpush3.bf16.msra.mxu0 %v5799_v20 }
 0x613   :  { %4881 = vmatprep.subr.bf16.mxu0 %v5809_v23 }
 0x616   :  { %4883 = vmatpush3.bf16.msra.mxu0 %v5817_v26 }
 0x617   :  { %4885 = vmatprep.subr.bf16.mxu0 %v5827_v30 }
 0x61a   :  { %4887 = vmatpush3.bf16.msra.mxu0 %v5838_v34 }
 0x61b   :  { %4889 = vmatprep.subr.bf16.mxu0 %v5854_v39 }
 0x61e   :  { %4891 = vmatpush3.bf16.msra.mxu0 %v5866_v45 }
 0x61f   :  { %4893 = vmatprep.subr.bf16.mxu0 %v5882_v51 }
 0x622   :  { %4895 = vmatpush3.bf16.msra.mxu0 %v5894_v55 }
 0x623   :  { %4937 = vmatprep.subr.bf16.mxu0 %v5375_v3 }
 0x6d4   :  { %v1213_v53 = vpop.f32.mrb[6].mxu0 }
 0x6d5   :  { %v1214_v59 = vadd.f32 %v1213_v53, %v1129_v52  ;;  %v1215_v60 = vpop.f32.mrb[7].mxu0 }
 0x6d6   :  { %v1216_v63 = vadd.f32 %v1215_v60, %v1130_v54 }
 0x6d7   :  { %v1291_v0 = vand.u32 2147483647, %v1214_v59  ;;  %v1288_v50 = vmax.f32 %v1214_v59, 0.0  ;;  %v1542_v59 = vld [vmem:[%s6713_s18 + $0x8] sm:$0x3f] }
 0x6d8   :  { %v1292_v7 = vand.u32 2147483647, %v1216_v63  ;;  %v1284_v10 = vpop.f32.mrb[8].mxu0  ;;  %v1289_v58 = vmax.f32 %v1216_v63, 0.0  ;;  %v1541_v63 = vld [vmem:[%s6713_s18] sm:$0x3f]  ;;  %4157 = vmatprep.subr.msk.mxu1 %vm147_vm1, %v1542_v59 }
 0x6d9   :  { %v1294_v12 = vsub.f32 0.0, %v1291_v0  ;;  %v1285_v13 = vadd.f32 %v1284_v10, %v1131_v6  ;;  %v4621_v15 = vpop.f32.mrb[9].mxu0 }
 0x6da   :  { %v1295_v16 = vsub.f32 0.0, %v1292_v7 }
 0x6db   :  { %v1297_v61 = vmul.f32 1.442695, %v1294_v12  ;;  %v1293_v19 = vand.u32 2147483647, %v1285_v13  ;;  %v1290_v56 = vmax.f32 %v1285_v13, 0.0 }
 0x6dc   :  { %v1299_v21 = vmul.f32 1.442695, %v1295_v16 }
 0x6dd   :  { %5178 = vpow2.f32 %v1297_v61  ;;  %v1296_v22 = vsub.f32 0.0, %v1293_v19 }
 0x6de   :  { %5180 = vpow2.f32 %v1299_v21 }
 0x6df   :  { %v1301_v24 = vmul.f32 1.442695, %v1296_v22 }
 0x6e1   :  { %5182 = vpow2.f32 %v1301_v24 }
 0x6e7   :  { %v5179_v27 = vpop.eup %5178 }
 0x6e8   :  { %v5181_v28 = vpop.eup %5180  ;;  %v1303_v31 = vadd.f32 1.0, %v5179_v27  ;;  %v1519_v27 = vstv %s6032_s20 }
 0x6e9   :  { %v1304_v32 = vadd.f32 1.0, %v5181_v28 }
 0x6ea   :  { %5184 = vlog2.f32 %v1303_v31 }
 0x6eb   :  { %v5183_v35 = vpop.eup %5182  ;;  %5186 = vlog2.f32 %v1304_v32 }
 0x6ec   :  { %v1305_v38 = vadd.f32 1.0, %v5183_v35 }
 0x6ee   :  { %5188 = vlog2.f32 %v1305_v38  ;;  %v1543_v38 = vld [vmem:[%s6713_s18 + $0x10] sm:$0x3f] }
 0x6f4   :  { %v5185_v41 = vpop.eup %5184 }
 0x6f5   :  { %v5187_v43 = vpop.eup %5186  ;;  %v1307_v46 = vmul.f32 0.6931472, %v5185_v41  ;;  %v1539_v41 = vld [vmem:[#allocation3 + $0x8] sm:$0xc0] }
 0x6f6   :  { %v1309_v48 = vmul.f32 0.6931472, %v5187_v43 }
 0x6f7   :  { %v1312_v54 = vadd.f32 %v1307_v46, %v1288_v50 }
 0x6f8   :  { %v5189_v52 = vpop.eup %5188  ;;  %v1313_v53 = vadd.f32 %v1309_v48, %v1289_v58  ;;  %v1548_v58 = vrot.slane %v1539_v41, 6  ;;  %v1540_v48 = vld [vmem:[#allocation3 + $0x10] sm:$0xc0] }
 0x6f9   :  { %v1311_v60 = vmul.f32 0.6931472, %v5189_v52 }
 0x6fa   :  { %1431 = vmatprep.mubr.f32.mxu0 %v1313_v53 }
 0x6fb   :  { %v1314_v0 = vadd.f32 %v1311_v60, %v1290_v56  ;;  %1432 = vmatmul.mubr.f32.vlgmr.msra.gmra.mrb[10].mxu0 %v1312_v54  ;;  %v1549_v56 = vrot.slane %v1540_v48, 6 }
 0x6fc   :  { %4939 = vmatpush3.bf16.msra.mxu0 %v5844_v36  ;;  %4658 = vmatprep.mubr.msk.f32.mxu0 %vm5380_vm6, %v5376_v29 }
 0x6fd   :  { %4637 = vmatmul.mubr.msk.f32.vlgmr.msra.gmra.mrb[16].mxu1 %vm693_vm11, %v1314_v0  ;;  %4940 = vmatprep.subr.bf16.mxu0 %v5375_v3 }
 0x6fe   :  { %1629 = vmatprep.mubr.f32.mxu1 %v5376_v29  ;;  %4158 = vmatpush1.msk.msra.mxu1 %vm147_vm1, %v1541_v63 }
 0x6ff   :  { %4639 = vmatprep.subr.mxu1 %v5376_v29 }
 0x700   :  { %4942 = vmatpush3.bf16.msra.mxu0 %v5872_v47 }
 0x701   :  { %4943 = vmatprep.subr.bf16.mxu0 %v5375_v3 }
 0x704   :  { %4945 = vmatpush3.bf16.msra.mxu0 %v5900_v57 }
 0x705   :  { %4656 = vmatprep.subr.mxu0 %v5376_v29 }
 0x7ce   :  { %v4317_v6 = vpop.f32.mrb[10].mxu0 }
 0x7cf   :  { %v4318_v7 = vpop.f32.mrb[11].mxu0 }
 0x7d0   :  { %v4319_v10 = vadd.f32 %v4318_v7, %v4317_v6  ;;  %v1503_v12 = vpop.f32.mrb[16].mxu1 }
 0x7d1   :  { %v4638_v13 = vpop.f32.mrb[17].mxu1 }
 0x7d2   :  { %v1434_v15 = vadd.f32 %v4319_v10, %v5952_v18 }
 0x7d4   :  { %v6024_v16 = vadd.f32 %v1503_v12, %v1434_v15 }
 0x7d6   :  { %v1507_v61 = vmul.f32 0.5, %v6024_v16  ;;  %v1522_v28 = vmul.f32 %v1519_v27, %v6024_v16 }
 0x7d8   :  { %5190 = vtanh.f32 %v1507_v61  ;;  %v1523_v31 = vadd.f32 %v1522_v28, %v5969_v44  ;;  %v1538_v44 = vld [vmem:[#allocation3] sm:$0xc0] }
 0x7d9   :  { %v1547_v43 = vrot.slane %v1538_v44, 6 }
 0x7e2   :  { %v5191_v19 = vpop.eup %5190 }
 0x7e3   :  { %v1509_v21 = vadd.f32 1.0, %v5191_v19 }
 0x7e5   :  { %v6027_v22 = vmul.f32 0.5, %v1509_v21 }
 0x7e7   :  { %v1530_v24 = vmul.f32 %v5914_v2, %v6027_v22  ;;  %v1771_v2 = vld [vmem:[%s6717_s22 + $0x130] sm:$0xf] }
 0x7e8   :  { %4657 = vmatpush3.msk.msra.mxu0 %vm946_vm10, %v1771_v2 }
 0x7e9   :  { %1532 = vrot.lane.b32.xlu1 %v1530_v24, %s5379_s30 }
 0x85b   :  { %v1533_v32 = vpop.permute.xlu1 %1532 }
 0x85c   :  { %v6039_v35 = vadd.f32 %v1533_v32, %v1523_v31 }
 0x85e   :  { %1536 = vst.msk [vmem:[#allocation2 + $0x4] sm:$0x3] %vm698_vm8, %v6039_v35  ;;  %4159 = vmatmul.mubr.msk.f32.vlgmr.msra.gmra.mrb[18].mxu1 %vm716_vm9, %v6039_v35 }
 0x85f   :  { %4640 = vmatpush3.msk.msra.mxu1 %vm147_vm1, %v1543_v38  ;;  %4641 = vmatprep.mubr.msk.f32.mxu1 %vm5380_vm6, %v5376_v29 }
 0x860   :  { %4906 = vmatprep.subr.bf16.mxu1 %v5737_v62 }
 0x862   :  { %4642 = vmatmul.mubr.msk.f32.vlgmr.msra.gmra.mrb[20].mxu1 %vm716_vm9, %v6039_v35 }
 0x863   :  { %4908 = vmatpush3.bf16.msra.mxu1 %v5745_v1 }
 0x864   :  { %4910 = vmatprep.subr.bf16.mxu1 %v5755_v5 }
 0x867   :  { %4912 = vmatpush3.bf16.msra.mxu1 %v5763_v8 }
 0x868   :  { %4914 = vmatprep.subr.bf16.mxu1 %v5773_v11 }
 0x86b   :  { %4916 = vmatpush3.bf16.msra.mxu1 %v5781_v14 }
 0x86c   :  { %4918 = vmatprep.subr.bf16.mxu1 %v5791_v17 }
 0x86f   :  { %4920 = vmatpush3.bf16.msra.mxu1 %v5799_v20 }
 0x870   :  { %4922 = vmatprep.subr.bf16.mxu1 %v5809_v23 }
 0x873   :  { %4924 = vmatpush3.bf16.msra.mxu1 %v5817_v26 }
 0x874   :  { %4926 = vmatprep.subr.bf16.mxu1 %v5827_v30 }
 0x877   :  { %4928 = vmatpush3.bf16.msra.mxu1 %v5838_v34 }
 0x878   :  { %4930 = vmatprep.subr.bf16.mxu1 %v5854_v39 }
 0x87b   :  { %4932 = vmatpush3.bf16.msra.mxu1 %v5866_v45 }
 0x87c   :  { %4934 = vmatprep.subr.bf16.mxu1 %v5882_v51 }
 0x87f   :  { %4936 = vmatpush3.bf16.msra.mxu1 %v5894_v55 }
 0x880   :  { %4978 = vmatprep.subr.bf16.mxu1 %v5375_v3 }
 0x931   :  { %v1631_v46 = vpop.f32.mrb[18].mxu1 }
 0x932   :  { %v1632_v50 = vadd.f32 %v1631_v46, %v1547_v43  ;;  %v1633_v52 = vpop.f32.mrb[19].mxu1 }
 0x933   :  { %v1634_v53 = vadd.f32 %v1633_v52, %v1548_v58 }
 0x934   :  { %v1709_v54 = vand.u32 2147483647, %v1632_v50  ;;  %v1706_v46 = vmax.f32 %v1632_v50, 0.0  ;;  %v1959_v50 = vld [vmem:[%s6713_s18] sm:$0x3f] }
 0x935   :  { %v1710_v60 = vand.u32 2147483647, %v1634_v53  ;;  %v1702_v0 = vpop.f32.mrb[20].mxu1  ;;  %v1707_v41 = vmax.f32 %v1634_v53, 0.0 }
 0x936   :  { %v1712_v59 = vsub.f32 0.0, %v1709_v54  ;;  %v1703_v63 = vadd.f32 %v1702_v0, %v1549_v56  ;;  %v4643_v6 = vpop.f32.mrb[21].mxu1 }
 0x937   :  { %v1713_v7 = vsub.f32 0.0, %v1710_v60 }
 0x938   :  { %v1715_v10 = vmul.f32 1.442695, %v1712_v59  ;;  %v1711_v12 = vand.u32 2147483647, %v1703_v63  ;;  %v1708_v54 = vmax.f32 %v1703_v63, 0.0 }
 0x939   :  { %v1717_v13 = vmul.f32 1.442695, %v1713_v7 }
 0x93a   :  { %5192 = vpow2.f32 %v1715_v10  ;;  %v1714_v15 = vsub.f32 0.0, %v1711_v12 }
 0x93b   :  { %5194 = vpow2.f32 %v1717_v13 }
 0x93c   :  { %v1719_v61 = vmul.f32 1.442695, %v1714_v15 }
 0x93e   :  { %5196 = vpow2.f32 %v1719_v61  ;;  %v1937_v61 = vstv %s6102_s8 }
 0x944   :  { %v5193_v19 = vpop.eup %5192 }
 0x945   :  { %v5195_v21 = vpop.eup %5194  ;;  %v1721_v24 = vadd.f32 1.0, %v5193_v19 }
 0x946   :  { %v1722_v28 = vadd.f32 1.0, %v5195_v21 }
 0x947   :  { %5198 = vlog2.f32 %v1721_v24 }
 0x948   :  { %v5197_v31 = vpop.eup %5196  ;;  %5200 = vlog2.f32 %v1722_v28 }
 0x949   :  { %v1723_v32 = vadd.f32 1.0, %v5197_v31  ;;  %v1961_v31 = vld [vmem:[%s6713_s18 + $0x10] sm:$0x3f] }
 0x94b   :  { %5202 = vlog2.f32 %v1723_v32 }
 0x951   :  { %v5199_v38 = vpop.eup %5198 }
 0x952   :  { %v5201_v2 = vpop.eup %5200  ;;  %v1725_v44 = vmul.f32 0.6931472, %v5199_v38 }
 0x953   :  { %v1727_v43 = vmul.f32 0.6931472, %v5201_v2 }
 0x954   :  { %v1730_v52 = vadd.f32 %v1725_v44, %v1706_v46 }
 0x955   :  { %v5203_v58 = vpop.eup %5202  ;;  %v1731_v48 = vadd.f32 %v1727_v43, %v1707_v41 }
 0x956   :  { %v1729_v56 = vmul.f32 0.6931472, %v5203_v58 }
 0x957   :  { %1849 = vmatprep.mubr.f32.mxu1 %v1731_v48 }
 0x958   :  { %v1732_v60 = vadd.f32 %v1729_v56, %v1708_v54  ;;  %1850 = vmatmul.mubr.f32.vlgmr.msra.gmra.mrb[22].mxu1 %v1730_v52 }
 0x959   :  { %4980 = vmatpush3.bf16.msra.mxu1 %v5844_v36  ;;  %4680 = vmatprep.mubr.msk.f32.mxu1 %vm5380_vm6, %v5376_v29  ;;  %v1960_v36 = vld [vmem:[%s6713_s18 + $0x8] sm:$0x3f] }
 0x95a   :  { %4659 = vmatmul.mubr.msk.f32.vlgmr.msra.gmra.mrb[12].mxu0 %vm693_vm11, %v1732_v60  ;;  %4981 = vmatprep.subr.bf16.mxu1 %v5375_v3 }
 0x95b   :  { %2038 = vmatprep.mubr.f32.mxu0 %v5376_v29  ;;  %4167 = vmatprep.subr.msk.mxu0 %vm147_vm1, %v1960_v36 }
 0x95c   :  { %4168 = vmatpush1.msk.msra.mxu0 %vm147_vm1, %v1959_v50 }
 0x95d   :  { %4983 = vmatpush3.bf16.msra.mxu1 %v5872_v47  ;;  %4661 = vmatprep.subr.mxu0 %v5376_v29 }
 0x95e   :  { %4984 = vmatprep.subr.bf16.mxu1 %v5375_v3 }
 0x961   :  { %4986 = vmatpush3.bf16.msra.mxu1 %v5900_v57 }
 0x962   :  { %4678 = vmatprep.subr.mxu1 %v5376_v29 }
 0xa2b   :  { %v4362_v47 = vpop.f32.mrb[22].mxu1 }
 0xa2c   :  { %v4363_v53 = vpop.f32.mrb[23].mxu1 }
 0xa2d   :  { %v4364_v0 = vadd.f32 %v4363_v53, %v4362_v47  ;;  %v1921_v57 = vpop.f32.mrb[12].mxu0 }
 0xa2e   :  { %v4660_v59 = vpop.f32.mrb[13].mxu0 }
 0xa2f   :  { %v1852_v63 = vadd.f32 %v4364_v0, %v5952_v18 }
 0xa31   :  { %v6094_v6 = vadd.f32 %v1921_v57, %v1852_v63 }
 0xa33   :  { %v1925_v7 = vmul.f32 0.5, %v6094_v6  ;;  %v1940_v19 = vmul.f32 %v1937_v61, %v6094_v6 }
 0xa35   :  { %5204 = vtanh.f32 %v1925_v7  ;;  %v1941_v21 = vadd.f32 %v1940_v19, %v6039_v35  ;;  %v2369_v7 = vld [vmem:[%s6713_s18 + $0x8] sm:$0x3f] }
 0xa3f   :  { %v5205_v10 = vpop.eup %5204 }
 0xa40   :  { %v1927_v12 = vadd.f32 1.0, %v5205_v10  ;;  %v2368_v10 = vld [vmem:[%s6713_s18] sm:$0x3f] }
 0xa42   :  { %v6097_v13 = vmul.f32 0.5, %v1927_v12 }
 0xa44   :  { %v1948_v15 = vmul.f32 %v5921_v9, %v6097_v13 }
 0xa46   :  { %1950 = vrot.lane.b32.xlu1 %v1948_v15, %s5379_s30 }
 0xab8   :  { %v1951_v24 = vpop.permute.xlu1 %1950 }
 0xab9   :  { %v6109_v28 = vadd.f32 %v1951_v24, %v1941_v21 }
 0xabb   :  { %1954 = vst.msk [vmem:[#allocation2 + $0x6] sm:$0x3] %vm698_vm8, %v6109_v28  ;;  %4169 = vmatmul.mubr.msk.f32.vlgmr.msra.gmra.mrb[14].mxu0 %vm716_vm9, %v6109_v28 }
 0xabc   :  { %4662 = vmatpush3.msk.msra.mxu0 %vm147_vm1, %v1961_v31  ;;  %4663 = vmatprep.mubr.msk.f32.mxu0 %vm5380_vm6, %v5376_v29 }
 0xabd   :  { %4947 = vmatprep.subr.bf16.mxu0 %v5737_v62  ;;  %v2180_v62 = vld [vmem:[%s6717_s22 + $0x130] sm:$0xf] }
 0xabe   :  { %4679 = vmatpush3.msk.msra.mxu1 %vm946_vm10, %v2180_v62 }
 0xabf   :  { %4664 = vmatmul.mubr.msk.f32.vlgmr.msra.gmra.mrb[16].mxu0 %vm716_vm9, %v6109_v28  ;;  %4177 = vmatprep.subr.msk.mxu1 %vm147_vm1, %v2369_v7  ;;  %v2569_v7 = vld [vmem:[%s6717_s22 + $0x48] sm:$0xff] }
 0xac0   :  { %4949 = vmatpush3.bf16.msra.mxu0 %v5745_v1  ;;  %v4175_v1 = vld [vmem:[%s6756_s1 + $0x6] sm:$0x3] }
 0xac1   :  { %4951 = vmatprep.subr.bf16.mxu0 %v5755_v5  ;;  %2354 = vrot.lane.b32.xlu1 %v4175_v1, %s5382_s6  ;;  %v1956_v5 = vld [vmem:[#allocation3 + $0x18] sm:$0x3] }
 0xac4   :  { %4953 = vmatpush3.bf16.msra.mxu0 %v5763_v8 }
 0xac5   :  { %4955 = vmatprep.subr.bf16.mxu0 %v5773_v11 }
 0xac8   :  { %4957 = vmatpush3.bf16.msra.mxu0 %v5781_v14  ;;  %v1957_v14 = vld [vmem:[#allocation3 + $0x20] sm:$0x3] }
 0xac9   :  { %4959 = vmatprep.subr.bf16.mxu0 %v5791_v17 }
 0xacc   :  { %4961 = vmatpush3.bf16.msra.mxu0 %v5799_v20 }
 0xacd   :  { %4963 = vmatprep.subr.bf16.mxu0 %v5809_v23 }
 0xad0   :  { %4965 = vmatpush3.bf16.msra.mxu0 %v5817_v26 }
 0xad1   :  { %4967 = vmatprep.subr.bf16.mxu0 %v5827_v30  ;;  %v1958_v30 = vld [vmem:[#allocation3 + $0x28] sm:$0x3] }
 0xad4   :  { %4969 = vmatpush3.bf16.msra.mxu0 %v5838_v34 }
 0xad5   :  { %4971 = vmatprep.subr.bf16.mxu0 %v5854_v39 }
 0xad8   :  { %4973 = vmatpush3.bf16.msra.mxu0 %v5866_v45 }
 0xad9   :  { %4975 = vmatprep.subr.bf16.mxu0 %v5882_v51 }
 0xadc   :  { %4977 = vmatpush3.bf16.msra.mxu0 %v5894_v55 }
 0xadd   :  { %5019 = vmatprep.subr.bf16.mxu0 %v5375_v3 }
 0xb8e   :  { %v2040_v8 = vpop.f32.mrb[14].mxu0 }
 0xb8f   :  { %v2041_v11 = vadd.f32 %v2040_v8, %v1956_v5  ;;  %v2042_v17 = vpop.f32.mrb[15].mxu0 }
 0xb90   :  { %v2043_v20 = vadd.f32 %v2042_v17, %v1957_v14 }
 0xb91   :  { %v2118_v23 = vand.u32 2147483647, %v2041_v11  ;;  %v2115_v50 = vmax.f32 %v2041_v11, 0.0  ;;  %v2355_v11 = vpop.permute.xlu1 %2354 }
 0xb92   :  { %v2119_v26 = vand.u32 2147483647, %v2043_v20  ;;  %v2111_v34 = vpop.f32.mrb[16].mxu0  ;;  %v2116_v60 = vmax.f32 %v2043_v20, 0.0  ;;  %v2346_v20 = vstv %s6169_s19 }
 0xb93   :  { %v2121_v39 = vsub.f32 0.0, %v2118_v23  ;;  %v2112_v45 = vadd.f32 %v2111_v34, %v1958_v30  ;;  %v4665_v51 = vpop.f32.mrb[17].mxu0  ;;  %v2370_v34 = vld [vmem:[%s6713_s18 + $0x10] sm:$0x3f] }
 0xb94   :  { %v2122_v55 = vsub.f32 0.0, %v2119_v26  ;;  %v2560_v51 = vld [vmem:[%s6717_s22] sm:$0xff] }
 0xb95   :  { %v2124_v9 = vmul.f32 1.442695, %v2121_v39  ;;  %v2120_v35 = vand.u32 2147483647, %v2112_v45  ;;  %v2117_v57 = vmax.f32 %v2112_v45, 0.0  ;;  %v2577_v39 = vld [vmem:[%s6717_s22 + $0x88] sm:$0xff] }
 0xb96   :  { %v2126_v32 = vmul.f32 1.442695, %v2122_v55  ;;  %v2561_v55 = vld [vmem:[%s6717_s22 + $0x8] sm:$0xff] }
 0xb97   :  { %5206 = vpow2.f32 %v2124_v9  ;;  %v2123_v38 = vsub.f32 0.0, %v2120_v35  ;;  %v6204_v9 = vpack.c.bf16 %v2561_v55, %v2560_v51  ;;  %v2578_v35 = vld [vmem:[%s6717_s22 + $0x90] sm:$0xff] }
 0xb98   :  { %5208 = vpow2.f32 %v2126_v32  ;;  %v2579_v32 = vld [vmem:[%s6717_s22 + $0x98] sm:$0xff]  ;;  %v2590_v55 = vld [vmem:[%s6717_s22 + $0xf0] sm:$0xff] }
 0xb99   :  { %v2128_v2 = vmul.f32 1.442695, %v2123_v38  ;;  %v6214_v38 = vpack.c.bf16 %v2579_v32, %v2578_v35  ;;  %v2591_v35 = vld [vmem:[%s6717_s22 + $0xf8] sm:$0xff] }
 0xb9a   :  { %v6341_v32 = vpack.c.bf16 %v2591_v35, %v2590_v55 }
 0xb9b   :  { %5210 = vpow2.f32 %v2128_v2  ;;  %v2562_v2 = vld [vmem:[%s6717_s22 + $0x10] sm:$0xff] }
 0xba1   :  { %v5207_v44 = vpop.eup %5206 }
 0xba2   :  { %v5209_v41 = vpop.eup %5208  ;;  %v2130_v43 = vadd.f32 1.0, %v5207_v44  ;;  %v2563_v44 = vld [vmem:[%s6717_s22 + $0x18] sm:$0xff] }
 0xba3   :  { %v2131_v46 = vadd.f32 1.0, %v5209_v41  ;;  %v6222_v41 = vpack.c.bf16 %v2563_v44, %v2562_v2  ;;  %v2574_v2 = vld [vmem:[%s6717_s22 + $0x70] sm:$0xff]  ;;  %v2575_v44 = vld [vmem:[%s6717_s22 + $0x78] sm:$0xff] }
 0xba4   :  { %5212 = vlog2.f32 %v2130_v43  ;;  %v2580_v43 = vld [vmem:[%s6717_s22 + $0xa0] sm:$0xff] }
 0xba5   :  { %v5211_v58 = vpop.eup %5210  ;;  %5214 = vlog2.f32 %v2131_v46  ;;  %v2581_v46 = vld [vmem:[%s6717_s22 + $0xa8] sm:$0xff] }
 0xba6   :  { %v2132_v48 = vadd.f32 1.0, %v5211_v58  ;;  %v6232_v58 = vpack.c.bf16 %v2581_v46, %v2580_v43  ;;  %v2596_v43 = vld [vmem:[%s6717_s22 + $0x120] sm:$0xff]  ;;  %v6353_v46 = vpack.c.bf16 %v2575_v44, %v2574_v2 }
 0xba8   :  { %5216 = vlog2.f32 %v2132_v48  ;;  %v2564_v48 = vld [vmem:[%s6717_s22 + $0x20] sm:$0xff] }
 0xbae   :  { %v5213_v52 = vpop.eup %5212 }
 0xbaf   :  { %v5215_v54 = vpop.eup %5214  ;;  %v2134_v56 = vmul.f32 0.6931472, %v5213_v52  ;;  %v2565_v52 = vld [vmem:[%s6717_s22 + $0x28] sm:$0xff] }
 0xbb0   :  { %v2136_v36 = vmul.f32 0.6931472, %v5215_v54  ;;  %v6240_v54 = vpack.c.bf16 %v2565_v52, %v2564_v48  ;;  %v2597_v48 = vld [vmem:[%s6717_s22 + $0x128] sm:$0xff] }
 0xbb1   :  { %v2139_v0 = vadd.f32 %v2134_v56, %v2115_v50  ;;  %v2582_v56 = vld [vmem:[%s6717_s22 + $0xb0] sm:$0xff]  ;;  %v6359_v52 = vpack.c.bf16 %v2597_v48, %v2596_v43 }
 0xbb2   :  { %v5217_v47 = vpop.eup %5216  ;;  %v2140_v53 = vadd.f32 %v2136_v36, %v2116_v60  ;;  %v2583_v60 = vld [vmem:[%s6717_s22 + $0xb8] sm:$0xff]  ;;  %v2566_v50 = vld [vmem:[%s6717_s22 + $0x30] sm:$0xff] }
 0xbb3   :  { %v2138_v59 = vmul.f32 0.6931472, %v5217_v47  ;;  %v6250_v36 = vpack.c.bf16 %v2583_v60, %v2582_v56  ;;  %v2567_v47 = vld [vmem:[%s6717_s22 + $0x38] sm:$0xff]  ;;  %v2598_v56 = vld [vmem:[%s6717_s22 + $0x130] sm:$0xf] }
 0xbb4   :  { %2258 = vmatprep.mubr.f32.mxu0 %v2140_v53  ;;  %v6258_v53 = vpack.c.bf16 %v2567_v47, %v2566_v50  ;;  %v4185_v60 = vld [vmem:[%s6756_s1 + $0x8] sm:$0x3]  ;;  %v2365_v50 = vld [vmem:[#allocation3 + $0x18] sm:$0xc]  ;;  %v2366_v47 = vld [vmem:[#allocation3 + $0x20] sm:$0xc] }
 0xbb5   :  { %v2141_v63 = vadd.f32 %v2138_v59, %v2117_v57  ;;  %2259 = vmatmul.mubr.f32.vlgmr.msra.gmra.mrb[18].mxu0 %v2139_v0  ;;  %v2584_v0 = vld [vmem:[%s6717_s22 + $0xc0] sm:$0xff]  ;;  %v2585_v57 = vld [vmem:[%s6717_s22 + $0xc8] sm:$0xff]  ;;  %2772 = vrot.lane.b32.xlu1 %v4185_v60, %s5382_s6 }
 0xbb6   :  { %4702 = vmatprep.mubr.msk.f32.mxu0 %vm5380_vm6, %v5376_v29  ;;  %v6268_v59 = vpack.c.bf16 %v2585_v57, %v2584_v0  ;;  %v2374_v0 = vrot.slane %v2365_v50, 2 }
 0xbb7   :  { %4681 = vmatmul.mubr.msk.f32.vlgmr.msra.gmra.mrb[24].mxu1 %vm693_vm11, %v2141_v63  ;;  %v2568_v63 = vld [vmem:[%s6717_s22 + $0x40] sm:$0xff] }
 0xbb8   :  { %2456 = vmatprep.mubr.f32.mxu1 %v5376_v29  ;;  %4178 = vmatpush1.msk.msra.mxu1 %vm147_vm1, %v2368_v10  ;;  %v6276_v10 = vpack.c.bf16 %v2569_v7, %v2568_v63  ;;  %v2375_v63 = vrot.slane %v2366_v47, 2  ;;  %v2367_v7 = vld [vmem:[#allocation3 + $0x28] sm:$0xc] }
 0xbb9   :  { %4683 = vmatprep.subr.mxu1 %v5376_v29 }
 0xc88   :  { %v4407_v12 = vpop.f32.mrb[18].mxu0 }
 0xc89   :  { %v4408_v15 = vpop.f32.mrb[19].mxu0 }
 0xc8a   :  { %v4409_v19 = vadd.f32 %v4408_v15, %v4407_v12  ;;  %v2330_v21 = vpop.f32.mrb[24].mxu1  ;;  %v2586_v12 = vld [vmem:[%s6717_s22 + $0xd0] sm:$0xff]  ;;  %v2587_v15 = vld [vmem:[%s6717_s22 + $0xd8] sm:$0xff] }
 0xc8b   :  { %v4682_v24 = vpop.f32.mrb[25].mxu1 }
 0xc8c   :  { %v2261_v31 = vadd.f32 %v4409_v19, %v5952_v18  ;;  %v6286_v19 = vpack.c.bf16 %v2587_v15, %v2586_v12  ;;  %v2571_v24 = vld [vmem:[%s6717_s22 + $0x58] sm:$0xff] }
 0xc8e   :  { %v6162_v62 = vadd.f32 %v2330_v21, %v2261_v31  ;;  %v2570_v21 = vld [vmem:[%s6717_s22 + $0x50] sm:$0xff]  ;;  %v2592_v31 = vld [vmem:[%s6717_s22 + $0x100] sm:$0xff] }
 0xc90   :  { %v2334_v1 = vmul.f32 0.5, %v6162_v62  ;;  %v2349_v18 = vmul.f32 %v2346_v20, %v6162_v62 }
 0xc92   :  { %5218 = vtanh.f32 %v2334_v1  ;;  %v2350_v23 = vadd.f32 %v2349_v18, %v6109_v28  ;;  %v2576_v28 = vld [vmem:[%s6717_s22 + $0x80] sm:$0xff]  ;;  %v6297_v1 = vpack.c.bf16 %v2571_v24, %v2570_v21 }
 0xc93   :  { %v6196_v45 = vpack.c.bf16 %v2577_v39, %v2576_v28  ;;  %v2595_v39 = vld [vmem:[%s6717_s22 + $0x118] sm:$0xff] }
 0xc9c   :  { %v5219_v5 = vpop.eup %5218 }
 0xc9d   :  { %v2336_v8 = vadd.f32 1.0, %v5219_v5  ;;  %v2593_v5 = vld [vmem:[%s6717_s22 + $0x108] sm:$0xff] }
 0xc9f   :  { %v6165_v14 = vmul.f32 0.5, %v2336_v8  ;;  %v6303_v8 = vpack.c.bf16 %v2593_v5, %v2592_v31  ;;  %v2376_v31 = vrot.slane %v2367_v7, 2 }
 0xca1   :  { %v2357_v17 = vmul.f32 %v2355_v11, %v6165_v14  ;;  %v2588_v11 = vld [vmem:[%s6717_s22 + $0xe0] sm:$0xff]  ;;  %5021 = vmatpush3.bf16.msra.mxu0 %v6303_v8 }
 0xca2   :  { %5022 = vmatprep.subr.bf16.mxu0 %v5375_v3 }
 0xca3   :  { %2359 = vrot.lane.b32.xlu0 %v2357_v17, %s5379_s30  ;;  %v2589_v17 = vld [vmem:[%s6717_s22 + $0xe8] sm:$0xff] }
 0xca4   :  { %v6313_v18 = vpack.c.bf16 %v2589_v17, %v2588_v11 }
 0xd15   :  { %v2360_v26 = vpop.permute.xlu0 %2359 }
 0xd16   :  { %v6176_v30 = vadd.f32 %v2360_v26, %v2350_v23  ;;  %v2572_v23 = vld [vmem:[%s6717_s22 + $0x60] sm:$0xff]  ;;  %v2573_v26 = vld [vmem:[%s6717_s22 + $0x68] sm:$0xff] }
 0xd17   :  { %v6325_v28 = vpack.c.bf16 %v2573_v26, %v2572_v23 }
 0xd18   :  { %2363 = vst.msk [vmem:[#allocation2 + $0x8] sm:$0x3] %vm698_vm8, %v6176_v30  ;;  %4179 = vmatmul.mubr.msk.f32.vlgmr.msra.gmra.mrb[26].mxu1 %vm716_vm9, %v6176_v30 }
 0xd19   :  { %4684 = vmatpush3.msk.msra.mxu1 %vm147_vm1, %v2370_v34  ;;  %4685 = vmatprep.mubr.msk.f32.mxu1 %vm5380_vm6, %v5376_v29  ;;  %v2594_v34 = vld [vmem:[%s6717_s22 + $0x110] sm:$0xff] }
 0xd1a   :  { %4988 = vmatprep.subr.bf16.mxu1 %v6196_v45  ;;  %v6331_v51 = vpack.c.bf16 %v2595_v39, %v2594_v34 }
 0xd1c   :  { %4686 = vmatmul.mubr.msk.f32.vlgmr.msra.gmra.mrb[28].mxu1 %vm716_vm9, %v6176_v30  ;;  %5024 = vmatpush3.bf16.msra.mxu0 %v6331_v51 }
 0xd1d   :  { %4990 = vmatpush3.bf16.msra.mxu1 %v6204_v9  ;;  %5025 = vmatprep.subr.bf16.mxu0 %v5375_v3 }
 0xd1e   :  { %4992 = vmatprep.subr.bf16.mxu1 %v6214_v38 }
 0xd20   :  { %5027 = vmatpush3.bf16.msra.mxu0 %v6359_v52 }
 0xd21   :  { %4994 = vmatpush3.bf16.msra.mxu1 %v6222_v41  ;;  %4700 = vmatprep.subr.mxu0 %v5376_v29 }
 0xd22   :  { %4996 = vmatprep.subr.bf16.mxu1 %v6232_v58 }
 0xd24   :  { %4701 = vmatpush3.msk.msra.mxu0 %vm946_vm10, %v2598_v56 }
 0xd25   :  { %4998 = vmatpush3.bf16.msra.mxu1 %v6240_v54 }
 0xd26   :  { %5000 = vmatprep.subr.bf16.mxu1 %v6250_v36 }
 0xd29   :  { %5002 = vmatpush3.bf16.msra.mxu1 %v6258_v53 }
 0xd2a   :  { %5004 = vmatprep.subr.bf16.mxu1 %v6268_v59 }
 0xd2d   :  { %5006 = vmatpush3.bf16.msra.mxu1 %v6276_v10 }
 0xd2e   :  { %5008 = vmatprep.subr.bf16.mxu1 %v6286_v19 }
 0xd31   :  { %5010 = vmatpush3.bf16.msra.mxu1 %v6297_v1 }
 0xd32   :  { %5012 = vmatprep.subr.bf16.mxu1 %v6313_v18 }
 0xd35   :  { %5014 = vmatpush3.bf16.msra.mxu1 %v6325_v28 }
 0xd36   :  { %5016 = vmatprep.subr.bf16.mxu1 %v6341_v32 }
 0xd39   :  { %5018 = vmatpush3.bf16.msra.mxu1 %v6353_v46 }
 0xd3a   :  { %5060 = vmatprep.subr.bf16.mxu1 %v5375_v3 }
 0xdeb   :  { %v2458_v57 = vpop.f32.mrb[26].mxu1 }
 0xdec   :  { %v2459_v12 = vadd.f32 %v2458_v57, %v2374_v0  ;;  %v2460_v15 = vpop.f32.mrb[27].mxu1 }
 0xded   :  { %v2461_v21 = vadd.f32 %v2460_v15, %v2375_v63 }
 0xdee   :  { %v2536_v24 = vand.u32 2147483647, %v2459_v12 }
 0xdef   :  { %v2537_v5 = vand.u32 2147483647, %v2461_v21  ;;  %v2529_v11 = vpop.f32.mrb[28].mxu1  ;;  %v2534_v7 = vmax.f32 %v2461_v21, 0.0  ;;  %v2786_v21 = vld [vmem:[%s6713_s18] sm:$0x3f] }
 0xdf0   :  { %v2539_v17 = vsub.f32 0.0, %v2536_v24  ;;  %v2530_v23 = vadd.f32 %v2529_v11, %v2376_v31  ;;  %v4687_v26 = vpop.f32.mrb[29].mxu1  ;;  %v2533_v24 = vmax.f32 %v2459_v12, 0.0  ;;  %v2787_v12 = vld [vmem:[%s6713_s18 + $0x8] sm:$0x3f] }
 0xdf1   :  { %v2540_v34 = vsub.f32 0.0, %v2537_v5  ;;  %4187 = vmatprep.subr.msk.mxu0 %vm147_vm1, %v2787_v12 }
 0xdf2   :  { %v2542_v39 = vmul.f32 1.442695, %v2539_v17  ;;  %v2538_v55 = vand.u32 2147483647, %v2530_v23  ;;  %v2535_v17 = vmax.f32 %v2530_v23, 0.0 }
 0xdf3   :  { %v2544_v35 = vmul.f32 1.442695, %v2540_v34 }
 0xdf4   :  { %5220 = vpow2.f32 %v2542_v39  ;;  %v2541_v2 = vsub.f32 0.0, %v2538_v55  ;;  %v6395_v55 = vld [vmem:[%s6718_s23] ss:$0 sm:$0xff]  ;;  %s6405_s23 = sld [smem:[#allocation4 + $0x4]] }
 0xdf5   :  { %5222 = vpow2.f32 %v2544_v35 }
 0xdf6   :  { %v2546_v44 = vmul.f32 1.442695, %v2541_v2 }
 0xdf8   :  { %5224 = vpow2.f32 %v2546_v44 }
 0xdfe   :  { %v5221_v43 = vpop.eup %5220 }
 0xdff   :  { %v5223_v48 = vpop.eup %5222  ;;  %v2548_v56 = vadd.f32 1.0, %v5221_v43 }
 0xe00   :  { %v2549_v60 = vadd.f32 1.0, %v5223_v48 }
 0xe01   :  { %5226 = vlog2.f32 %v2548_v56 }
 0xe02   :  { %v5225_v50 = vpop.eup %5224  ;;  %5228 = vlog2.f32 %v2549_v60 }
 0xe03   :  { %v2550_v47 = vadd.f32 1.0, %v5225_v50 }
 0xe05   :  { %5230 = vlog2.f32 %v2550_v47  ;;  %v2773_v47 = vpop.permute.xlu1 %2772 }
 0xe0b   :  { %v5227_v0 = vpop.eup %5226 }
 0xe0c   :  { %v5229_v57 = vpop.eup %5228  ;;  %v2552_v63 = vmul.f32 0.6931472, %v5227_v0 }
 0xe0d   :  { %v2554_v15 = vmul.f32 0.6931472, %v5229_v57 }
 0xe0e   :  { %v2557_v11 = vadd.f32 %v2552_v63, %v2533_v24  ;;  %v2764_v63 = vstv %s6405_s23 }
 0xe0f   :  { %v5231_v31 = vpop.eup %5230  ;;  %v2558_v5 = vadd.f32 %v2554_v15, %v2534_v7 }
 0xe10   :  { %v2556_v26 = vmul.f32 0.6931472, %v5231_v31 }
 0xe11   :  { %2676 = vmatprep.mubr.f32.mxu1 %v2558_v5  ;;  %v2788_v5 = vld [vmem:[%s6713_s18 + $0x10] sm:$0x3f] }
 0xe12   :  { %v2559_v34 = vadd.f32 %v2556_v26, %v2535_v17  ;;  %2677 = vmatmul.mubr.f32.vlgmr.msra.gmra.mrb[30].mxu1 %v2557_v11  ;;  %v4195_v11 = vld [vmem:[%s6756_s1 + $0xa] sm:$0x3]  ;;  %v2783_v17 = vld [vmem:[#allocation3 + $0x18] sm:$0x30]  ;;  %v2784_v26 = vld [vmem:[#allocation3 + $0x20] sm:$0x30] }
 0xe13   :  { %5062 = vmatpush3.bf16.msra.mxu1 %v6303_v8  ;;  %4724 = vmatprep.mubr.msk.f32.mxu1 %vm5380_vm6, %v5376_v29 }
 0xe14   :  { %4703 = vmatmul.mubr.msk.f32.vlgmr.msra.gmra.mrb[20].mxu0 %vm693_vm11, %v2559_v34  ;;  %5063 = vmatprep.subr.bf16.mxu1 %v5375_v3  ;;  %v2792_v34 = vrot.slane %v2783_v17, 4 }
 0xe15   :  { %2874 = vmatprep.mubr.f32.mxu0 %v5376_v29  ;;  %4188 = vmatpush1.msk.msra.mxu0 %vm147_vm1, %v2786_v21  ;;  %v2793_v21 = vrot.slane %v2784_v26, 4 }
 0xe16   :  { %4705 = vmatprep.subr.mxu0 %v5376_v29  ;;  %3190 = vrot.lane.b32.xlu1 %v4195_v11, %s5382_s6 }
 0xe17   :  { %5065 = vmatpush3.bf16.msra.mxu1 %v6331_v51 }
 0xe18   :  { %5066 = vmatprep.subr.bf16.mxu1 %v5375_v3 }
 0xe1b   :  { %5068 = vmatpush3.bf16.msra.mxu1 %v6359_v52 }
 0xe1c   :  { %4722 = vmatprep.subr.mxu1 %v5376_v29 }
 0xee5   :  { %v4452_v23 = vpop.f32.mrb[30].mxu1 }
 0xee6   :  { %v4453_v39 = vpop.f32.mrb[31].mxu1 }
 0xee7   :  { %v4454_v35 = vadd.f32 %v4453_v39, %v4452_v23  ;;  %v2748_v2 = vpop.f32.mrb[20].mxu0  ;;  %v2785_v23 = vld [vmem:[#allocation3 + $0x28] sm:$0x30] }
 0xee8   :  { %v4704_v44 = vpop.f32.mrb[21].mxu0 }
 0xee9   :  { %v2679_v43 = vadd.f32 %v4454_v35, %v6395_v55 }
 0xeeb   :  { %v6398_v48 = vadd.f32 %v2748_v2, %v2679_v43  ;;  %v2794_v43 = vrot.slane %v2785_v23, 4 }
 0xeed   :  { %v2752_v56 = vmul.f32 0.5, %v6398_v48  ;;  %v2767_v7 = vmul.f32 %v2764_v63, %v6398_v48 }
 0xeef   :  { %5232 = vtanh.f32 %v2752_v56  ;;  %v2768_v15 = vadd.f32 %v2767_v7, %v6176_v30  ;;  %v3016_v30 = vld [vmem:[%s6717_s22 + $0x130] sm:$0xf] }
 0xef0   :  { %4723 = vmatpush3.msk.msra.mxu1 %vm946_vm10, %v3016_v30 }
 0xef9   :  { %v5233_v60 = vpop.eup %5232 }
 0xefa   :  { %v2754_v50 = vadd.f32 1.0, %v5233_v60 }
 0xefc   :  { %v6401_v0 = vmul.f32 0.5, %v2754_v50 }
 0xefe   :  { %v2775_v57 = vmul.f32 %v2773_v47, %v6401_v0 }
 0xf00   :  { %2777 = vrot.lane.b32.xlu0 %v2775_v57, %s5379_s30 }
 0xf72   :  { %v2778_v24 = vpop.permute.xlu0 %2777 }
 0xf73   :  { %v6412_v31 = vadd.f32 %v2778_v24, %v2768_v15 }
 0xf75   :  { %2781 = vst.msk [vmem:[#allocation2 + $0xa] sm:$0x3] %vm698_vm8, %v6412_v31  ;;  %4189 = vmatmul.mubr.msk.f32.vlgmr.msra.gmra.mrb[22].mxu0 %vm716_vm9, %v6412_v31 }
 0xf76   :  { %4706 = vmatpush3.msk.msra.mxu0 %vm147_vm1, %v2788_v5  ;;  %4707 = vmatprep.mubr.msk.f32.mxu0 %vm5380_vm6, %v5376_v29 }
 0xf77   :  { %5029 = vmatprep.subr.bf16.mxu0 %v6196_v45 }
 0xf79   :  { %4708 = vmatmul.mubr.msk.f32.vlgmr.msra.gmra.mrb[24].mxu0 %vm716_vm9, %v6412_v31 }
 0xf7a   :  { %5031 = vmatpush3.bf16.msra.mxu0 %v6204_v9 }
 0xf7b   :  { %5033 = vmatprep.subr.bf16.mxu0 %v6214_v38 }
 0xf7e   :  { %5035 = vmatpush3.bf16.msra.mxu0 %v6222_v41 }
 0xf7f   :  { %5037 = vmatprep.subr.bf16.mxu0 %v6232_v58 }
 0xf82   :  { %5039 = vmatpush3.bf16.msra.mxu0 %v6240_v54 }
 0xf83   :  { %5041 = vmatprep.subr.bf16.mxu0 %v6250_v36 }
 0xf86   :  { %5043 = vmatpush3.bf16.msra.mxu0 %v6258_v53 }
 0xf87   :  { %5045 = vmatprep.subr.bf16.mxu0 %v6268_v59 }
 0xf8a   :  { %5047 = vmatpush3.bf16.msra.mxu0 %v6276_v10 }
 0xf8b   :  { %5049 = vmatprep.subr.bf16.mxu0 %v6286_v19 }
 0xf8e   :  { %5051 = vmatpush3.bf16.msra.mxu0 %v6297_v1 }
 0xf8f   :  { %5053 = vmatprep.subr.bf16.mxu0 %v6313_v18 }
 0xf92   :  { %5055 = vmatpush3.bf16.msra.mxu0 %v6325_v28 }
 0xf93   :  { %5057 = vmatprep.subr.bf16.mxu0 %v6341_v32 }
 0xf96   :  { %5059 = vmatpush3.bf16.msra.mxu0 %v6353_v46 }
 0xf97   :  { %5101 = vmatprep.subr.bf16.mxu0 %v5375_v3 }
0x1048   :  { %v2876_v12 = vpop.f32.mrb[22].mxu0 }
0x1049   :  { %v2877_v39 = vadd.f32 %v2876_v12, %v2792_v34  ;;  %v2878_v35 = vpop.f32.mrb[23].mxu0 }
0x104a   :  { %v2879_v2 = vadd.f32 %v2878_v35, %v2793_v21 }
0x104b   :  { %v2954_v44 = vand.u32 2147483647, %v2877_v39 }
0x104c   :  { %v2955_v56 = vand.u32 2147483647, %v2879_v2  ;;  %v2947_v60 = vpop.f32.mrb[24].mxu0 }
0x104d   :  { %v2957_v50 = vsub.f32 0.0, %v2954_v44  ;;  %v2948_v47 = vadd.f32 %v2947_v60, %v2794_v43  ;;  %v4709_v57 = vpop.f32.mrb[25].mxu0 }
0x104e   :  { %v2958_v7 = vsub.f32 0.0, %v2955_v56  ;;  %v2952_v56 = vmax.f32 %v2879_v2, 0.0 }
0x104f   :  { %v2960_v15 = vmul.f32 1.442695, %v2957_v50  ;;  %v2956_v24 = vand.u32 2147483647, %v2948_v47  ;;  %v2951_v50 = vmax.f32 %v2877_v39, 0.0 }
0x1050   :  { %v2962_v5 = vmul.f32 1.442695, %v2958_v7  ;;  %v3204_v39 = vld [vmem:[%s6713_s18] sm:$0x3f] }
0x1051   :  { %5234 = vpow2.f32 %v2960_v15  ;;  %v2959_v30 = vsub.f32 0.0, %v2956_v24  ;;  %v2953_v24 = vmax.f32 %v2948_v47, 0.0 }
0x1052   :  { %5236 = vpow2.f32 %v2962_v5 }
0x1053   :  { %v2964_v11 = vmul.f32 1.442695, %v2959_v30 }
0x1055   :  { %5238 = vpow2.f32 %v2964_v11 }
0x105b   :  { %v5235_v17 = vpop.eup %5234 }
0x105c   :  { %v5237_v26 = vpop.eup %5236  ;;  %v2966_v34 = vadd.f32 1.0, %v5235_v17 }
0x105d   :  { %v2967_v12 = vadd.f32 1.0, %v5237_v26 }
0x105e   :  { %5240 = vlog2.f32 %v2966_v34 }
0x105f   :  { %v5239_v21 = vpop.eup %5238  ;;  %5242 = vlog2.f32 %v2967_v12 }
0x1060   :  { %v2968_v23 = vadd.f32 1.0, %v5239_v21  ;;  %v3191_v21 = vpop.permute.xlu1 %3190 }
0x1062   :  { %5244 = vlog2.f32 %v2968_v23 }
0x1068   :  { %v5241_v35 = vpop.eup %5240 }
0x1069   :  { %v5243_v44 = vpop.eup %5242  ;;  %v2970_v43 = vmul.f32 0.6931472, %v5241_v35 }
0x106a   :  { %v2972_v60 = vmul.f32 0.6931472, %v5243_v44  ;;  %v3182_v44 = vstv %s6478_s28 }
0x106b   :  { %v2975_v15 = vadd.f32 %v2970_v43, %v2951_v50 }
0x106c   :  { %v5245_v57 = vpop.eup %5244  ;;  %v2976_v7 = vadd.f32 %v2972_v60, %v2952_v56 }
0x106d   :  { %v2974_v5 = vmul.f32 0.6931472, %v5245_v57  ;;  %v3206_v57 = vld [vmem:[%s6713_s18 + $0x10] sm:$0x3f] }
0x106e   :  { %3094 = vmatprep.mubr.f32.mxu0 %v2976_v7 }
0x106f   :  { %v2977_v30 = vadd.f32 %v2974_v5, %v2953_v24  ;;  %3095 = vmatmul.mubr.f32.vlgmr.msra.gmra.mrb[26].mxu0 %v2975_v15 }
0x1070   :  { %5103 = vmatpush3.bf16.msra.mxu0 %v6303_v8  ;;  %4746 = vmatprep.mubr.msk.f32.mxu0 %vm5380_vm6, %v5376_v29  ;;  %v3205_v8 = vld [vmem:[%s6713_s18 + $0x8] sm:$0x3f] }
0x1071   :  { %4725 = vmatmul.mubr.msk.f32.vlgmr.msra.gmra.mrb[32].mxu1 %vm693_vm11, %v2977_v30  ;;  %5104 = vmatprep.subr.bf16.mxu0 %v5375_v3 }
0x1072   :  { %3292 = vmatprep.mubr.f32.mxu1 %v5376_v29  ;;  %4197 = vmatprep.subr.msk.mxu1 %vm147_vm1, %v3205_v8 }
0x1073   :  { %4198 = vmatpush1.msk.msra.mxu1 %vm147_vm1, %v3204_v39 }
0x1074   :  { %5106 = vmatpush3.bf16.msra.mxu0 %v6331_v51  ;;  %4727 = vmatprep.subr.mxu1 %v5376_v29 }
0x1075   :  { %5107 = vmatprep.subr.bf16.mxu0 %v5375_v3 }
0x1078   :  { %5109 = vmatpush3.bf16.msra.mxu0 %v6359_v52 }
0x1079   :  { %4744 = vmatprep.subr.mxu0 %v5376_v29 }
0x1142   :  { %v4497_v51 = vpop.f32.mrb[26].mxu0 }
0x1143   :  { %v4498_v3 = vpop.f32.mrb[27].mxu0 }
0x1144   :  { %v4499_v2 = vadd.f32 %v4498_v3, %v4497_v51  ;;  %v3166_v52 = vpop.f32.mrb[32].mxu1 }
0x1145   :  { %v4726_v47 = vpop.f32.mrb[33].mxu1 }
0x1146   :  { %v3097_v11 = vadd.f32 %v4499_v2, %v6395_v55 }
0x1148   :  { %v6471_v17 = vadd.f32 %v3166_v52, %v3097_v11 }
0x114a   :  { %v3170_v26 = vmul.f32 0.5, %v6471_v17  ;;  %v3185_v43 = vmul.f32 %v3182_v44, %v6471_v17 }
0x114c   :  { %5246 = vtanh.f32 %v3170_v26  ;;  %v3186_v56 = vadd.f32 %v3185_v43, %v6412_v31 }
0x1156   :  { %v5247_v34 = vpop.eup %5246 }
0x1157   :  { %v3172_v12 = vadd.f32 1.0, %v5247_v34 }
0x1159   :  { %v6474_v23 = vmul.f32 0.5, %v3172_v12 }
0x115b   :  { %v3193_v35 = vmul.f32 %v3191_v21, %v6474_v23 }
0x115d   :  { %3195 = vrot.lane.b32.xlu0 %v3193_v35, %s5379_s30 }
0x11cf   :  { %v3196_v60 = vpop.permute.xlu0 %3195 }
0x11d0   :  { %v6485_v50 = vadd.f32 %v3196_v60, %v3186_v56 }
0x11d2   :  { %3199 = vst.msk [vmem:[#allocation2 + $0xc] sm:$0x3] %vm698_vm8, %v6485_v50  ;;  %4199 = vmatmul.mubr.msk.f32.vlgmr.msra.gmra.mrb[34].mxu1 %vm716_vm9, %v6485_v50 }
0x11d3   :  { %4728 = vmatpush3.msk.msra.mxu1 %vm147_vm1, %v3206_v57  ;;  %4729 = vmatprep.mubr.msk.f32.mxu1 %vm5380_vm6, %v5376_v29  ;;  %v3434_v29 = vld [vmem:[%s6717_s22 + $0x130] sm:$0xf] }
0x11d4   :  { %5070 = vmatprep.subr.bf16.mxu1 %v6196_v45  ;;  %4745 = vmatpush3.msk.msra.mxu0 %vm946_vm10, %v3434_v29  ;;  %v4205_v45 = vld [vmem:[%s6756_s1 + $0xc] sm:$0x3] }
0x11d5   :  { %3608 = vrot.lane.b32.xlu1 %v4205_v45, %s5382_s6  ;;  %s6538_s6 = sld [smem:[#allocation4 + $0x6]] }
0x11d6   :  { %4730 = vmatmul.mubr.msk.f32.vlgmr.msra.gmra.mrb[36].mxu1 %vm716_vm9, %v6485_v50 }
0x11d7   :  { %5072 = vmatpush3.bf16.msra.mxu1 %v6204_v9  ;;  %v3201_v9 = vld [vmem:[#allocation3 + $0x18] sm:$0xc0] }
0x11d8   :  { %5074 = vmatprep.subr.bf16.mxu1 %v6214_v38  ;;  %v3202_v38 = vld [vmem:[#allocation3 + $0x20] sm:$0xc0] }
0x11db   :  { %5076 = vmatpush3.bf16.msra.mxu1 %v6222_v41  ;;  %v3210_v41 = vrot.slane %v3201_v9, 6  ;;  %v3618_v9 = vld [vmem:[#allocation2] sm:$0xff] }
0x11dc   :  { %5078 = vmatprep.subr.bf16.mxu1 %v6232_v58 }
0x11df   :  { %5080 = vmatpush3.bf16.msra.mxu1 %v6240_v54  ;;  %v3211_v54 = vrot.slane %v3202_v38, 6 }
0x11e0   :  { %5082 = vmatprep.subr.bf16.mxu1 %v6250_v36  ;;  %v3203_v36 = vld [vmem:[#allocation3 + $0x28] sm:$0xc0] }
0x11e3   :  { %5084 = vmatpush3.bf16.msra.mxu1 %v6258_v53 }
0x11e4   :  { %5086 = vmatprep.subr.bf16.mxu1 %v6268_v59 }
0x11e7   :  { %5088 = vmatpush3.bf16.msra.mxu1 %v6276_v10 }
0x11e8   :  { %5090 = vmatprep.subr.bf16.mxu1 %v6286_v19 }
0x11eb   :  { %5092 = vmatpush3.bf16.msra.mxu1 %v6297_v1  ;;  %v3212_v1 = vrot.slane %v3203_v36, 6 }
0x11ec   :  { %5094 = vmatprep.subr.bf16.mxu1 %v6313_v18 }
0x11ef   :  { %5096 = vmatpush3.bf16.msra.mxu1 %v6325_v28 }
0x11f0   :  { %5098 = vmatprep.subr.bf16.mxu1 %v6341_v32 }
0x11f3   :  { %5100 = vmatpush3.bf16.msra.mxu1 %v6353_v46 }
0x12a5   :  { %v3294_v58 = vpop.f32.mrb[34].mxu1 }
0x12a6   :  { %v3295_v53 = vadd.f32 %v3294_v58, %v3210_v41  ;;  %v3296_v59 = vpop.f32.mrb[35].mxu1 }
0x12a7   :  { %v3297_v10 = vadd.f32 %v3296_v59, %v3211_v54 }
0x12a8   :  { %v3372_v19 = vand.u32 2147483647, %v3295_v53  ;;  %v3369_v35 = vmax.f32 %v3295_v53, 0.0 }
0x12a9   :  { %v3373_v18 = vand.u32 2147483647, %v3297_v10  ;;  %v3365_v28 = vpop.f32.mrb[36].mxu1  ;;  %v3370_v12 = vmax.f32 %v3297_v10, 0.0 }
0x12aa   :  { %v3375_v32 = vsub.f32 0.0, %v3372_v19  ;;  %v3366_v46 = vadd.f32 %v3365_v28, %v3212_v1  ;;  %v4731_v31 = vpop.f32.mrb[37].mxu1  ;;  %v3620_v19 = vld [vmem:[%s6707_s12] sm:$0x3f]  ;;  %v3609_v28 = vpop.permute.xlu1 %3608 }
0x12ab   :  { %v3376_v7 = vsub.f32 0.0, %v3373_v18  ;;  %4749 = vmatprep.subr.msk.mxu0 %vm147_vm1, %v3620_v19 }
0x12ac   :  { %v3378_v15 = vmul.f32 1.442695, %v3375_v32  ;;  %v3374_v24 = vand.u32 2147483647, %v3366_v46  ;;  %v3371_v57 = vmax.f32 %v3366_v46, 0.0  ;;  %v3600_v46 = vstv %s6538_s6 }
0x12ad   :  { %v3380_v5 = vmul.f32 1.442695, %v3376_v7 }
0x12ae   :  { %5248 = vpow2.f32 %v3378_v15  ;;  %v3377_v30 = vsub.f32 0.0, %v3374_v24 }
0x12af   :  { %5250 = vpow2.f32 %v3380_v5 }
0x12b0   :  { %v3382_v8 = vmul.f32 1.442695, %v3377_v30  ;;  %v3622_v30 = vld [vmem:[%s6709_s14] sm:$0xff] }
0x12b2   :  { %5252 = vpow2.f32 %v3382_v8  ;;  %v3623_v8 = vld [vmem:[%s6709_s14 + $0x8] sm:$0xff] }
0x12b8   :  { %v5249_v39 = vpop.eup %5248 }
0x12b9   :  { %v5251_v51 = vpop.eup %5250  ;;  %v3384_v3 = vadd.f32 1.0, %v5249_v39  ;;  %v5110_v39 = vpack.c.bf16 %v3623_v8, %v3622_v30 }
0x12ba   :  { %v3385_v2 = vadd.f32 1.0, %v5251_v51  ;;  %v3625_v51 = vld [vmem:[%s6709_s14 + $0x18] sm:$0x3f] }
0x12bb   :  { %5254 = vlog2.f32 %v3384_v3 }
0x12bc   :  { %v5253_v52 = vpop.eup %5252  ;;  %5256 = vlog2.f32 %v3385_v2  ;;  %v4206_v2 = vld [vmem:[%s6708_s13] ss:$0 sm:$0xff] }
0x12bd   :  { %v3386_v47 = vadd.f32 1.0, %v5253_v52 }
0x12bf   :  { %5258 = vlog2.f32 %v3386_v47 }
0x12c5   :  { %v5255_v11 = vpop.eup %5254 }
0x12c6   :  { %v5257_v26 = vpop.eup %5256  ;;  %v3388_v34 = vmul.f32 0.6931472, %v5255_v11 }
0x12c7   :  { %v3390_v21 = vmul.f32 0.6931472, %v5257_v26 }
0x12c8   :  { %v3393_v60 = vadd.f32 %v3388_v34, %v3369_v35 }
0x12c9   :  { %v5259_v43 = vpop.eup %5258  ;;  %v3394_v56 = vadd.f32 %v3390_v21, %v3370_v12 }
0x12ca   :  { %v3392_v29 = vmul.f32 0.6931472, %v5259_v43 }
0x12cb   :  { %3512 = vmatprep.mubr.f32.mxu1 %v3394_v56 }
0x12cc   :  { %v3395_v45 = vadd.f32 %v3392_v29, %v3371_v57  ;;  %3513 = vmatmul.mubr.f32.vlgmr.msra.gmra.mrb[38].mxu1 %v3393_v60 }
0x12ce   :  { %4747 = vmatmul.mubr.msk.f32.vlgmr.msra.gmra.mrb[28].mxu0 %vm693_vm11, %v3395_v45 }
0x12cf   :  { %4751 = vmatprep.mubr.msk.f32.mxu0 %vm716_vm9, %v3618_v9  ;;  %4750 = vmatpush3.msk.msra.mxu0 %vm147_vm1, %v3620_v19  ;;  %v3627_v19 = vld [vmem:[%s6711_s16] sm:$0xff] }
0x12d0   :  { %5111 = vmatprep.subr.bf16.mxu0 %v5110_v39 }
0x139f   :  { %v4542_v38 = vpop.f32.mrb[38].mxu1 }
0x13a0   :  { %v4543_v41 = vpop.f32.mrb[39].mxu1 }
0x13a1   :  { %v4544_v58 = vadd.f32 %v4543_v41, %v4542_v38  ;;  %v3584_v54 = vpop.f32.mrb[28].mxu0 }
0x13a2   :  { %v4748_v36 = vpop.f32.mrb[29].mxu0 }
0x13a3   :  { %v3515_v53 = vadd.f32 %v4544_v58, %v6395_v55 }
0x13a5   :  { %v6526_v59 = vadd.f32 %v3584_v54, %v3515_v53 }
0x13a7   :  { %v3588_v10 = vmul.f32 0.5, %v6526_v59  ;;  %v3603_v31 = vmul.f32 %v3600_v46, %v6526_v59 }
0x13a9   :  { %5260 = vtanh.f32 %v3588_v10  ;;  %v3604_v7 = vadd.f32 %v3603_v31, %v6485_v50  ;;  %v3624_v50 = vld [vmem:[%s6709_s14 + $0x10] sm:$0xff] }
0x13aa   :  { %v5114_v3 = vpack.c.bf16 %v3625_v51, %v3624_v50 }
0x13b3   :  { %v5261_v1 = vpop.eup %5260 }
0x13b4   :  { %v3590_v18 = vadd.f32 1.0, %v5261_v1  ;;  %v3628_v1 = vld [vmem:[%s6711_s16 + $0x8] sm:$0xff] }
0x13b6   :  { %v6534_v32 = vmul.f32 0.5, %v3590_v18  ;;  %v5120_v18 = vpack.c.bf16 %v3628_v1, %v3627_v19 }
0x13b8   :  { %v3611_v55 = vmul.f32 %v3609_v28, %v6534_v32  ;;  %v3629_v28 = vld [vmem:[%s6711_s16 + $0x10] sm:$0xff] }
0x13ba   :  { %3613 = vrot.lane.b32.xlu0 %v3611_v55, %s5379_s30  ;;  %v3630_v55 = vld [vmem:[%s6711_s16 + $0x18] sm:$0x3f] }
0x13bb   :  { %v5124_v31 = vpack.c.bf16 %v3630_v55, %v3629_v28  ;;  %v1511_v55 = vadd.f32 1e-07, %v6027_v22  ;;  %v3174_v22 = vadd.f32 1e-07, %v6474_v23 }
0x142c   :  { %v3614_v15 = vpop.permute.xlu0 %3613 }
0x142d   :  { %v3616_v24 = vadd.f32 %v3614_v15, %v3604_v7  ;;  %v4210_v7 = vld [vmem:[%s6710_s15] ss:$0 sm:$0xff] }
0x142f   :  { %3617 = vst.msk [vmem:[#allocation2 + $0xe] sm:$0x3] %vm698_vm8, %v3616_v24 }
0x1436   :  { %v3619_v5 = vld [vmem:[#allocation2 + $0x8] sm:$0xff] }
0x1437   :  { %4752 = vmatmul.mubr.msk.f32.vlgmr.msra.gmra.mrb[30].mxu0 %vm716_vm9, %v3619_v5 }
0x1438   :  { %5113 = vmatpush3.bf16.msra.mxu0 %v5110_v39 }
0x1439   :  { %5116 = vmatprep.subr.msk.bf16.mxu0 %vm5627_vm3, %v5114_v3 }
0x143c   :  { %5119 = vmatpush3.bf16.msk.msra.mxu0 %vm5627_vm3, %v5114_v3 }
0x143d   :  { %5121 = vmatprep.subr.bf16.mxu0 %v5120_v18 }
0x150a   :  { %v4753_v52 = vpop.f32.mrb[30].mxu0 }
0x150b   :  { %v3719_v47 = vadd.f32 %v4753_v52, %v4206_v2  ;;  %v3713_v11 = vpop.f32.mrb[31].mxu0 }
0x150c   :  { %v3714_v26 = vadd.f32 %v4206_v2, %v3713_v11 }
0x150d   :  { %v3725_v34 = vand.u32 2147483647, %v3719_v47  ;;  %v3723_v36 = vmax.f32 %v3719_v47, 0.0 }
0x150e   :  { %v3724_v12 = vand.u32 2147483647, %v3714_v26  ;;  %v3722_v58 = vmax.f32 %v3714_v26, 0.0 }
0x150f   :  { %v3727_v21 = vsub.f32 0.0, %v3725_v34 }
0x1510   :  { %v3726_v35 = vsub.f32 0.0, %v3724_v12 }
0x1511   :  { %v3730_v43 = vmul.f32 1.442695, %v3727_v21 }
0x1512   :  { %v3728_v56 = vmul.f32 1.442695, %v3726_v35 }
0x1513   :  { %5262 = vpow2.f32 %v3730_v43 }
0x1514   :  { %5264 = vpow2.f32 %v3728_v56 }
0x151d   :  { %v5263_v60 = vpop.eup %5262 }
0x151e   :  { %v5265_v57 = vpop.eup %5264  ;;  %v3733_v29 = vadd.f32 1.0, %v5263_v60 }
0x151f   :  { %v3732_v45 = vadd.f32 1.0, %v5265_v57  ;;  %v4214_v57 = vld [vmem:[%s6712_s17] ss:$0 sm:$0xff]  ;;  %s5384_s17 = smov 78  }
0x1520   :  { %5266 = vlog2.f32 %v3733_v29  ;;  %v4004_v29 = vld [vmem:[%s6720_s25] sm:$0x1] }
0x1521   :  { %5268 = vlog2.f32 %v3732_v45 }
0x152a   :  { %v5267_v9 = vpop.eup %5266 }
0x152b   :  { %v5269_v38 = vpop.eup %5268  ;;  %v3737_v41 = vmul.f32 0.6931472, %v5267_v9 }
0x152c   :  { %v3735_v54 = vmul.f32 0.6931472, %v5269_v38 }
0x152d   :  { %v3739_v10 = vadd.f32 %v3737_v41, %v3723_v36  ;;  %v4220_v41 = vclamps-f32 %v4004_v29, 6.0 }
0x152e   :  { %v3738_v53 = vadd.f32 %v3735_v54, %v3722_v58 }
0x1530   :  { %4762 = vmatprep.mubr.msk.f32.mxu0 %vm250_vm4, %v3738_v53 }
0x1531   :  { %4763 = vmatmul.mubr.msk.f32.vlgmr.msra.gmra.mrb[32].mxu0 %vm250_vm4, %v3739_v10  ;;  %v4007_v10 = vmul.f32 1.442695, %v4220_v41 }
0x1532   :  { %5123 = vmatpush3.bf16.msra.mxu0 %v5120_v18 }
0x1533   :  { %5126 = vmatprep.subr.msk.bf16.mxu0 %vm5627_vm3, %v5124_v31 }
0x1536   :  { %5129 = vmatpush3.bf16.msk.msra.mxu0 %vm5627_vm3, %v5124_v31  ;;  %v1094_v31 = vadd.f32 1e-07, %v5958_v33  ;;  %v2756_v33 = vadd.f32 1e-07, %v6401_v0 }
0x1604   :  { %v4764_v15 = vpop.f32.mrb[32].mxu0 }
0x1605   :  { %v3827_v24 = vadd.f32 %v4764_v15, %v4210_v7  ;;  %v3821_v5 = vpop.f32.mrb[33].mxu0  ;;  %v2338_v15 = vadd.f32 1e-07, %v6165_v14  ;;  %v4221_v14 = vld [vmem:[%s6719_s24] ss:$0 sm:$0xff] }
0x1606   :  { %v3822_v30 = vadd.f32 %v4210_v7, %v3821_v5 }
0x1607   :  { %v3833_v8 = vand.u32 2147483647, %v3827_v24  ;;  %v3831_v43 = vmax.f32 %v3827_v24, 0.0  ;;  %v1929_v24 = vadd.f32 1e-07, %v6097_v13 }
0x1608   :  { %v3832_v39 = vand.u32 2147483647, %v3822_v30  ;;  %v3830_v21 = vmax.f32 %v3822_v30, 0.0  ;;  %v3592_v13 = vadd.f32 1e-07, %v6534_v32  ;;  %v3947_v32 = vld [vmem:[%s6758_s10 + $0x8] sm:$0xff] }
0x1609   :  { %v3835_v50 = vsub.f32 0.0, %v3833_v8  ;;  %v4032_v8 = vsub.f32 %v5678_v42, %v4221_v14  ;;  %v3946_v42 = vld [vmem:[%s6758_s10] sm:$0xff] }
0x160a   :  { %v3834_v51 = vsub.f32 0.0, %v3832_v39 }
0x160b   :  { %v3838_v3 = vmul.f32 1.442695, %v3835_v50  ;;  %v4033_v23 = vmul.f32 %v4032_v8, %v4032_v8 }
0x160c   :  { %v3836_v2 = vmul.f32 1.442695, %v3834_v51 }
0x160d   :  { %5270 = vpow2.f32 %v3838_v3 }
0x160e   :  { %5272 = vpow2.f32 %v3836_v2 }
0x1617   :  { %v5271_v52 = vpop.eup %5270 }
0x1618   :  { %v5273_v47 = vpop.eup %5272  ;;  %v3841_v40 = vadd.f32 1.0, %v5271_v52 }
0x1619   :  { %v3840_v11 = vadd.f32 1.0, %v5273_v47 }
0x161a   :  { %5274 = vlog2.f32 %v3841_v40 }
0x161b   :  { %5276 = vlog2.f32 %v3840_v11 }
0x1624   :  { %v5275_v26 = vpop.eup %5274 }
0x1625   :  { %v5277_v34 = vpop.eup %5276  ;;  %v3845_v12 = vmul.f32 0.6931472, %v5275_v26 }
0x1626   :  { %v3843_v35 = vmul.f32 0.6931472, %v5277_v34 }
0x1627   :  { %v3847_v60 = vadd.f32 %v3845_v12, %v3831_v43 }
0x1628   :  { %v3846_v56 = vadd.f32 %v3843_v35, %v3830_v21 }
0x162a   :  { %4773 = vmatprep.mubr.msk.f32.mxu0 %vm250_vm4, %v3846_v56 }
0x162b   :  { %4774 = vmatmul.mubr.msk.f32.vlgmr.msra.gmra.mrb[34].mxu0 %vm250_vm4, %v3847_v60 }
0x16fe   :  { %v4775_v45 = vpop.f32.mrb[34].mxu0 }
0x16ff   :  { %v3935_v9 = vadd.f32 %v4775_v45, %v4214_v57  ;;  %v3929_v38 = vpop.f32.mrb[35].mxu0 }
0x1700   :  { %v3930_v58 = vadd.f32 %v4214_v57, %v3929_v38 }
0x1701   :  { %v4219_v54 = vclamps-f32 %v3935_v9, 6.0  ;;  %v3949_v52 = vsub.f32 %v3947_v32, %v3935_v9 }
0x1702   :  { %v4218_v36 = vclamps-f32 %v3930_v58, 6.0  ;;  %v3948_v40 = vsub.f32 %v3946_v42, %v3930_v58 }
0x1703   :  { %v3944_v53 = vmul.f32 1.442695, %v4219_v54 }
0x1704   :  { %v3942_v19 = vmul.f32 1.442695, %v4218_v36 }
0x1705   :  { %5278 = vpow2.f32 %v3944_v53 }
0x1706   :  { %5280 = vpow2.f32 %v3942_v19 }
0x1707   :  { %5282 = vpow2.f32 %v4007_v10 }
0x170f   :  { %v6595_v1 = vpop.eup %5278 }
0x1710   :  { %v6597_v18 = vpop.eup %5280  ;;  %3954 = vrot.lane.b32.xlu0 %v6595_v1, %s5384_s17 }
0x1711   :  { %v6601_v28 = vpop.eup %5282  ;;  %3952 = vrot.lane.b32.xlu1 %v6597_v18, %s5384_s17 }
0x1712   :  { %v4039_v7 = vmul.f32 2.0, %v6601_v28 }
0x1714   :  { %1513 = vrot.lane.b32.xlu0 %v1511_v55, %s5383_s11  ;;  %v4040_v5 = vmul.f32 %v6601_v28, %v4039_v7 }
0x1715   :  { %1096 = vrot.lane.b32.xlu1 %v1094_v31, %s5383_s11 }
0x1716   :  { %v4045_v30 = vrot.slane %v4040_v5, %v5916_v4 }
0x1718   :  { %2340 = vrot.lane.b32.xlu0 %v2338_v15, %s5383_s11 }
0x1719   :  { %1931 = vrot.lane.b32.xlu1 %v1929_v24, %s5383_s11 }
0x171c   :  { %3176 = vrot.lane.b32.xlu0 %v3174_v22, %s5383_s11 }
0x171d   :  { %2758 = vrot.lane.b32.xlu1 %v2756_v33, %s5383_s11  ;;  %v4025_v33 = vmul.f32 %v5692_v49, %v5692_v49 }
0x1720   :  { %4046 = vrot.lane.b32.xlu0 %v4045_v30, %s6757_s2 }
0x1721   :  { %3594 = vrot.lane.b32.xlu1 %v3592_v13, %s5383_s11 }
0x1725   :  { %4035 = vrot.lane.b32.xlu1 %v4033_v23, %s6757_s2 }
0x1782   :  { %v3955_v0 = vpop.permute.xlu0 %3954 }
0x1783   :  { %5284 = vrcp.f32 %v3955_v0  ;;  %v3953_v39 = vpop.permute.xlu1 %3952 }
0x1784   :  { %5286 = vrcp.f32 %v3953_v39 }
0x1786   :  { %v1514_v50 = vpop.permute.xlu0 %1513 }
0x1787   :  { %5288 = vrcp.f32 %v1514_v50  ;;  %v1097_v51 = vpop.permute.xlu1 %1096 }
0x1788   :  { %5290 = vrcp.f32 %v1097_v51 }
0x1789   :  { %5292 = vlog2.f32 %v5692_v49 }
0x178a   :  { %v2341_v3 = vpop.permute.xlu0 %2340 }
0x178b   :  { %5294 = vrcp.f32 %v2341_v3  ;;  %v1932_v2 = vpop.permute.xlu1 %1931 }
0x178c   :  { %5296 = vrcp.f32 %v1932_v2 }
0x178d   :  { %v5285_v47 = vpop.eup %5284 }
0x178e   :  { %v5287_v11 = vpop.eup %5286  ;;  %v3177_v26 = vpop.permute.xlu0 %3176  ;;  %v3961_v34 = vmul.f32 %v5285_v47, %v3949_v52 }
0x178f   :  { %5298 = vrcp.f32 %v3177_v26  ;;  %v2759_v12 = vpop.permute.xlu1 %2758  ;;  %v3959_v21 = vmul.f32 %v5287_v11, %v3948_v40 }
0x1790   :  { %5300 = vrcp.f32 %v2759_v12  ;;  %v3969_v35 = vmul.f32 0.5, %v3961_v34 }
0x1791   :  { %v5289_v43 = vpop.eup %5288  ;;  %v3968_v56 = vmul.f32 0.5, %v3959_v21 }
0x1792   :  { %v5291_v60 = vpop.eup %5290  ;;  %v1517_v57 = vmul.f32 %v5289_v43, %v6024_v16  ;;  %v4047_v29 = vpop.permute.xlu0 %4046  ;;  %v3971_v45 = vmul.f32 %v3969_v35, %v3961_v34 }
0x1793   :  { %v1100_v9 = vmul.f32 %v5291_v60, %v5955_v25  ;;  %5302 = vrcp.f32 %v4047_v29  ;;  %v3595_v38 = vpop.permute.xlu1 %3594  ;;  %v3970_v41 = vmul.f32 %v3968_v56, %v3959_v21  ;;  %v5293_v58 = vpop.eup %5292 }
0x1794   :  { %v1518_v54 = vmul.f32 %v1517_v57, %v1517_v57  ;;  %5304 = vrcp.f32 %v3595_v38  ;;  %3976 = vrot.lane.b32.xlu1 %v3971_v45, %s5385_s3  ;;  %v4013_v31 = vmul.f32 0.6931472, %v5293_v58 }
0x1795   :  { %v5295_v36 = vpop.eup %5294  ;;  %v1101_v53 = vmul.f32 %v1100_v9, %v1100_v9  ;;  %3974 = vrot.lane.b32.xlu0 %v3970_v41, %s5385_s3  ;;  %5306 = vlog2.f32 %v6595_v1 }
0x1796   :  { %v5297_v10 = vpop.eup %5296  ;;  %v2344_v16 = vmul.f32 %v5295_v36, %v6162_v62  ;;  %v1520_v19 = vmul.f32 %v1519_v27, %v1518_v54  ;;  %5308 = vlog2.f32 %v6597_v18 }
0x1797   :  { %v1103_v55 = vmul.f32 %v1102_v37, %v1101_v53  ;;  %v1935_v25 = vmul.f32 %v5297_v10, %v6094_v6  ;;  %v4036_v5 = vpop.permute.xlu1 %4035  ;;  %5310 = vlog2.f32 %v6601_v28 }
0x1798   :  { %v2345_v15 = vmul.f32 %v2344_v16, %v2344_v16  ;;  %v4038_v30 = vadd.f32 %v4036_v5, %v4025_v33 }
0x1799   :  { %v5299_v7 = vpop.eup %5298  ;;  %v1936_v24 = vmul.f32 %v1935_v25, %v1935_v25  ;;  %4021 = vrot.lane.b32.xlu0 %v4013_v31, %s5383_s11  ;;  %v1521_v37 = vadd.f32 %v1520_v19, %v1103_v55 }
0x179a   :  { %v5301_v22 = vpop.eup %5300  ;;  %v3180_v62 = vmul.f32 %v5299_v7, %v6471_v17  ;;  %v2347_v8 = vmul.f32 %v2346_v20, %v2345_v15 }
0x179b   :  { %v2762_v27 = vmul.f32 %v5301_v22, %v6398_v48  ;;  %v1938_v6 = vmul.f32 %v1937_v61, %v1936_v24 }
0x179c   :  { %v3181_v0 = vmul.f32 %v3180_v62, %v3180_v62 }
0x179d   :  { %v5303_v14 = vpop.eup %5302  ;;  %v1939_v13 = vadd.f32 %v1938_v6, %v1521_v37  ;;  %v2763_v23 = vmul.f32 %v2762_v27, %v2762_v27 }
0x179e   :  { %v5305_v39 = vpop.eup %5304  ;;  %v4050_v50 = vmul.f32 %v5303_v14, %v4038_v30  ;;  %v3183_v61 = vmul.f32 %v3182_v44, %v3181_v0 }
0x179f   :  { %v2348_v51 = vadd.f32 %v2347_v8, %v1939_v13  ;;  %v2765_v49 = vmul.f32 %v2764_v63, %v2763_v23  ;;  %v3598_v17 = vmul.f32 %v5305_v39, %v6526_v59  ;;  %v5307_v20 = vpop.eup %5306 }
0x17a0   :  { %4052 = vrot.lane.b32.xlu1 %v4050_v50, %s5383_s11  ;;  %v5309_v63 = vpop.eup %5308  ;;  %v3965_v52 = vmul.f32 0.6931472, %v5307_v20 }
0x17a1   :  { %v2766_v48 = vadd.f32 %v2765_v49, %v2348_v51  ;;  %v3599_v32 = vmul.f32 %v3598_v17, %v3598_v17  ;;  %v3963_v59 = vmul.f32 0.6931472, %v5309_v63 }
0x17a2   :  { %v3967_v47 = vsub.f32 -0.9189385, %v3965_v52 }
0x17a3   :  { %v3184_v42 = vadd.f32 %v3183_v61, %v2766_v48  ;;  %v3601_v3 = vmul.f32 %v3600_v46, %v3599_v32  ;;  %v3966_v11 = vsub.f32 -0.9189385, %v3963_v59  ;;  %v5311_v46 = vpop.eup %5310 }
0x17a4   :  { %v4011_v1 = vmul.f32 0.6931472, %v5311_v46 }
0x17a5   :  { %v3602_v2 = vadd.f32 %v3601_v3, %v3184_v42 }
0x17a6   :  { %v4018_v18 = vrot.slane %v4011_v1, %v5916_v4 }
0x17a7   :  { %4069 = vrot.lane.b32.xlu0 %v3602_v2, %s5383_s11  ;;  %s5386_s11 = smov [#allocation8]  }
0x17a8   :  { %s4105_s29 = sshll.u32 %s5386_s11, 4  ;;  %s4106_s29 = int_to_ptr.vmem [resolvable:$true] %s4105_s29 }
0x17a9   :  { %s5324_s20 = scalar_lea.vmem %s4106_s29, 16  ;;  %s5328_s8 = scalar_lea.vmem %s4106_s29, 32 }
0x17aa   :  { %p5325_p5 = scmp.ne.s32.totalorder %s4106_s29, %s5324_s20  ;;  %p5329_p6 = scmp.lt.s32.totalorder %s4106_s29, %s4106_s29 }
0x17ab   :  { %p5330_p7 = scmp.lt.s32.totalorder %s5328_s8, %s5324_s20 }
0x17ad   :  { %p5331_p8 = por %p5330_p7, %p5329_p6 }
0x17af   :  { %p5332_p9 = pnand %p5331_p8, %p5325_p5 }
0x1806   :  { %v3977_v40 = vpop.permute.xlu1 %3976 }
0x1807   :  { %v3981_v26 = vsub.f32 %v3967_v47, %v3977_v40  ;;  %v3975_v44 = vpop.permute.xlu0 %3974 }
0x1808   :  { %v3980_v34 = vsub.f32 %v3966_v11, %v3975_v44 }
0x1809   :  { %3986 = vrot.lane.b32.xlu0 %v3981_v26, %s5384_s17 }
0x180a   :  { %3984 = vrot.lane.b32.xlu1 %v3980_v34, %s5384_s17 }
0x180b   :  { %v4022_v12 = vpop.permute.xlu0 %4021 }
0x180c   :  { %v4024_v35 = vsub.f32 %v4018_v18, %v4022_v12 }
0x1812   :  { %v4053_v21 = vpop.permute.xlu1 %4052 }
0x1813   :  { %v4055_v43 = vadd.f32 %v4053_v21, %v4024_v35 }
0x1815   :  { %v4222_v56 = vadd.f32 -0.5, %v4055_v43 }
0x1817   :  { %v4057_v60 = vsel %vm698_vm8, %v4222_v56, 0.0 }
0x1819   :  { %v4070_v57 = vpop.permute.xlu0 %4069 }
0x181a   :  { %v4072_v29 = vsel %vm698_vm8, %v4070_v57, 0.0 }
0x1828   :  { %4058 = vadd.xlane.f32.xlu0 %v4057_v60 }
0x182e   :  { %4073 = vadd.xlane.f32.xlu1 %v4072_v29 }
0x187b   :  { %v3987_v28 = vpop.permute.xlu0 %3986 }
0x187c   :  { %v3985_v45 = vpop.permute.xlu1 %3984  ;;  %v3994_v9 = vsel %vm3990_vm12, %v3987_v28, 0.0 }
0x187d   :  { %3995 = vadd.xlane.f32.xlu1 %v3994_v9  ;;  %v3991_v38 = vsel %vm3990_vm12, %v3985_v45, 0.0 }
0x187e   :  { %3992 = vadd.xlane.f32.xlu0 %v3991_v38 }
0x18b5   :  { %v4059_v4 = vpop.xlane.xlu0 %4058 }
0x18b6   :  { %v4061_v41 = vsel %vm4060_vm13, %v4059_v4, 0.0 }
0x18b7   :  { %v4062_v58 = vrot.slane %v4061_v41, 4 }
0x18b9   :  { %v4063_v54 = vadd.f32 %v4062_v58, %v4061_v41 }
0x18bb   :  { %v4074_v36 = vpop.xlane.xlu1 %4073  ;;  %v4064_v10 = vrot.slane %v4063_v54, 2 }
0x18bc   :  { %v4075_v53 = vsel %vm4060_vm13, %v4074_v36, 0.0 }
0x18bd   :  { %v4076_v16 = vrot.slane %v4075_v53, 4  ;;  %v4065_v55 = vadd.f32 %v4064_v10, %v4063_v54 }
0x18bf   :  { %v4077_v19 = vadd.f32 %v4076_v16, %v4075_v53  ;;  %v4066_v7 = vrot.slane %v4065_v55, 1 }
0x18c1   :  { %v4078_v25 = vrot.slane %v4077_v19, 2  ;;  %v4067_v5 = vadd.f32 %v4066_v7, %v4065_v55 }
0x18c3   :  { %v4079_v31 = vadd.f32 %v4078_v25, %v4077_v19 }
0x18c5   :  { %v4080_v15 = vrot.slane %v4079_v31, 1 }
0x18c7   :  { %v4081_v24 = vadd.f32 %v4080_v15, %v4079_v31 }
0x18c9   :  { %v4085_v22 = vmul.f32 0.5, %v4081_v24 }
0x18cb   :  { %v4086_v33 = vadd.f32 %v4085_v22, %v4067_v5 }
0x18cd   :  { %v4087_v62 = vmul.f32 0.5, %v4086_v33 }
0x18cf   :  { %4088 = vst.msk [vmem:[#allocation8] sm:$0x1] %vm4083_vm14, %v4087_v62 }
0x18d0   :  { %5335 = shalt.err (!%p5332_p9)
}
0x18d1   :  { %s5336_s28 = scalar_lea.hbm %s6722_s27, 16 }
0x18d2   :  { %p5337_p10 = scmp.ne.s32.totalorder %s6722_s27, %s5336_s28  ;;  %p5340_p11 = scmp.lt.u32.totalorder %s5336_s28, %s6722_s27 }
0x18d4   :  { %p5342_p12 = pnand %p5340_p11, %p5337_p10 }
0x18d6   :  { %5345 = shalt.err (!%p5342_p12)
}
0x18d7   :  { %4108 = dma.vmem_to_hbm [thread:$0]  %s4106_s29, 16, %s6722_s27, [#allocation9]  }
0x18d8   :  { %s5387_s30 = smov [#allocation7]  }
0x18d9   :  { %s4095_s21 = sshll.u32 %s5387_s30, 4  ;;  %s4096_s21 = int_to_ptr.vmem [resolvable:$true] %s4095_s21 }
0x18da   :  { %s5346_s15 = scalar_lea.vmem %s4096_s21, 16  ;;  %s5350_s16 = scalar_lea.vmem %s4096_s21, 32 }
0x18db   :  { %p5347_p13 = scmp.ne.s32.totalorder %s4096_s21, %s5346_s15  ;;  %p5351_p0 = scmp.lt.s32.totalorder %s4096_s21, %s4096_s21 }
0x18dc   :  { %p5352_p1 = scmp.lt.s32.totalorder %s5350_s16, %s5346_s15 }
0x18de   :  { %p5353_p2 = por %p5352_p1, %p5351_p0 }
0x18e0   :  { %p5354_p3 = pnand %p5353_p2, %p5347_p13 }
0x190a   :  { %v3996_v27 = vpop.xlane.xlu1 %3995 }
0x190b   :  { %v3993_v37 = vpop.xlane.xlu0 %3992 }
0x190c   :  { %v3997_v6 = vadd.f32 %v3996_v27, %v3993_v37 }
0x190e   :  { %v3998_v30 = vrot.slane %v3997_v6, 4 }
0x1910   :  { %v3999_v14 = vadd.f32 %v3998_v30, %v3997_v6 }
0x1912   :  { %v4000_v13 = vrot.slane %v3999_v14, 2 }
0x1914   :  { %v4001_v8 = vadd.f32 %v4000_v13, %v3999_v14 }
0x1916   :  { %v4002_v23 = vrot.slane %v4001_v8, 1 }
0x1918   :  { %v4003_v0 = vadd.f32 %v4002_v23, %v4001_v8 }
0x191a   :  { %v4082_v39 = vmul.f32 0.5, %v4003_v0 }
0x191c   :  { %4084 = vst.msk [vmem:[#allocation7] sm:$0x1] %vm4083_vm14, %v4082_v39 }
0x191d   :  { %5357 = shalt.err (!%p5354_p3)
}
0x191e   :  { %s5358_s5 = scalar_lea.hbm %s6721_s26, 16 }
0x191f   :  { %p5359_p4 = scmp.ne.s32.totalorder %s6721_s26, %s5358_s5  ;;  %p5362_p5 = scmp.lt.u32.totalorder %s5358_s5, %s6721_s26 }
0x1921   :  { %p5364_p6 = pnand %p5362_p5, %p5359_p4 }
0x1923   :  { %5367 = shalt.err (!%p5364_p6)
}
0x1924   :  { %4098 = dma.vmem_to_hbm [thread:$0]  %s4096_s21, 16, %s6721_s26, [#allocation5]  }
0x1925   :  { %5370 = dma.done.wait [#allocation5], 16  }
0x1926   :  { %5371 = vsyncadd [#allocation5], 4294967280 }
0x1927   :  { %5372 = dma.done.wait [#allocation9], 16  }
0x1928   :  { %5373 = vsyncadd [#allocation9], 4294967280 }
0x1929   :  { %4115 = vsyncpa [#allocation5], 1 }
0x192a   :  { %4116 = vsyncpa [#allocation9], 1 }
0x192b   :  { %4117 = vsyncpa [#allocation6], 1 }

</bundles_post_ra>
